<compile_context>
chip_gen: v7x
topology: tpu7x:2x2x1
jax: 0.10.0
libtpu: 0.0.40
codegen_flags: <defaults>
</compile_context>

<pallas_src>
import numpy as np

import jax
import jax.numpy as jnp
from jax.experimental import pallas as pl
from jax.experimental.pallas import tpu as pltpu

LANE = 128


# ----------------------------------------------------------------------------
# Parameter construction (torch-layout, xavier-uniform-like, zero biases)
# ----------------------------------------------------------------------------
def _xavier_uniform(key, shape, fan_in, fan_out):
    bound = (6.0 / (fan_in + fan_out)) ** 0.5
    return jax.random.uniform(key, shape, jnp.float32, -bound, bound)


def init_params(key, obs_shape, action_dim, n_tasks,
                kernel_sizes, strides, hidden_channels, hidden_sizes):
    c, h, w = obs_shape
    params = {"conv": [], "mlp": []}
    in_c, cur_h, cur_w = c, h, w
    for k, s, out_c in zip(kernel_sizes, strides, hidden_channels):
        key, sub = jax.random.split(key)
        wgt = _xavier_uniform(sub, (out_c, in_c, k, k),
                              fan_in=in_c * k * k, fan_out=out_c * k * k)
        params["conv"].append((wgt, jnp.zeros((out_c,), jnp.float32), s))
        cur_h = (cur_h - k) // s + 1
        cur_w = (cur_w - k) // s + 1
        in_c = out_c
    flat_dim = in_c * cur_h * cur_w
    dim = flat_dim
    for hs in hidden_sizes:
        key, sub = jax.random.split(key)
        wgt = _xavier_uniform(sub, (dim, hs), fan_in=dim, fan_out=hs)
        params["mlp"].append((wgt, jnp.zeros((hs,), jnp.float32)))
        dim = hs
    key, sub = jax.random.split(key)
    params["out_w"] = _xavier_uniform(sub, (n_tasks, dim, action_dim),
                                      fan_in=dim, fan_out=action_dim)
    params["out_b"] = jnp.zeros((n_tasks, action_dim), jnp.float32)
    return params, flat_dim


# ----------------------------------------------------------------------------
# Fused forward builder: ONE pallas_call for conv trunk + MLP + task head
# ----------------------------------------------------------------------------
def build_forward(params, obs_shape, batch, action_dim):
    c_in, h_in, w_in = obs_shape
    n_conv = len(params["conv"])
    assert n_conv >= 1
    assert len(params["mlp"]) >= 1, "fused kernel expects >=1 MLP hidden layer"

    # --- static conv geometry + im2col-ordered weights (bf16 for DMA) --------
    conv_dims = []                  # (k, s, cin, ih, iw, cout, oh, ow)
    conv_w_ops, conv_b_ops = [], []
    cur_c, cur_h, cur_w = c_in, h_in, w_in
    for wgt, bias, stride in params["conv"]:
        cout, cin, kh, kw = wgt.shape
        assert cin == cur_c and kh == kw
        k = kh
        oh = (cur_h - k) // stride + 1
        ow = (cur_w - k) // stride + 1
        conv_dims.append((k, stride, cur_c, cur_h, cur_w, cout, oh, ow))
        # W_col row index = (di*k + dj)*cin + ci  (matches in-kernel col order)
        w_col = jnp.transpose(wgt, (2, 3, 1, 0)).reshape(k * k * cin, cout)
        conv_w_ops.append(w_col.astype(jnp.bfloat16))
        conv_b_ops.append(bias.reshape(1, cout).astype(jnp.float32))
        cur_c, cur_h, cur_w = cout, oh, ow

    npos = cur_h * cur_w            # spatial positions after the conv trunk
    c_last = cur_c
    flat_dim = npos * c_last

    # --- torch NCHW .view(N,-1) flatten folded into the first MLP weight -----
    # torch flat index = c*npos + p ; in-kernel flat row is ordered p*C + c.
    wm1, bm1 = params["mlp"][0]
    hid1 = wm1.shape[1]
    wm1_p = (wm1.reshape(c_last, npos, hid1)
                .transpose(1, 0, 2)
                .reshape(flat_dim, hid1)).astype(jnp.bfloat16)
    bm1_r = bm1.reshape(1, hid1).astype(jnp.float32)

    extra = [(w.astype(jnp.bfloat16), b.reshape(1, w.shape[1]).astype(jnp.float32))
             for w, b in params["mlp"][1:]]
    n_extra = len(extra)

    # --- per-task head, zero-padded to a full 128-lane output tile -----------
    n_tasks, head_in, _ = params["out_w"].shape
    head_pad = ((action_dim + LANE - 1) // LANE) * LANE
    wh = jnp.zeros((n_tasks, head_in, head_pad), jnp.float32)
    wh = wh.at[:, :, :action_dim].set(params["out_w"]).astype(jnp.bfloat16)
    bh = jnp.zeros((n_tasks, 1, head_pad), jnp.float32)
    bh = bh.at[:, 0, :action_dim].set(params["out_b"])

    # --- batch tiling ---------------------------------------------------------
    nb = batch                       # rows per grid step (== batch for demo)
    assert batch % nb == 0
    n_tiles = batch // nb
    x_rows = nb * h_in * w_in

    operands = []
    for w, b in zip(conv_w_ops, conv_b_ops):
        operands += [w, b]
    operands += [wm1_p, bm1_r]
    for w, b in extra:
        operands += [w, b]

    # --- BlockSpecs -------------------------------------------------------------
    def pinned(shape):
        nd = len(shape)

        def idx(i, seq_ref):
            del i, seq_ref
            return (0,) * nd

        return pl.BlockSpec(shape, idx)

    in_specs = [pl.BlockSpec((x_rows, c_in), lambda i, seq_ref: (i, 0))]
    in_specs += [pinned(tuple(op.shape)) for op in operands]
    # head weight / bias blocks are chosen by the scalar-prefetched seq_idx
    in_specs.append(pl.BlockSpec((1, head_in, head_pad),
                                 lambda i, seq_ref: (seq_ref[0], 0, 0)))
    in_specs.append(pl.BlockSpec((1, 1, head_pad),
                                 lambda i, seq_ref: (seq_ref[0], 0, 0)))
    out_spec = pl.BlockSpec((nb, head_pad), lambda i, seq_ref: (i, 0))

    # --- VMEM scratch: per conv layer an im2col buffer + layer output,
    #     plus the flattened row.  All tiny (<< v7x's 64 MiB VMEM). ------------
    scratch_shapes = []
    for (k, s, cin, ih, iw, cout, oh, ow) in conv_dims:
        scratch_shapes.append(pltpu.VMEM((nb * oh * ow, k * k * cin), jnp.float32))
        scratch_shapes.append(pltpu.VMEM((nb * oh * ow, cout), jnp.float32))
    scratch_shapes.append(pltpu.VMEM((nb, flat_dim), jnp.float32))

    n_in = len(in_specs)

    # --- the fused kernel -------------------------------------------------------
    def kernel(seq_ref, *refs):
        del seq_ref                   # head selection happens in the index_map
        x_ref = refs[0]
        pos = 1
        conv_w_refs, conv_b_refs = [], []
        for _ in range(n_conv):
            conv_w_refs.append(refs[pos]); conv_b_refs.append(refs[pos + 1]); pos += 2
        wm1_ref, bm1_ref = refs[pos], refs[pos + 1]; pos += 2
        mlp_refs = []
        for _ in range(n_extra):
            mlp_refs.append((refs[pos], refs[pos + 1])); pos += 2
        wh_ref, bh_ref = refs[pos], refs[pos + 1]; pos += 2
        o_ref = refs[pos]; pos += 1
        scratch = refs[pos:]

        def mm(a, w_ref):
            # weights DMA'd as bf16; up-cast at the dot input, f32 accumulate.
            return jnp.dot(a, w_ref[...].astype(jnp.float32),
                           preferred_element_type=jnp.float32)

        # ---- conv trunk: in-kernel im2col (VMEM slice copies) + one MXU matmul
        src_ref = x_ref               # rows = (b, i, j), cols = channels
        for l, (k, s, cin, ih, iw, cout, oh, ow) in enumerate(conv_dims):
            col_ref = scratch[2 * l]
            out_l_ref = scratch[2 * l + 1]
            for b in range(nb):
                for oi in range(oh):
                    dst = (b * oh + oi) * ow
                    for di in range(k):
                        src0 = (b * ih + oi * s + di) * iw
                        for dj in range(k):
                            t = di * k + dj
                            rows = (pl.ds(src0 + dj, ow, stride=s) if s > 1
                                    else pl.ds(src0 + dj, ow))
                            col_ref[pl.ds(dst, ow), pl.ds(t * cin, cin)] = \
                                src_ref[rows, :]
            y = mm(col_ref[...], conv_w_refs[l]) + conv_b_refs[l][...]
            out_l_ref[...] = jnp.maximum(y, 0.0)
            src_ref = out_l_ref
        # ---- torch NCHW .view(N,-1) flatten (weight was pre-permuted host-side)
        flat_ref = scratch[2 * n_conv]
        for p in range(npos):
            rows = pl.ds(p, nb, stride=npos) if npos > 1 else pl.ds(p, nb)
            flat_ref[pl.ds(0, nb), pl.ds(p * c_last, c_last)] = src_ref[rows, :]

        # ---- MLP hidden layers (single matmuls, K = flat_dim / hidden)
        act = jnp.maximum(mm(flat_ref[...], wm1_ref) + bm1_ref[...], 0.0)
        for w_ref, b_ref in mlp_refs:
            act = jnp.maximum(mm(act, w_ref) + b_ref[...], 0.0)

        # ---- task-specific linear head; 128-lane padded output tile
        head_w = wh_ref[0].astype(jnp.float32)
        o_ref[...] = (jnp.dot(act, head_w, preferred_element_type=jnp.float32)
                      + bh_ref[0]).astype(o_ref.dtype)

    # --- cost estimate: real conv/MLP FLOPs + bytes (no gather inflation) -----
    flops = 0
    for (k, s, cin, ih, iw, cout, oh, ow) in conv_dims:
        flops += 2 * batch * oh * ow * (k * k * cin) * cout
    flops += 2 * batch * flat_dim * hid1
    d = hid1
    for w, _ in extra:
        flops += 2 * batch * d * w.shape[1]
        d = w.shape[1]
    flops += 2 * batch * head_in * head_pad

    bytes_accessed = batch * h_in * w_in * c_in * 4                     # input
    bytes_accessed += sum(int(np.prod(op.shape)) * op.dtype.itemsize
                          for op in operands)                           # weights
    bytes_accessed += head_in * head_pad * 2 + head_pad * 4             # head blk
    bytes_accessed += batch * head_pad * 4                              # output

    fused = pl.pallas_call(
        kernel,
        out_shape=jax.ShapeDtypeStruct((batch, head_pad), jnp.float32),
        grid_spec=pltpu.PrefetchScalarGridSpec(
            num_scalar_prefetch=1,
            grid=(n_tiles,),
            in_specs=in_specs,
            out_specs=out_spec,
            scratch_shapes=scratch_shapes,
        ),
        compiler_params=pltpu.CompilerParams(
            dimension_semantics=("parallel",),       # batch tiles split over TCs
            vmem_limit_bytes=32 * 1024 * 1024,       # actual usage ~1-2 MiB
        ),
        cost_estimate=pl.CostEstimate(flops=int(flops), transcendentals=0,
                                      bytes_accessed=int(bytes_accessed)),
    )

    @jax.jit
    def _run(observations, seq, ops, wh_, bh_):
        x = observations.reshape(-1, c_in, h_in, w_in).astype(jnp.float32)
        assert x.shape[0] == batch, "kernel constants are specialized to this batch"
        # One small layout op (8 KiB here): NCHW -> rows=(n,h,w), cols=channels.
        x_mat = jnp.transpose(x, (0, 2, 3, 1)).reshape(batch * h_in * w_in, c_in)
        q_pad = fused(seq, x_mat, *ops, wh_, bh_)
        return q_pad[:, :action_dim]

    ops_tuple = tuple(operands)

    def forward(observations, seq_idx):
        seq = jnp.asarray(seq_idx, jnp.int32).reshape((1,))
        return _run(observations, seq, ops_tuple, wh, bh)

    return forward


# ----------------------------------------------------------------------------
# Pure-JAX reference (uses the same bf16-rounded weights the kernel DMAs)
# ----------------------------------------------------------------------------
def _reference_forward(params, observations, seq_idx, obs_shape):
    def rw(w):
        return w.astype(jnp.bfloat16).astype(jnp.float32)

    x = observations.reshape(-1, *obs_shape).astype(jnp.float32)
    n = x.shape[0]
    for wgt, b, stride in params["conv"]:
        y = jax.lax.conv_general_dilated(
            x, rw(wgt), window_strides=(stride, stride), padding="VALID",
            dimension_numbers=("NCHW", "OIHW", "NCHW"))
        x = jax.nn.relu(y + b[None, :, None, None])
    x = x.reshape(n, -1)
    for wgt, b in params["mlp"]:
        x = jax.nn.relu(x @ rw(wgt) + b)
    return x @ rw(params["out_w"][seq_idx]) + params["out_b"][seq_idx]


if __name__ == "__main__":
    # Small, module-consistent configuration.
    obs_shape = (4, 16, 16)            # (C, H, W), NCHW
    action_dim = 6                     # |discrete action space|
    n_tasks = 3
    kernel_sizes = (3, 3)
    strides = (2, 2)
    hidden_channels = (8, 16)
    hidden_sizes = (32, 32)
    batch = 2
    seq_idx = 1

    key = jax.random.PRNGKey(0)
    key, pkey, xkey = jax.random.split(key, 3)

    params, flat_dim = init_params(
        pkey, obs_shape, action_dim, n_tasks,
        kernel_sizes, strides, hidden_channels, hidden_sizes)

    observations = jax.random.normal(
        xkey, (batch,) + obs_shape, dtype=jnp.float32)

    forward = build_forward(params, obs_shape, batch, action_dim)
    q = forward(observations, seq_idx)
    q = jax.block_until_ready(q)
    assert q.shape == (batch, action_dim), q.shape

    q_ref = _reference_forward(params, observations, seq_idx, obs_shape)
    assert jnp.allclose(q, q_ref, atol=1e-3, rtol=1e-3), (q, q_ref)

    print("KERNEL_OK")
</pallas_src>

<mosaic_0001>
module attributes {stable_mosaic.version = 11 : i64} {
  func.func @kernel(%arg0: i32, %arg1: memref<1xi32, #tpu.memory_space<smem>>, %arg2: memref<512x4xf32, #tpu.memory_space<vmem>>, %arg3: memref<36x8xbf16, #tpu.memory_space<vmem>>, %arg4: memref<1x8xf32, #tpu.memory_space<vmem>>, %arg5: memref<72x16xbf16, #tpu.memory_space<vmem>>, %arg6: memref<1x16xf32, #tpu.memory_space<vmem>>, %arg7: memref<144x32xbf16, #tpu.memory_space<vmem>>, %arg8: memref<1x32xf32, #tpu.memory_space<vmem>>, %arg9: memref<32x32xbf16, #tpu.memory_space<vmem>>, %arg10: memref<1x32xf32, #tpu.memory_space<vmem>>, %arg11: memref<1x32x128xbf16, #tpu.memory_space<vmem>>, %arg12: memref<1x1x128xf32, #tpu.memory_space<vmem>>, %arg13: memref<2x128xf32, #tpu.memory_space<vmem>>, %arg14: memref<98x36xf32, #tpu.memory_space<vmem>>, %arg15: memref<98x8xf32, #tpu.memory_space<vmem>>, %arg16: memref<18x72xf32, #tpu.memory_space<vmem>>, %arg17: memref<18x16xf32, #tpu.memory_space<vmem>>, %arg18: memref<2x144xf32, #tpu.memory_space<vmem>>) attributes {dimension_semantics = [#tpu.dimension_semantics<parallel>], iteration_bounds = array<i64: 1>, scalar_prefetch = 1 : i64, scratch_operands = 5 : i64, tpu.core_type = #tpu.core_type<tc>, window_params = [{transform_indices = @transform_0, window_bounds = array<i64: 512, 4>}, {pipeline_mode = #tpu.pipeline_mode<synchronous>, transform_indices = @transform_1, window_bounds = array<i64: 36, 8>}, {pipeline_mode = #tpu.pipeline_mode<synchronous>, transform_indices = @transform_2, window_bounds = array<i64: 1, 8>}, {pipeline_mode = #tpu.pipeline_mode<synchronous>, transform_indices = @transform_3, window_bounds = array<i64: 72, 16>}, {pipeline_mode = #tpu.pipeline_mode<synchronous>, transform_indices = @transform_4, window_bounds = array<i64: 1, 16>}, {pipeline_mode = #tpu.pipeline_mode<synchronous>, transform_indices = @transform_5, window_bounds = array<i64: 144, 32>}, {pipeline_mode = #tpu.pipeline_mode<synchronous>, transform_indices = @transform_6, window_bounds = array<i64: 1, 32>}, {pipeline_mode = #tpu.pipeline_mode<synchronous>, transform_indices = @transform_7, window_bounds = array<i64: 32, 32>}, {pipeline_mode = #tpu.pipeline_mode<synchronous>, transform_indices = @transform_8, window_bounds = array<i64: 1, 32>}, {transform_indices = @transform_9, window_bounds = array<i64: 1, 32, 128>}, {transform_indices = @transform_10, window_bounds = array<i64: 1, 1, 128>}, {transform_indices = @transform_11, window_bounds = array<i64: 2, 128>}]} {
    %c0 = arith.constant 0 : index
    %c0_0 = arith.constant 0 : index
    %0 = tpu.strided_load %arg2[%c0, %c0_0] {strides = array<i32: 2, 1>} : memref<512x4xf32, #tpu.memory_space<vmem>>, vector<7x4xf32>
    %c0_1 = arith.constant 0 : index
    %c0_2 = arith.constant 0 : index
    %1 = vector.load %arg14[%c0_1, %c0_2] : memref<98x36xf32, #tpu.memory_space<vmem>>, vector<7x4xf32>
    tpu.vector_store %arg14[%c0_1, %c0_2], %0 {strides = array<i32>} : memref<98x36xf32, #tpu.memory_space<vmem>>, vector<7x4xf32>,
    %c1 = arith.constant 1 : index
    %c0_3 = arith.constant 0 : index
    %2 = tpu.strided_load %arg2[%c1, %c0_3] {strides = array<i32: 2, 1>} : memref<512x4xf32, #tpu.memory_space<vmem>>, vector<7x4xf32>
    %c0_4 = arith.constant 0 : index
    %c4 = arith.constant 4 : index
    %3 = vector.load %arg14[%c0_4, %c4] : memref<98x36xf32, #tpu.memory_space<vmem>>, vector<7x4xf32>
    tpu.vector_store %arg14[%c0_4, %c4], %2 {strides = array<i32>} : memref<98x36xf32, #tpu.memory_space<vmem>>, vector<7x4xf32>,
    %c2 = arith.constant 2 : index
    %c0_5 = arith.constant 0 : index
    %4 = tpu.strided_load %arg2[%c2, %c0_5] {strides = array<i32: 2, 1>} : memref<512x4xf32, #tpu.memory_space<vmem>>, vector<7x4xf32>
    %c0_6 = arith.constant 0 : index
    %c8 = arith.constant 8 : index
    %5 = vector.load %arg14[%c0_6, %c8] : memref<98x36xf32, #tpu.memory_space<vmem>>, vector<7x4xf32>
    tpu.vector_store %arg14[%c0_6, %c8], %4 {strides = array<i32>} : memref<98x36xf32, #tpu.memory_space<vmem>>, vector<7x4xf32>,
    %c16 = arith.constant 16 : index
    %c0_7 = arith.constant 0 : index
    %6 = tpu.strided_load %arg2[%c16, %c0_7] {strides = array<i32: 2, 1>} : memref<512x4xf32, #tpu.memory_space<vmem>>, vector<7x4xf32>
    %c0_8 = arith.constant 0 : index
    %c12 = arith.constant 12 : index
    %7 = vector.load %arg14[%c0_8, %c12] : memref<98x36xf32, #tpu.memory_space<vmem>>, vector<7x4xf32>
    tpu.vector_store %arg14[%c0_8, %c12], %6 {strides = array<i32>} : memref<98x36xf32, #tpu.memory_space<vmem>>, vector<7x4xf32>,
    %c17 = arith.constant 17 : index
    %c0_9 = arith.constant 0 : index
    %8 = tpu.strided_load %arg2[%c17, %c0_9] {strides = array<i32: 2, 1>} : memref<512x4xf32, #tpu.memory_space<vmem>>, vector<7x4xf32>
    %c0_10 = arith.constant 0 : index
    %c16_11 = arith.constant 16 : index
    %9 = vector.load %arg14[%c0_10, %c16_11] : memref<98x36xf32, #tpu.memory_space<vmem>>, vector<7x4xf32>
    tpu.vector_store %arg14[%c0_10, %c16_11], %8 {strides = array<i32>} : memref<98x36xf32, #tpu.memory_space<vmem>>, vector<7x4xf32>,
    %c18 = arith.constant 18 : index
    %c0_12 = arith.constant 0 : index
    %10 = tpu.strided_load %arg2[%c18, %c0_12] {strides = array<i32: 2, 1>} : memref<512x4xf32, #tpu.memory_space<vmem>>, vector<7x4xf32>
    %c0_13 = arith.constant 0 : index
    %c20 = arith.constant 20 : index
    %11 = vector.load %arg14[%c0_13, %c20] : memref<98x36xf32, #tpu.memory_space<vmem>>, vector<7x4xf32>
    tpu.vector_store %arg14[%c0_13, %c20], %10 {strides = array<i32>} : memref<98x36xf32, #tpu.memory_space<vmem>>, vector<7x4xf32>,
    %c32 = arith.constant 32 : index
    %c0_14 = arith.constant 0 : index
    %12 = tpu.strided_load %arg2[%c32, %c0_14] {strides = array<i32: 2, 1>} : memref<512x4xf32, #tpu.memory_space<vmem>>, vector<7x4xf32>
    %c0_15 = arith.constant 0 : index
    %c24 = arith.constant 24 : index
    %13 = vector.load %arg14[%c0_15, %c24] : memref<98x36xf32, #tpu.memory_space<vmem>>, vector<7x4xf32>
    tpu.vector_store %arg14[%c0_15, %c24], %12 {strides = array<i32>} : memref<98x36xf32, #tpu.memory_space<vmem>>, vector<7x4xf32>,
    %c33 = arith.constant 33 : index
    %c0_16 = arith.constant 0 : index
    %14 = tpu.strided_load %arg2[%c33, %c0_16] {strides = array<i32: 2, 1>} : memref<512x4xf32, #tpu.memory_space<vmem>>, vector<7x4xf32>
    %c0_17 = arith.constant 0 : index
    %c28 = arith.constant 28 : index
    %15 = vector.load %arg14[%c0_17, %c28] : memref<98x36xf32, #tpu.memory_space<vmem>>, vector<7x4xf32>
    tpu.vector_store %arg14[%c0_17, %c28], %14 {strides = array<i32>} : memref<98x36xf32, #tpu.memory_space<vmem>>, vector<7x4xf32>,
    %c34 = arith.constant 34 : index
    %c0_18 = arith.constant 0 : index
    %16 = tpu.strided_load %arg2[%c34, %c0_18] {strides = array<i32: 2, 1>} : memref<512x4xf32, #tpu.memory_space<vmem>>, vector<7x4xf32>
    %c0_19 = arith.constant 0 : index
    %c32_20 = arith.constant 32 : index
    %17 = vector.load %arg14[%c0_19, %c32_20] : memref<98x36xf32, #tpu.memory_space<vmem>>, vector<7x4xf32>
    tpu.vector_store %arg14[%c0_19, %c32_20], %16 {strides = array<i32>} : memref<98x36xf32, #tpu.memory_space<vmem>>, vector<7x4xf32>,
    %c32_21 = arith.constant 32 : index
    %c0_22 = arith.constant 0 : index
    %18 = tpu.strided_load %arg2[%c32_21, %c0_22] {strides = array<i32: 2, 1>} : memref<512x4xf32, #tpu.memory_space<vmem>>, vector<7x4xf32>
    %c7 = arith.constant 7 : index
    %c0_23 = arith.constant 0 : index
    %19 = vector.load %arg14[%c7, %c0_23] : memref<98x36xf32, #tpu.memory_space<vmem>>, vector<7x4xf32>
    tpu.vector_store %arg14[%c7, %c0_23], %18 {strides = array<i32>} : memref<98x36xf32, #tpu.memory_space<vmem>>, vector<7x4xf32>,
    %c33_24 = arith.constant 33 : index
    %c0_25 = arith.constant 0 : index
    %20 = tpu.strided_load %arg2[%c33_24, %c0_25] {strides = array<i32: 2, 1>} : memref<512x4xf32, #tpu.memory_space<vmem>>, vector<7x4xf32>
    %c7_26 = arith.constant 7 : index
    %c4_27 = arith.constant 4 : index
    %21 = vector.load %arg14[%c7_26, %c4_27] : memref<98x36xf32, #tpu.memory_space<vmem>>, vector<7x4xf32>
    tpu.vector_store %arg14[%c7_26, %c4_27], %20 {strides = array<i32>} : memref<98x36xf32, #tpu.memory_space<vmem>>, vector<7x4xf32>,
    %c34_28 = arith.constant 34 : index
    %c0_29 = arith.constant 0 : index
    %22 = tpu.strided_load %arg2[%c34_28, %c0_29] {strides = array<i32: 2, 1>} : memref<512x4xf32, #tpu.memory_space<vmem>>, vector<7x4xf32>
    %c7_30 = arith.constant 7 : index
    %c8_31 = arith.constant 8 : index
    %23 = vector.load %arg14[%c7_30, %c8_31] : memref<98x36xf32, #tpu.memory_space<vmem>>, vector<7x4xf32>
    tpu.vector_store %arg14[%c7_30, %c8_31], %22 {strides = array<i32>} : memref<98x36xf32, #tpu.memory_space<vmem>>, vector<7x4xf32>,
    %c48 = arith.constant 48 : index
    %c0_32 = arith.constant 0 : index
    %24 = tpu.strided_load %arg2[%c48, %c0_32] {strides = array<i32: 2, 1>} : memref<512x4xf32, #tpu.memory_space<vmem>>, vector<7x4xf32>
    %c7_33 = arith.constant 7 : index
    %c12_34 = arith.constant 12 : index
    %25 = vector.load %arg14[%c7_33, %c12_34] : memref<98x36xf32, #tpu.memory_space<vmem>>, vector<7x4xf32>
    tpu.vector_store %arg14[%c7_33, %c12_34], %24 {strides = array<i32>} : memref<98x36xf32, #tpu.memory_space<vmem>>, vector<7x4xf32>,
    %c49 = arith.constant 49 : index
    %c0_35 = arith.constant 0 : index
    %26 = tpu.strided_load %arg2[%c49, %c0_35] {strides = array<i32: 2, 1>} : memref<512x4xf32, #tpu.memory_space<vmem>>, vector<7x4xf32>
    %c7_36 = arith.constant 7 : index
    %c16_37 = arith.constant 16 : index
    %27 = vector.load %arg14[%c7_36, %c16_37] : memref<98x36xf32, #tpu.memory_space<vmem>>, vector<7x4xf32>
    tpu.vector_store %arg14[%c7_36, %c16_37], %26 {strides = array<i32>} : memref<98x36xf32, #tpu.memory_space<vmem>>, vector<7x4xf32>,
    %c50 = arith.constant 50 : index
    %c0_38 = arith.constant 0 : index
    %28 = tpu.strided_load %arg2[%c50, %c0_38] {strides = array<i32: 2, 1>} : memref<512x4xf32, #tpu.memory_space<vmem>>, vector<7x4xf32>
    %c7_39 = arith.constant 7 : index
    %c20_40 = arith.constant 20 : index
    %29 = vector.load %arg14[%c7_39, %c20_40] : memref<98x36xf32, #tpu.memory_space<vmem>>, vector<7x4xf32>
    tpu.vector_store %arg14[%c7_39, %c20_40], %28 {strides = array<i32>} : memref<98x36xf32, #tpu.memory_space<vmem>>, vector<7x4xf32>,
    %c64 = arith.constant 64 : index
    %c0_41 = arith.constant 0 : index
    %30 = tpu.strided_load %arg2[%c64, %c0_41] {strides = array<i32: 2, 1>} : memref<512x4xf32, #tpu.memory_space<vmem>>, vector<7x4xf32>
    %c7_42 = arith.constant 7 : index
    %c24_43 = arith.constant 24 : index
    %31 = vector.load %arg14[%c7_42, %c24_43] : memref<98x36xf32, #tpu.memory_space<vmem>>, vector<7x4xf32>
    tpu.vector_store %arg14[%c7_42, %c24_43], %30 {strides = array<i32>} : memref<98x36xf32, #tpu.memory_space<vmem>>, vector<7x4xf32>,
    %c65 = arith.constant 65 : index
    %c0_44 = arith.constant 0 : index
    %32 = tpu.strided_load %arg2[%c65, %c0_44] {strides = array<i32: 2, 1>} : memref<512x4xf32, #tpu.memory_space<vmem>>, vector<7x4xf32>
    %c7_45 = arith.constant 7 : index
    %c28_46 = arith.constant 28 : index
    %33 = vector.load %arg14[%c7_45, %c28_46] : memref<98x36xf32, #tpu.memory_space<vmem>>, vector<7x4xf32>
    tpu.vector_store %arg14[%c7_45, %c28_46], %32 {strides = array<i32>} : memref<98x36xf32, #tpu.memory_space<vmem>>, vector<7x4xf32>,
    %c66 = arith.constant 66 : index
    %c0_47 = arith.constant 0 : index
    %34 = tpu.strided_load %arg2[%c66, %c0_47] {strides = array<i32: 2, 1>} : memref<512x4xf32, #tpu.memory_space<vmem>>, vector<7x4xf32>
    %c7_48 = arith.constant 7 : index
    %c32_49 = arith.constant 32 : index
    %35 = vector.load %arg14[%c7_48, %c32_49] : memref<98x36xf32, #tpu.memory_space<vmem>>, vector<7x4xf32>
    tpu.vector_store %arg14[%c7_48, %c32_49], %34 {strides = array<i32>} : memref<98x36xf32, #tpu.memory_space<vmem>>, vector<7x4xf32>,
    %c64_50 = arith.constant 64 : index
    %c0_51 = arith.constant 0 : index
    %36 = tpu.strided_load %arg2[%c64_50, %c0_51] {strides = array<i32: 2, 1>} : memref<512x4xf32, #tpu.memory_space<vmem>>, vector<7x4xf32>
    %c14 = arith.constant 14 : index
    %c0_52 = arith.constant 0 : index
    %37 = vector.load %arg14[%c14, %c0_52] : memref<98x36xf32, #tpu.memory_space<vmem>>, vector<7x4xf32>
    tpu.vector_store %arg14[%c14, %c0_52], %36 {strides = array<i32>} : memref<98x36xf32, #tpu.memory_space<vmem>>, vector<7x4xf32>,
    %c65_53 = arith.constant 65 : index
    %c0_54 = arith.constant 0 : index
    %38 = tpu.strided_load %arg2[%c65_53, %c0_54] {strides = array<i32: 2, 1>} : memref<512x4xf32, #tpu.memory_space<vmem>>, vector<7x4xf32>
    %c14_55 = arith.constant 14 : index
    %c4_56 = arith.constant 4 : index
    %39 = vector.load %arg14[%c14_55, %c4_56] : memref<98x36xf32, #tpu.memory_space<vmem>>, vector<7x4xf32>
    tpu.vector_store %arg14[%c14_55, %c4_56], %38 {strides = array<i32>} : memref<98x36xf32, #tpu.memory_space<vmem>>, vector<7x4xf32>,
    %c66_57 = arith.constant 66 : index
    %c0_58 = arith.constant 0 : index
    %40 = tpu.strided_load %arg2[%c66_57, %c0_58] {strides = array<i32: 2, 1>} : memref<512x4xf32, #tpu.memory_space<vmem>>, vector<7x4xf32>
    %c14_59 = arith.constant 14 : index
    %c8_60 = arith.constant 8 : index
    %41 = vector.load %arg14[%c14_59, %c8_60] : memref<98x36xf32, #tpu.memory_space<vmem>>, vector<7x4xf32>
    tpu.vector_store %arg14[%c14_59, %c8_60], %40 {strides = array<i32>} : memref<98x36xf32, #tpu.memory_space<vmem>>, vector<7x4xf32>,
    %c80 = arith.constant 80 : index
    %c0_61 = arith.constant 0 : index
    %42 = tpu.strided_load %arg2[%c80, %c0_61] {strides = array<i32: 2, 1>} : memref<512x4xf32, #tpu.memory_space<vmem>>, vector<7x4xf32>
    %c14_62 = arith.constant 14 : index
    %c12_63 = arith.constant 12 : index
    %43 = vector.load %arg14[%c14_62, %c12_63] : memref<98x36xf32, #tpu.memory_space<vmem>>, vector<7x4xf32>
    tpu.vector_store %arg14[%c14_62, %c12_63], %42 {strides = array<i32>} : memref<98x36xf32, #tpu.memory_space<vmem>>, vector<7x4xf32>,
    %c81 = arith.constant 81 : index
    %c0_64 = arith.constant 0 : index
    %44 = tpu.strided_load %arg2[%c81, %c0_64] {strides = array<i32: 2, 1>} : memref<512x4xf32, #tpu.memory_space<vmem>>, vector<7x4xf32>
    %c14_65 = arith.constant 14 : index
    %c16_66 = arith.constant 16 : index
    %45 = vector.load %arg14[%c14_65, %c16_66] : memref<98x36xf32, #tpu.memory_space<vmem>>, vector<7x4xf32>
    tpu.vector_store %arg14[%c14_65, %c16_66], %44 {strides = array<i32>} : memref<98x36xf32, #tpu.memory_space<vmem>>, vector<7x4xf32>,
    %c82 = arith.constant 82 : index
    %c0_67 = arith.constant 0 : index
    %46 = tpu.strided_load %arg2[%c82, %c0_67] {strides = array<i32: 2, 1>} : memref<512x4xf32, #tpu.memory_space<vmem>>, vector<7x4xf32>
    %c14_68 = arith.constant 14 : index
    %c20_69 = arith.constant 20 : index
    %47 = vector.load %arg14[%c14_68, %c20_69] : memref<98x36xf32, #tpu.memory_space<vmem>>, vector<7x4xf32>
    tpu.vector_store %arg14[%c14_68, %c20_69], %46 {strides = array<i32>} : memref<98x36xf32, #tpu.memory_space<vmem>>, vector<7x4xf32>,
    %c96 = arith.constant 96 : index
    %c0_70 = arith.constant 0 : index
    %48 = tpu.strided_load %arg2[%c96, %c0_70] {strides = array<i32: 2, 1>} : memref<512x4xf32, #tpu.memory_space<vmem>>, vector<7x4xf32>
    %c14_71 = arith.constant 14 : index
    %c24_72 = arith.constant 24 : index
    %49 = vector.load %arg14[%c14_71, %c24_72] : memref<98x36xf32, #tpu.memory_space<vmem>>, vector<7x4xf32>
    tpu.vector_store %arg14[%c14_71, %c24_72], %48 {strides = array<i32>} : memref<98x36xf32, #tpu.memory_space<vmem>>, vector<7x4xf32>,
    %c97 = arith.constant 97 : index
    %c0_73 = arith.constant 0 : index
    %50 = tpu.strided_load %arg2[%c97, %c0_73] {strides = array<i32: 2, 1>} : memref<512x4xf32, #tpu.memory_space<vmem>>, vector<7x4xf32>
    %c14_74 = arith.constant 14 : index
    %c28_75 = arith.constant 28 : index
    %51 = vector.load %arg14[%c14_74, %c28_75] : memref<98x36xf32, #tpu.memory_space<vmem>>, vector<7x4xf32>
    tpu.vector_store %arg14[%c14_74, %c28_75], %50 {strides = array<i32>} : memref<98x36xf32, #tpu.memory_space<vmem>>, vector<7x4xf32>,
    %c98 = arith.constant 98 : index
    %c0_76 = arith.constant 0 : index
    %52 = tpu.strided_load %arg2[%c98, %c0_76] {strides = array<i32: 2, 1>} : memref<512x4xf32, #tpu.memory_space<vmem>>, vector<7x4xf32>
    %c14_77 = arith.constant 14 : index
    %c32_78 = arith.constant 32 : index
    %53 = vector.load %arg14[%c14_77, %c32_78] : memref<98x36xf32, #tpu.memory_space<vmem>>, vector<7x4xf32>
    tpu.vector_store %arg14[%c14_77, %c32_78], %52 {strides = array<i32>} : memref<98x36xf32, #tpu.memory_space<vmem>>, vector<7x4xf32>,
    %c96_79 = arith.constant 96 : index
    %c0_80 = arith.constant 0 : index
    %54 = tpu.strided_load %arg2[%c96_79, %c0_80] {strides = array<i32: 2, 1>} : memref<512x4xf32, #tpu.memory_space<vmem>>, vector<7x4xf32>
    %c21 = arith.constant 21 : index
    %c0_81 = arith.constant 0 : index
    %55 = vector.load %arg14[%c21, %c0_81] : memref<98x36xf32, #tpu.memory_space<vmem>>, vector<7x4xf32>
    tpu.vector_store %arg14[%c21, %c0_81], %54 {strides = array<i32>} : memref<98x36xf32, #tpu.memory_space<vmem>>, vector<7x4xf32>,
    %c97_82 = arith.constant 97 : index
    %c0_83 = arith.constant 0 : index
    %56 = tpu.strided_load %arg2[%c97_82, %c0_83] {strides = array<i32: 2, 1>} : memref<512x4xf32, #tpu.memory_space<vmem>>, vector<7x4xf32>
    %c21_84 = arith.constant 21 : index
    %c4_85 = arith.constant 4 : index
    %57 = vector.load %arg14[%c21_84, %c4_85] : memref<98x36xf32, #tpu.memory_space<vmem>>, vector<7x4xf32>
    tpu.vector_store %arg14[%c21_84, %c4_85], %56 {strides = array<i32>} : memref<98x36xf32, #tpu.memory_space<vmem>>, vector<7x4xf32>,
    %c98_86 = arith.constant 98 : index
    %c0_87 = arith.constant 0 : index
    %58 = tpu.strided_load %arg2[%c98_86, %c0_87] {strides = array<i32: 2, 1>} : memref<512x4xf32, #tpu.memory_space<vmem>>, vector<7x4xf32>
    %c21_88 = arith.constant 21 : index
    %c8_89 = arith.constant 8 : index
    %59 = vector.load %arg14[%c21_88, %c8_89] : memref<98x36xf32, #tpu.memory_space<vmem>>, vector<7x4xf32>
    tpu.vector_store %arg14[%c21_88, %c8_89], %58 {strides = array<i32>} : memref<98x36xf32, #tpu.memory_space<vmem>>, vector<7x4xf32>,
    %c112 = arith.constant 112 : index
    %c0_90 = arith.constant 0 : index
    %60 = tpu.strided_load %arg2[%c112, %c0_90] {strides = array<i32: 2, 1>} : memref<512x4xf32, #tpu.memory_space<vmem>>, vector<7x4xf32>
    %c21_91 = arith.constant 21 : index
    %c12_92 = arith.constant 12 : index
    %61 = vector.load %arg14[%c21_91, %c12_92] : memref<98x36xf32, #tpu.memory_space<vmem>>, vector<7x4xf32>
    tpu.vector_store %arg14[%c21_91, %c12_92], %60 {strides = array<i32>} : memref<98x36xf32, #tpu.memory_space<vmem>>, vector<7x4xf32>,
    %c113 = arith.constant 113 : index
    %c0_93 = arith.constant 0 : index
    %62 = tpu.strided_load %arg2[%c113, %c0_93] {strides = array<i32: 2, 1>} : memref<512x4xf32, #tpu.memory_space<vmem>>, vector<7x4xf32>
    %c21_94 = arith.constant 21 : index
    %c16_95 = arith.constant 16 : index
    %63 = vector.load %arg14[%c21_94, %c16_95] : memref<98x36xf32, #tpu.memory_space<vmem>>, vector<7x4xf32>
    tpu.vector_store %arg14[%c21_94, %c16_95], %62 {strides = array<i32>} : memref<98x36xf32, #tpu.memory_space<vmem>>, vector<7x4xf32>,
    %c114 = arith.constant 114 : index
    %c0_96 = arith.constant 0 : index
    %64 = tpu.strided_load %arg2[%c114, %c0_96] {strides = array<i32: 2, 1>} : memref<512x4xf32, #tpu.memory_space<vmem>>, vector<7x4xf32>
    %c21_97 = arith.constant 21 : index
    %c20_98 = arith.constant 20 : index
    %65 = vector.load %arg14[%c21_97, %c20_98] : memref<98x36xf32, #tpu.memory_space<vmem>>, vector<7x4xf32>
    tpu.vector_store %arg14[%c21_97, %c20_98], %64 {strides = array<i32>} : memref<98x36xf32, #tpu.memory_space<vmem>>, vector<7x4xf32>,
    %c128 = arith.constant 128 : index
    %c0_99 = arith.constant 0 : index
    %66 = tpu.strided_load %arg2[%c128, %c0_99] {strides = array<i32: 2, 1>} : memref<512x4xf32, #tpu.memory_space<vmem>>, vector<7x4xf32>
    %c21_100 = arith.constant 21 : index
    %c24_101 = arith.constant 24 : index
    %67 = vector.load %arg14[%c21_100, %c24_101] : memref<98x36xf32, #tpu.memory_space<vmem>>, vector<7x4xf32>
    tpu.vector_store %arg14[%c21_100, %c24_101], %66 {strides = array<i32>} : memref<98x36xf32, #tpu.memory_space<vmem>>, vector<7x4xf32>,
    %c129 = arith.constant 129 : index
    %c0_102 = arith.constant 0 : index
    %68 = tpu.strided_load %arg2[%c129, %c0_102] {strides = array<i32: 2, 1>} : memref<512x4xf32, #tpu.memory_space<vmem>>, vector<7x4xf32>
    %c21_103 = arith.constant 21 : index
    %c28_104 = arith.constant 28 : index
    %69 = vector.load %arg14[%c21_103, %c28_104] : memref<98x36xf32, #tpu.memory_space<vmem>>, vector<7x4xf32>
    tpu.vector_store %arg14[%c21_103, %c28_104], %68 {strides = array<i32>} : memref<98x36xf32, #tpu.memory_space<vmem>>, vector<7x4xf32>,
    %c130 = arith.constant 130 : index
    %c0_105 = arith.constant 0 : index
    %70 = tpu.strided_load %arg2[%c130, %c0_105] {strides = array<i32: 2, 1>} : memref<512x4xf32, #tpu.memory_space<vmem>>, vector<7x4xf32>
    %c21_106 = arith.constant 21 : index
    %c32_107 = arith.constant 32 : index
    %71 = vector.load %arg14[%c21_106, %c32_107] : memref<98x36xf32, #tpu.memory_space<vmem>>, vector<7x4xf32>
    tpu.vector_store %arg14[%c21_106, %c32_107], %70 {strides = array<i32>} : memref<98x36xf32, #tpu.memory_space<vmem>>, vector<7x4xf32>,
    %c128_108 = arith.constant 128 : index
    %c0_109 = arith.constant 0 : index
    %72 = tpu.strided_load %arg2[%c128_108, %c0_109] {strides = array<i32: 2, 1>} : memref<512x4xf32, #tpu.memory_space<vmem>>, vector<7x4xf32>
    %c28_110 = arith.constant 28 : index
    %c0_111 = arith.constant 0 : index
    %73 = vector.load %arg14[%c28_110, %c0_111] : memref<98x36xf32, #tpu.memory_space<vmem>>, vector<7x4xf32>
    tpu.vector_store %arg14[%c28_110, %c0_111], %72 {strides = array<i32>} : memref<98x36xf32, #tpu.memory_space<vmem>>, vector<7x4xf32>,
    %c129_112 = arith.constant 129 : index
    %c0_113 = arith.constant 0 : index
    %74 = tpu.strided_load %arg2[%c129_112, %c0_113] {strides = array<i32: 2, 1>} : memref<512x4xf32, #tpu.memory_space<vmem>>, vector<7x4xf32>
    %c28_114 = arith.constant 28 : index
    %c4_115 = arith.constant 4 : index
    %75 = vector.load %arg14[%c28_114, %c4_115] : memref<98x36xf32, #tpu.memory_space<vmem>>, vector<7x4xf32>
    tpu.vector_store %arg14[%c28_114, %c4_115], %74 {strides = array<i32>} : memref<98x36xf32, #tpu.memory_space<vmem>>, vector<7x4xf32>,
    %c130_116 = arith.constant 130 : index
    %c0_117 = arith.constant 0 : index
    %76 = tpu.strided_load %arg2[%c130_116, %c0_117] {strides = array<i32: 2, 1>} : memref<512x4xf32, #tpu.memory_space<vmem>>, vector<7x4xf32>
    %c28_118 = arith.constant 28 : index
    %c8_119 = arith.constant 8 : index
    %77 = vector.load %arg14[%c28_118, %c8_119] : memref<98x36xf32, #tpu.memory_space<vmem>>, vector<7x4xf32>
    tpu.vector_store %arg14[%c28_118, %c8_119], %76 {strides = array<i32>} : memref<98x36xf32, #tpu.memory_space<vmem>>, vector<7x4xf32>,
    %c144 = arith.constant 144 : index
    %c0_120 = arith.constant 0 : index
    %78 = tpu.strided_load %arg2[%c144, %c0_120] {strides = array<i32: 2, 1>} : memref<512x4xf32, #tpu.memory_space<vmem>>, vector<7x4xf32>
    %c28_121 = arith.constant 28 : index
    %c12_122 = arith.constant 12 : index
    %79 = vector.load %arg14[%c28_121, %c12_122] : memref<98x36xf32, #tpu.memory_space<vmem>>, vector<7x4xf32>
    tpu.vector_store %arg14[%c28_121, %c12_122], %78 {strides = array<i32>} : memref<98x36xf32, #tpu.memory_space<vmem>>, vector<7x4xf32>,
    %c145 = arith.constant 145 : index
    %c0_123 = arith.constant 0 : index
    %80 = tpu.strided_load %arg2[%c145, %c0_123] {strides = array<i32: 2, 1>} : memref<512x4xf32, #tpu.memory_space<vmem>>, vector<7x4xf32>
    %c28_124 = arith.constant 28 : index
    %c16_125 = arith.constant 16 : index
    %81 = vector.load %arg14[%c28_124, %c16_125] : memref<98x36xf32, #tpu.memory_space<vmem>>, vector<7x4xf32>
    tpu.vector_store %arg14[%c28_124, %c16_125], %80 {strides = array<i32>} : memref<98x36xf32, #tpu.memory_space<vmem>>, vector<7x4xf32>,
    %c146 = arith.constant 146 : index
    %c0_126 = arith.constant 0 : index
    %82 = tpu.strided_load %arg2[%c146, %c0_126] {strides = array<i32: 2, 1>} : memref<512x4xf32, #tpu.memory_space<vmem>>, vector<7x4xf32>
    %c28_127 = arith.constant 28 : index
    %c20_128 = arith.constant 20 : index
    %83 = vector.load %arg14[%c28_127, %c20_128] : memref<98x36xf32, #tpu.memory_space<vmem>>, vector<7x4xf32>
    tpu.vector_store %arg14[%c28_127, %c20_128], %82 {strides = array<i32>} : memref<98x36xf32, #tpu.memory_space<vmem>>, vector<7x4xf32>,
    %c160 = arith.constant 160 : index
    %c0_129 = arith.constant 0 : index
    %84 = tpu.strided_load %arg2[%c160, %c0_129] {strides = array<i32: 2, 1>} : memref<512x4xf32, #tpu.memory_space<vmem>>, vector<7x4xf32>
    %c28_130 = arith.constant 28 : index
    %c24_131 = arith.constant 24 : index
    %85 = vector.load %arg14[%c28_130, %c24_131] : memref<98x36xf32, #tpu.memory_space<vmem>>, vector<7x4xf32>
    tpu.vector_store %arg14[%c28_130, %c24_131], %84 {strides = array<i32>} : memref<98x36xf32, #tpu.memory_space<vmem>>, vector<7x4xf32>,
    %c161 = arith.constant 161 : index
    %c0_132 = arith.constant 0 : index
    %86 = tpu.strided_load %arg2[%c161, %c0_132] {strides = array<i32: 2, 1>} : memref<512x4xf32, #tpu.memory_space<vmem>>, vector<7x4xf32>
    %c28_133 = arith.constant 28 : index
    %c28_134 = arith.constant 28 : index
    %87 = vector.load %arg14[%c28_133, %c28_134] : memref<98x36xf32, #tpu.memory_space<vmem>>, vector<7x4xf32>
    tpu.vector_store %arg14[%c28_133, %c28_134], %86 {strides = array<i32>} : memref<98x36xf32, #tpu.memory_space<vmem>>, vector<7x4xf32>,
    %c162 = arith.constant 162 : index
    %c0_135 = arith.constant 0 : index
    %88 = tpu.strided_load %arg2[%c162, %c0_135] {strides = array<i32: 2, 1>} : memref<512x4xf32, #tpu.memory_space<vmem>>, vector<7x4xf32>
    %c28_136 = arith.constant 28 : index
    %c32_137 = arith.constant 32 : index
    %89 = vector.load %arg14[%c28_136, %c32_137] : memref<98x36xf32, #tpu.memory_space<vmem>>, vector<7x4xf32>
    tpu.vector_store %arg14[%c28_136, %c32_137], %88 {strides = array<i32>} : memref<98x36xf32, #tpu.memory_space<vmem>>, vector<7x4xf32>,
    %c160_138 = arith.constant 160 : index
    %c0_139 = arith.constant 0 : index
    %90 = tpu.strided_load %arg2[%c160_138, %c0_139] {strides = array<i32: 2, 1>} : memref<512x4xf32, #tpu.memory_space<vmem>>, vector<7x4xf32>
    %c35 = arith.constant 35 : index
    %c0_140 = arith.constant 0 : index
    %91 = vector.load %arg14[%c35, %c0_140] : memref<98x36xf32, #tpu.memory_space<vmem>>, vector<7x4xf32>
    tpu.vector_store %arg14[%c35, %c0_140], %90 {strides = array<i32>} : memref<98x36xf32, #tpu.memory_space<vmem>>, vector<7x4xf32>,
    %c161_141 = arith.constant 161 : index
    %c0_142 = arith.constant 0 : index
    %92 = tpu.strided_load %arg2[%c161_141, %c0_142] {strides = array<i32: 2, 1>} : memref<512x4xf32, #tpu.memory_space<vmem>>, vector<7x4xf32>
    %c35_143 = arith.constant 35 : index
    %c4_144 = arith.constant 4 : index
    %93 = vector.load %arg14[%c35_143, %c4_144] : memref<98x36xf32, #tpu.memory_space<vmem>>, vector<7x4xf32>
    tpu.vector_store %arg14[%c35_143, %c4_144], %92 {strides = array<i32>} : memref<98x36xf32, #tpu.memory_space<vmem>>, vector<7x4xf32>,
    %c162_145 = arith.constant 162 : index
    %c0_146 = arith.constant 0 : index
    %94 = tpu.strided_load %arg2[%c162_145, %c0_146] {strides = array<i32: 2, 1>} : memref<512x4xf32, #tpu.memory_space<vmem>>, vector<7x4xf32>
    %c35_147 = arith.constant 35 : index
    %c8_148 = arith.constant 8 : index
    %95 = vector.load %arg14[%c35_147, %c8_148] : memref<98x36xf32, #tpu.memory_space<vmem>>, vector<7x4xf32>
    tpu.vector_store %arg14[%c35_147, %c8_148], %94 {strides = array<i32>} : memref<98x36xf32, #tpu.memory_space<vmem>>, vector<7x4xf32>,
    %c176 = arith.constant 176 : index
    %c0_149 = arith.constant 0 : index
    %96 = tpu.strided_load %arg2[%c176, %c0_149] {strides = array<i32: 2, 1>} : memref<512x4xf32, #tpu.memory_space<vmem>>, vector<7x4xf32>
    %c35_150 = arith.constant 35 : index
    %c12_151 = arith.constant 12 : index
    %97 = vector.load %arg14[%c35_150, %c12_151] : memref<98x36xf32, #tpu.memory_space<vmem>>, vector<7x4xf32>
    tpu.vector_store %arg14[%c35_150, %c12_151], %96 {strides = array<i32>} : memref<98x36xf32, #tpu.memory_space<vmem>>, vector<7x4xf32>,
    %c177 = arith.constant 177 : index
    %c0_152 = arith.constant 0 : index
    %98 = tpu.strided_load %arg2[%c177, %c0_152] {strides = array<i32: 2, 1>} : memref<512x4xf32, #tpu.memory_space<vmem>>, vector<7x4xf32>
    %c35_153 = arith.constant 35 : index
    %c16_154 = arith.constant 16 : index
    %99 = vector.load %arg14[%c35_153, %c16_154] : memref<98x36xf32, #tpu.memory_space<vmem>>, vector<7x4xf32>
    tpu.vector_store %arg14[%c35_153, %c16_154], %98 {strides = array<i32>} : memref<98x36xf32, #tpu.memory_space<vmem>>, vector<7x4xf32>,
    %c178 = arith.constant 178 : index
    %c0_155 = arith.constant 0 : index
    %100 = tpu.strided_load %arg2[%c178, %c0_155] {strides = array<i32: 2, 1>} : memref<512x4xf32, #tpu.memory_space<vmem>>, vector<7x4xf32>
    %c35_156 = arith.constant 35 : index
    %c20_157 = arith.constant 20 : index
    %101 = vector.load %arg14[%c35_156, %c20_157] : memref<98x36xf32, #tpu.memory_space<vmem>>, vector<7x4xf32>
    tpu.vector_store %arg14[%c35_156, %c20_157], %100 {strides = array<i32>} : memref<98x36xf32, #tpu.memory_space<vmem>>, vector<7x4xf32>,
    %c192 = arith.constant 192 : index
    %c0_158 = arith.constant 0 : index
    %102 = tpu.strided_load %arg2[%c192, %c0_158] {strides = array<i32: 2, 1>} : memref<512x4xf32, #tpu.memory_space<vmem>>, vector<7x4xf32>
    %c35_159 = arith.constant 35 : index
    %c24_160 = arith.constant 24 : index
    %103 = vector.load %arg14[%c35_159, %c24_160] : memref<98x36xf32, #tpu.memory_space<vmem>>, vector<7x4xf32>
    tpu.vector_store %arg14[%c35_159, %c24_160], %102 {strides = array<i32>} : memref<98x36xf32, #tpu.memory_space<vmem>>, vector<7x4xf32>,
    %c193 = arith.constant 193 : index
    %c0_161 = arith.constant 0 : index
    %104 = tpu.strided_load %arg2[%c193, %c0_161] {strides = array<i32: 2, 1>} : memref<512x4xf32, #tpu.memory_space<vmem>>, vector<7x4xf32>
    %c35_162 = arith.constant 35 : index
    %c28_163 = arith.constant 28 : index
    %105 = vector.load %arg14[%c35_162, %c28_163] : memref<98x36xf32, #tpu.memory_space<vmem>>, vector<7x4xf32>
    tpu.vector_store %arg14[%c35_162, %c28_163], %104 {strides = array<i32>} : memref<98x36xf32, #tpu.memory_space<vmem>>, vector<7x4xf32>,
    %c194 = arith.constant 194 : index
    %c0_164 = arith.constant 0 : index
    %106 = tpu.strided_load %arg2[%c194, %c0_164] {strides = array<i32: 2, 1>} : memref<512x4xf32, #tpu.memory_space<vmem>>, vector<7x4xf32>
    %c35_165 = arith.constant 35 : index
    %c32_166 = arith.constant 32 : index
    %107 = vector.load %arg14[%c35_165, %c32_166] : memref<98x36xf32, #tpu.memory_space<vmem>>, vector<7x4xf32>
    tpu.vector_store %arg14[%c35_165, %c32_166], %106 {strides = array<i32>} : memref<98x36xf32, #tpu.memory_space<vmem>>, vector<7x4xf32>,
    %c192_167 = arith.constant 192 : index
    %c0_168 = arith.constant 0 : index
    %108 = tpu.strided_load %arg2[%c192_167, %c0_168] {strides = array<i32: 2, 1>} : memref<512x4xf32, #tpu.memory_space<vmem>>, vector<7x4xf32>
    %c42 = arith.constant 42 : index
    %c0_169 = arith.constant 0 : index
    %109 = vector.load %arg14[%c42, %c0_169] : memref<98x36xf32, #tpu.memory_space<vmem>>, vector<7x4xf32>
    tpu.vector_store %arg14[%c42, %c0_169], %108 {strides = array<i32>} : memref<98x36xf32, #tpu.memory_space<vmem>>, vector<7x4xf32>,
    %c193_170 = arith.constant 193 : index
    %c0_171 = arith.constant 0 : index
    %110 = tpu.strided_load %arg2[%c193_170, %c0_171] {strides = array<i32: 2, 1>} : memref<512x4xf32, #tpu.memory_space<vmem>>, vector<7x4xf32>
    %c42_172 = arith.constant 42 : index
    %c4_173 = arith.constant 4 : index
    %111 = vector.load %arg14[%c42_172, %c4_173] : memref<98x36xf32, #tpu.memory_space<vmem>>, vector<7x4xf32>
    tpu.vector_store %arg14[%c42_172, %c4_173], %110 {strides = array<i32>} : memref<98x36xf32, #tpu.memory_space<vmem>>, vector<7x4xf32>,
    %c194_174 = arith.constant 194 : index
    %c0_175 = arith.constant 0 : index
    %112 = tpu.strided_load %arg2[%c194_174, %c0_175] {strides = array<i32: 2, 1>} : memref<512x4xf32, #tpu.memory_space<vmem>>, vector<7x4xf32>
    %c42_176 = arith.constant 42 : index
    %c8_177 = arith.constant 8 : index
    %113 = vector.load %arg14[%c42_176, %c8_177] : memref<98x36xf32, #tpu.memory_space<vmem>>, vector<7x4xf32>
    tpu.vector_store %arg14[%c42_176, %c8_177], %112 {strides = array<i32>} : memref<98x36xf32, #tpu.memory_space<vmem>>, vector<7x4xf32>,
    %c208 = arith.constant 208 : index
    %c0_178 = arith.constant 0 : index
    %114 = tpu.strided_load %arg2[%c208, %c0_178] {strides = array<i32: 2, 1>} : memref<512x4xf32, #tpu.memory_space<vmem>>, vector<7x4xf32>
    %c42_179 = arith.constant 42 : index
    %c12_180 = arith.constant 12 : index
    %115 = vector.load %arg14[%c42_179, %c12_180] : memref<98x36xf32, #tpu.memory_space<vmem>>, vector<7x4xf32>
    tpu.vector_store %arg14[%c42_179, %c12_180], %114 {strides = array<i32>} : memref<98x36xf32, #tpu.memory_space<vmem>>, vector<7x4xf32>,
    %c209 = arith.constant 209 : index
    %c0_181 = arith.constant 0 : index
    %116 = tpu.strided_load %arg2[%c209, %c0_181] {strides = array<i32: 2, 1>} : memref<512x4xf32, #tpu.memory_space<vmem>>, vector<7x4xf32>
    %c42_182 = arith.constant 42 : index
    %c16_183 = arith.constant 16 : index
    %117 = vector.load %arg14[%c42_182, %c16_183] : memref<98x36xf32, #tpu.memory_space<vmem>>, vector<7x4xf32>
    tpu.vector_store %arg14[%c42_182, %c16_183], %116 {strides = array<i32>} : memref<98x36xf32, #tpu.memory_space<vmem>>, vector<7x4xf32>,
    %c210 = arith.constant 210 : index
    %c0_184 = arith.constant 0 : index
    %118 = tpu.strided_load %arg2[%c210, %c0_184] {strides = array<i32: 2, 1>} : memref<512x4xf32, #tpu.memory_space<vmem>>, vector<7x4xf32>
    %c42_185 = arith.constant 42 : index
    %c20_186 = arith.constant 20 : index
    %119 = vector.load %arg14[%c42_185, %c20_186] : memref<98x36xf32, #tpu.memory_space<vmem>>, vector<7x4xf32>
    tpu.vector_store %arg14[%c42_185, %c20_186], %118 {strides = array<i32>} : memref<98x36xf32, #tpu.memory_space<vmem>>, vector<7x4xf32>,
    %c224 = arith.constant 224 : index
    %c0_187 = arith.constant 0 : index
    %120 = tpu.strided_load %arg2[%c224, %c0_187] {strides = array<i32: 2, 1>} : memref<512x4xf32, #tpu.memory_space<vmem>>, vector<7x4xf32>
    %c42_188 = arith.constant 42 : index
    %c24_189 = arith.constant 24 : index
    %121 = vector.load %arg14[%c42_188, %c24_189] : memref<98x36xf32, #tpu.memory_space<vmem>>, vector<7x4xf32>
    tpu.vector_store %arg14[%c42_188, %c24_189], %120 {strides = array<i32>} : memref<98x36xf32, #tpu.memory_space<vmem>>, vector<7x4xf32>,
    %c225 = arith.constant 225 : index
    %c0_190 = arith.constant 0 : index
    %122 = tpu.strided_load %arg2[%c225, %c0_190] {strides = array<i32: 2, 1>} : memref<512x4xf32, #tpu.memory_space<vmem>>, vector<7x4xf32>
    %c42_191 = arith.constant 42 : index
    %c28_192 = arith.constant 28 : index
    %123 = vector.load %arg14[%c42_191, %c28_192] : memref<98x36xf32, #tpu.memory_space<vmem>>, vector<7x4xf32>
    tpu.vector_store %arg14[%c42_191, %c28_192], %122 {strides = array<i32>} : memref<98x36xf32, #tpu.memory_space<vmem>>, vector<7x4xf32>,
    %c226 = arith.constant 226 : index
    %c0_193 = arith.constant 0 : index
    %124 = tpu.strided_load %arg2[%c226, %c0_193] {strides = array<i32: 2, 1>} : memref<512x4xf32, #tpu.memory_space<vmem>>, vector<7x4xf32>
    %c42_194 = arith.constant 42 : index
    %c32_195 = arith.constant 32 : index
    %125 = vector.load %arg14[%c42_194, %c32_195] : memref<98x36xf32, #tpu.memory_space<vmem>>, vector<7x4xf32>
    tpu.vector_store %arg14[%c42_194, %c32_195], %124 {strides = array<i32>} : memref<98x36xf32, #tpu.memory_space<vmem>>, vector<7x4xf32>,
    %c256 = arith.constant 256 : index
    %c0_196 = arith.constant 0 : index
    %126 = tpu.strided_load %arg2[%c256, %c0_196] {strides = array<i32: 2, 1>} : memref<512x4xf32, #tpu.memory_space<vmem>>, vector<7x4xf32>
    %c49_197 = arith.constant 49 : index
    %c0_198 = arith.constant 0 : index
    %127 = vector.load %arg14[%c49_197, %c0_198] : memref<98x36xf32, #tpu.memory_space<vmem>>, vector<7x4xf32>
    tpu.vector_store %arg14[%c49_197, %c0_198], %126 {strides = array<i32>} : memref<98x36xf32, #tpu.memory_space<vmem>>, vector<7x4xf32>,
    %c257 = arith.constant 257 : index
    %c0_199 = arith.constant 0 : index
    %128 = tpu.strided_load %arg2[%c257, %c0_199] {strides = array<i32: 2, 1>} : memref<512x4xf32, #tpu.memory_space<vmem>>, vector<7x4xf32>
    %c49_200 = arith.constant 49 : index
    %c4_201 = arith.constant 4 : index
    %129 = vector.load %arg14[%c49_200, %c4_201] : memref<98x36xf32, #tpu.memory_space<vmem>>, vector<7x4xf32>
    tpu.vector_store %arg14[%c49_200, %c4_201], %128 {strides = array<i32>} : memref<98x36xf32, #tpu.memory_space<vmem>>, vector<7x4xf32>,
    %c258 = arith.constant 258 : index
    %c0_202 = arith.constant 0 : index
    %130 = tpu.strided_load %arg2[%c258, %c0_202] {strides = array<i32: 2, 1>} : memref<512x4xf32, #tpu.memory_space<vmem>>, vector<7x4xf32>
    %c49_203 = arith.constant 49 : index
    %c8_204 = arith.constant 8 : index
    %131 = vector.load %arg14[%c49_203, %c8_204] : memref<98x36xf32, #tpu.memory_space<vmem>>, vector<7x4xf32>
    tpu.vector_store %arg14[%c49_203, %c8_204], %130 {strides = array<i32>} : memref<98x36xf32, #tpu.memory_space<vmem>>, vector<7x4xf32>,
    %c272 = arith.constant 272 : index
    %c0_205 = arith.constant 0 : index
    %132 = tpu.strided_load %arg2[%c272, %c0_205] {strides = array<i32: 2, 1>} : memref<512x4xf32, #tpu.memory_space<vmem>>, vector<7x4xf32>
    %c49_206 = arith.constant 49 : index
    %c12_207 = arith.constant 12 : index
    %133 = vector.load %arg14[%c49_206, %c12_207] : memref<98x36xf32, #tpu.memory_space<vmem>>, vector<7x4xf32>
    tpu.vector_store %arg14[%c49_206, %c12_207], %132 {strides = array<i32>} : memref<98x36xf32, #tpu.memory_space<vmem>>, vector<7x4xf32>,
    %c273 = arith.constant 273 : index
    %c0_208 = arith.constant 0 : index
    %134 = tpu.strided_load %arg2[%c273, %c0_208] {strides = array<i32: 2, 1>} : memref<512x4xf32, #tpu.memory_space<vmem>>, vector<7x4xf32>
    %c49_209 = arith.constant 49 : index
    %c16_210 = arith.constant 16 : index
    %135 = vector.load %arg14[%c49_209, %c16_210] : memref<98x36xf32, #tpu.memory_space<vmem>>, vector<7x4xf32>
    tpu.vector_store %arg14[%c49_209, %c16_210], %134 {strides = array<i32>} : memref<98x36xf32, #tpu.memory_space<vmem>>, vector<7x4xf32>,
    %c274 = arith.constant 274 : index
    %c0_211 = arith.constant 0 : index
    %136 = tpu.strided_load %arg2[%c274, %c0_211] {strides = array<i32: 2, 1>} : memref<512x4xf32, #tpu.memory_space<vmem>>, vector<7x4xf32>
    %c49_212 = arith.constant 49 : index
    %c20_213 = arith.constant 20 : index
    %137 = vector.load %arg14[%c49_212, %c20_213] : memref<98x36xf32, #tpu.memory_space<vmem>>, vector<7x4xf32>
    tpu.vector_store %arg14[%c49_212, %c20_213], %136 {strides = array<i32>} : memref<98x36xf32, #tpu.memory_space<vmem>>, vector<7x4xf32>,
    %c288 = arith.constant 288 : index
    %c0_214 = arith.constant 0 : index
    %138 = tpu.strided_load %arg2[%c288, %c0_214] {strides = array<i32: 2, 1>} : memref<512x4xf32, #tpu.memory_space<vmem>>, vector<7x4xf32>
    %c49_215 = arith.constant 49 : index
    %c24_216 = arith.constant 24 : index
    %139 = vector.load %arg14[%c49_215, %c24_216] : memref<98x36xf32, #tpu.memory_space<vmem>>, vector<7x4xf32>
    tpu.vector_store %arg14[%c49_215, %c24_216], %138 {strides = array<i32>} : memref<98x36xf32, #tpu.memory_space<vmem>>, vector<7x4xf32>,
    %c289 = arith.constant 289 : index
    %c0_217 = arith.constant 0 : index
    %140 = tpu.strided_load %arg2[%c289, %c0_217] {strides = array<i32: 2, 1>} : memref<512x4xf32, #tpu.memory_space<vmem>>, vector<7x4xf32>
    %c49_218 = arith.constant 49 : index
    %c28_219 = arith.constant 28 : index
    %141 = vector.load %arg14[%c49_218, %c28_219] : memref<98x36xf32, #tpu.memory_space<vmem>>, vector<7x4xf32>
    tpu.vector_store %arg14[%c49_218, %c28_219], %140 {strides = array<i32>} : memref<98x36xf32, #tpu.memory_space<vmem>>, vector<7x4xf32>,
    %c290 = arith.constant 290 : index
    %c0_220 = arith.constant 0 : index
    %142 = tpu.strided_load %arg2[%c290, %c0_220] {strides = array<i32: 2, 1>} : memref<512x4xf32, #tpu.memory_space<vmem>>, vector<7x4xf32>
    %c49_221 = arith.constant 49 : index
    %c32_222 = arith.constant 32 : index
    %143 = vector.load %arg14[%c49_221, %c32_222] : memref<98x36xf32, #tpu.memory_space<vmem>>, vector<7x4xf32>
    tpu.vector_store %arg14[%c49_221, %c32_222], %142 {strides = array<i32>} : memref<98x36xf32, #tpu.memory_space<vmem>>, vector<7x4xf32>,
    %c288_223 = arith.constant 288 : index
    %c0_224 = arith.constant 0 : index
    %144 = tpu.strided_load %arg2[%c288_223, %c0_224] {strides = array<i32: 2, 1>} : memref<512x4xf32, #tpu.memory_space<vmem>>, vector<7x4xf32>
    %c56 = arith.constant 56 : index
    %c0_225 = arith.constant 0 : index
    %145 = vector.load %arg14[%c56, %c0_225] : memref<98x36xf32, #tpu.memory_space<vmem>>, vector<7x4xf32>
    tpu.vector_store %arg14[%c56, %c0_225], %144 {strides = array<i32>} : memref<98x36xf32, #tpu.memory_space<vmem>>, vector<7x4xf32>,
    %c289_226 = arith.constant 289 : index
    %c0_227 = arith.constant 0 : index
    %146 = tpu.strided_load %arg2[%c289_226, %c0_227] {strides = array<i32: 2, 1>} : memref<512x4xf32, #tpu.memory_space<vmem>>, vector<7x4xf32>
    %c56_228 = arith.constant 56 : index
    %c4_229 = arith.constant 4 : index
    %147 = vector.load %arg14[%c56_228, %c4_229] : memref<98x36xf32, #tpu.memory_space<vmem>>, vector<7x4xf32>
    tpu.vector_store %arg14[%c56_228, %c4_229], %146 {strides = array<i32>} : memref<98x36xf32, #tpu.memory_space<vmem>>, vector<7x4xf32>,
    %c290_230 = arith.constant 290 : index
    %c0_231 = arith.constant 0 : index
    %148 = tpu.strided_load %arg2[%c290_230, %c0_231] {strides = array<i32: 2, 1>} : memref<512x4xf32, #tpu.memory_space<vmem>>, vector<7x4xf32>
    %c56_232 = arith.constant 56 : index
    %c8_233 = arith.constant 8 : index
    %149 = vector.load %arg14[%c56_232, %c8_233] : memref<98x36xf32, #tpu.memory_space<vmem>>, vector<7x4xf32>
    tpu.vector_store %arg14[%c56_232, %c8_233], %148 {strides = array<i32>} : memref<98x36xf32, #tpu.memory_space<vmem>>, vector<7x4xf32>,
    %c304 = arith.constant 304 : index
    %c0_234 = arith.constant 0 : index
    %150 = tpu.strided_load %arg2[%c304, %c0_234] {strides = array<i32: 2, 1>} : memref<512x4xf32, #tpu.memory_space<vmem>>, vector<7x4xf32>
    %c56_235 = arith.constant 56 : index
    %c12_236 = arith.constant 12 : index
    %151 = vector.load %arg14[%c56_235, %c12_236] : memref<98x36xf32, #tpu.memory_space<vmem>>, vector<7x4xf32>
    tpu.vector_store %arg14[%c56_235, %c12_236], %150 {strides = array<i32>} : memref<98x36xf32, #tpu.memory_space<vmem>>, vector<7x4xf32>,
    %c305 = arith.constant 305 : index
    %c0_237 = arith.constant 0 : index
    %152 = tpu.strided_load %arg2[%c305, %c0_237] {strides = array<i32: 2, 1>} : memref<512x4xf32, #tpu.memory_space<vmem>>, vector<7x4xf32>
    %c56_238 = arith.constant 56 : index
    %c16_239 = arith.constant 16 : index
    %153 = vector.load %arg14[%c56_238, %c16_239] : memref<98x36xf32, #tpu.memory_space<vmem>>, vector<7x4xf32>
    tpu.vector_store %arg14[%c56_238, %c16_239], %152 {strides = array<i32>} : memref<98x36xf32, #tpu.memory_space<vmem>>, vector<7x4xf32>,
    %c306 = arith.constant 306 : index
    %c0_240 = arith.constant 0 : index
    %154 = tpu.strided_load %arg2[%c306, %c0_240] {strides = array<i32: 2, 1>} : memref<512x4xf32, #tpu.memory_space<vmem>>, vector<7x4xf32>
    %c56_241 = arith.constant 56 : index
    %c20_242 = arith.constant 20 : index
    %155 = vector.load %arg14[%c56_241, %c20_242] : memref<98x36xf32, #tpu.memory_space<vmem>>, vector<7x4xf32>
    tpu.vector_store %arg14[%c56_241, %c20_242], %154 {strides = array<i32>} : memref<98x36xf32, #tpu.memory_space<vmem>>, vector<7x4xf32>,
    %c320 = arith.constant 320 : index
    %c0_243 = arith.constant 0 : index
    %156 = tpu.strided_load %arg2[%c320, %c0_243] {strides = array<i32: 2, 1>} : memref<512x4xf32, #tpu.memory_space<vmem>>, vector<7x4xf32>
    %c56_244 = arith.constant 56 : index
    %c24_245 = arith.constant 24 : index
    %157 = vector.load %arg14[%c56_244, %c24_245] : memref<98x36xf32, #tpu.memory_space<vmem>>, vector<7x4xf32>
    tpu.vector_store %arg14[%c56_244, %c24_245], %156 {strides = array<i32>} : memref<98x36xf32, #tpu.memory_space<vmem>>, vector<7x4xf32>,
    %c321 = arith.constant 321 : index
    %c0_246 = arith.constant 0 : index
    %158 = tpu.strided_load %arg2[%c321, %c0_246] {strides = array<i32: 2, 1>} : memref<512x4xf32, #tpu.memory_space<vmem>>, vector<7x4xf32>
    %c56_247 = arith.constant 56 : index
    %c28_248 = arith.constant 28 : index
    %159 = vector.load %arg14[%c56_247, %c28_248] : memref<98x36xf32, #tpu.memory_space<vmem>>, vector<7x4xf32>
    tpu.vector_store %arg14[%c56_247, %c28_248], %158 {strides = array<i32>} : memref<98x36xf32, #tpu.memory_space<vmem>>, vector<7x4xf32>,
    %c322 = arith.constant 322 : index
    %c0_249 = arith.constant 0 : index
    %160 = tpu.strided_load %arg2[%c322, %c0_249] {strides = array<i32: 2, 1>} : memref<512x4xf32, #tpu.memory_space<vmem>>, vector<7x4xf32>
    %c56_250 = arith.constant 56 : index
    %c32_251 = arith.constant 32 : index
    %161 = vector.load %arg14[%c56_250, %c32_251] : memref<98x36xf32, #tpu.memory_space<vmem>>, vector<7x4xf32>
    tpu.vector_store %arg14[%c56_250, %c32_251], %160 {strides = array<i32>} : memref<98x36xf32, #tpu.memory_space<vmem>>, vector<7x4xf32>,
    %c320_252 = arith.constant 320 : index
    %c0_253 = arith.constant 0 : index
    %162 = tpu.strided_load %arg2[%c320_252, %c0_253] {strides = array<i32: 2, 1>} : memref<512x4xf32, #tpu.memory_space<vmem>>, vector<7x4xf32>
    %c63 = arith.constant 63 : index
    %c0_254 = arith.constant 0 : index
    %163 = vector.load %arg14[%c63, %c0_254] : memref<98x36xf32, #tpu.memory_space<vmem>>, vector<7x4xf32>
    tpu.vector_store %arg14[%c63, %c0_254], %162 {strides = array<i32>} : memref<98x36xf32, #tpu.memory_space<vmem>>, vector<7x4xf32>,
    %c321_255 = arith.constant 321 : index
    %c0_256 = arith.constant 0 : index
    %164 = tpu.strided_load %arg2[%c321_255, %c0_256] {strides = array<i32: 2, 1>} : memref<512x4xf32, #tpu.memory_space<vmem>>, vector<7x4xf32>
    %c63_257 = arith.constant 63 : index
    %c4_258 = arith.constant 4 : index
    %165 = vector.load %arg14[%c63_257, %c4_258] : memref<98x36xf32, #tpu.memory_space<vmem>>, vector<7x4xf32>
    tpu.vector_store %arg14[%c63_257, %c4_258], %164 {strides = array<i32>} : memref<98x36xf32, #tpu.memory_space<vmem>>, vector<7x4xf32>,
    %c322_259 = arith.constant 322 : index
    %c0_260 = arith.constant 0 : index
    %166 = tpu.strided_load %arg2[%c322_259, %c0_260] {strides = array<i32: 2, 1>} : memref<512x4xf32, #tpu.memory_space<vmem>>, vector<7x4xf32>
    %c63_261 = arith.constant 63 : index
    %c8_262 = arith.constant 8 : index
    %167 = vector.load %arg14[%c63_261, %c8_262] : memref<98x36xf32, #tpu.memory_space<vmem>>, vector<7x4xf32>
    tpu.vector_store %arg14[%c63_261, %c8_262], %166 {strides = array<i32>} : memref<98x36xf32, #tpu.memory_space<vmem>>, vector<7x4xf32>,
    %c336 = arith.constant 336 : index
    %c0_263 = arith.constant 0 : index
    %168 = tpu.strided_load %arg2[%c336, %c0_263] {strides = array<i32: 2, 1>} : memref<512x4xf32, #tpu.memory_space<vmem>>, vector<7x4xf32>
    %c63_264 = arith.constant 63 : index
    %c12_265 = arith.constant 12 : index
    %169 = vector.load %arg14[%c63_264, %c12_265] : memref<98x36xf32, #tpu.memory_space<vmem>>, vector<7x4xf32>
    tpu.vector_store %arg14[%c63_264, %c12_265], %168 {strides = array<i32>} : memref<98x36xf32, #tpu.memory_space<vmem>>, vector<7x4xf32>,
    %c337 = arith.constant 337 : index
    %c0_266 = arith.constant 0 : index
    %170 = tpu.strided_load %arg2[%c337, %c0_266] {strides = array<i32: 2, 1>} : memref<512x4xf32, #tpu.memory_space<vmem>>, vector<7x4xf32>
    %c63_267 = arith.constant 63 : index
    %c16_268 = arith.constant 16 : index
    %171 = vector.load %arg14[%c63_267, %c16_268] : memref<98x36xf32, #tpu.memory_space<vmem>>, vector<7x4xf32>
    tpu.vector_store %arg14[%c63_267, %c16_268], %170 {strides = array<i32>} : memref<98x36xf32, #tpu.memory_space<vmem>>, vector<7x4xf32>,
    %c338 = arith.constant 338 : index
    %c0_269 = arith.constant 0 : index
    %172 = tpu.strided_load %arg2[%c338, %c0_269] {strides = array<i32: 2, 1>} : memref<512x4xf32, #tpu.memory_space<vmem>>, vector<7x4xf32>
    %c63_270 = arith.constant 63 : index
    %c20_271 = arith.constant 20 : index
    %173 = vector.load %arg14[%c63_270, %c20_271] : memref<98x36xf32, #tpu.memory_space<vmem>>, vector<7x4xf32>
    tpu.vector_store %arg14[%c63_270, %c20_271], %172 {strides = array<i32>} : memref<98x36xf32, #tpu.memory_space<vmem>>, vector<7x4xf32>,
    %c352 = arith.constant 352 : index
    %c0_272 = arith.constant 0 : index
    %174 = tpu.strided_load %arg2[%c352, %c0_272] {strides = array<i32: 2, 1>} : memref<512x4xf32, #tpu.memory_space<vmem>>, vector<7x4xf32>
    %c63_273 = arith.constant 63 : index
    %c24_274 = arith.constant 24 : index
    %175 = vector.load %arg14[%c63_273, %c24_274] : memref<98x36xf32, #tpu.memory_space<vmem>>, vector<7x4xf32>
    tpu.vector_store %arg14[%c63_273, %c24_274], %174 {strides = array<i32>} : memref<98x36xf32, #tpu.memory_space<vmem>>, vector<7x4xf32>,
    %c353 = arith.constant 353 : index
    %c0_275 = arith.constant 0 : index
    %176 = tpu.strided_load %arg2[%c353, %c0_275] {strides = array<i32: 2, 1>} : memref<512x4xf32, #tpu.memory_space<vmem>>, vector<7x4xf32>
    %c63_276 = arith.constant 63 : index
    %c28_277 = arith.constant 28 : index
    %177 = vector.load %arg14[%c63_276, %c28_277] : memref<98x36xf32, #tpu.memory_space<vmem>>, vector<7x4xf32>
    tpu.vector_store %arg14[%c63_276, %c28_277], %176 {strides = array<i32>} : memref<98x36xf32, #tpu.memory_space<vmem>>, vector<7x4xf32>,
    %c354 = arith.constant 354 : index
    %c0_278 = arith.constant 0 : index
    %178 = tpu.strided_load %arg2[%c354, %c0_278] {strides = array<i32: 2, 1>} : memref<512x4xf32, #tpu.memory_space<vmem>>, vector<7x4xf32>
    %c63_279 = arith.constant 63 : index
    %c32_280 = arith.constant 32 : index
    %179 = vector.load %arg14[%c63_279, %c32_280] : memref<98x36xf32, #tpu.memory_space<vmem>>, vector<7x4xf32>
    tpu.vector_store %arg14[%c63_279, %c32_280], %178 {strides = array<i32>} : memref<98x36xf32, #tpu.memory_space<vmem>>, vector<7x4xf32>,
    %c352_281 = arith.constant 352 : index
    %c0_282 = arith.constant 0 : index
    %180 = tpu.strided_load %arg2[%c352_281, %c0_282] {strides = array<i32: 2, 1>} : memref<512x4xf32, #tpu.memory_space<vmem>>, vector<7x4xf32>
    %c70 = arith.constant 70 : index
    %c0_283 = arith.constant 0 : index
    %181 = vector.load %arg14[%c70, %c0_283] : memref<98x36xf32, #tpu.memory_space<vmem>>, vector<7x4xf32>
    tpu.vector_store %arg14[%c70, %c0_283], %180 {strides = array<i32>} : memref<98x36xf32, #tpu.memory_space<vmem>>, vector<7x4xf32>,
    %c353_284 = arith.constant 353 : index
    %c0_285 = arith.constant 0 : index
    %182 = tpu.strided_load %arg2[%c353_284, %c0_285] {strides = array<i32: 2, 1>} : memref<512x4xf32, #tpu.memory_space<vmem>>, vector<7x4xf32>
    %c70_286 = arith.constant 70 : index
    %c4_287 = arith.constant 4 : index
    %183 = vector.load %arg14[%c70_286, %c4_287] : memref<98x36xf32, #tpu.memory_space<vmem>>, vector<7x4xf32>
    tpu.vector_store %arg14[%c70_286, %c4_287], %182 {strides = array<i32>} : memref<98x36xf32, #tpu.memory_space<vmem>>, vector<7x4xf32>,
    %c354_288 = arith.constant 354 : index
    %c0_289 = arith.constant 0 : index
    %184 = tpu.strided_load %arg2[%c354_288, %c0_289] {strides = array<i32: 2, 1>} : memref<512x4xf32, #tpu.memory_space<vmem>>, vector<7x4xf32>
    %c70_290 = arith.constant 70 : index
    %c8_291 = arith.constant 8 : index
    %185 = vector.load %arg14[%c70_290, %c8_291] : memref<98x36xf32, #tpu.memory_space<vmem>>, vector<7x4xf32>
    tpu.vector_store %arg14[%c70_290, %c8_291], %184 {strides = array<i32>} : memref<98x36xf32, #tpu.memory_space<vmem>>, vector<7x4xf32>,
    %c368 = arith.constant 368 : index
    %c0_292 = arith.constant 0 : index
    %186 = tpu.strided_load %arg2[%c368, %c0_292] {strides = array<i32: 2, 1>} : memref<512x4xf32, #tpu.memory_space<vmem>>, vector<7x4xf32>
    %c70_293 = arith.constant 70 : index
    %c12_294 = arith.constant 12 : index
    %187 = vector.load %arg14[%c70_293, %c12_294] : memref<98x36xf32, #tpu.memory_space<vmem>>, vector<7x4xf32>
    tpu.vector_store %arg14[%c70_293, %c12_294], %186 {strides = array<i32>} : memref<98x36xf32, #tpu.memory_space<vmem>>, vector<7x4xf32>,
    %c369 = arith.constant 369 : index
    %c0_295 = arith.constant 0 : index
    %188 = tpu.strided_load %arg2[%c369, %c0_295] {strides = array<i32: 2, 1>} : memref<512x4xf32, #tpu.memory_space<vmem>>, vector<7x4xf32>
    %c70_296 = arith.constant 70 : index
    %c16_297 = arith.constant 16 : index
    %189 = vector.load %arg14[%c70_296, %c16_297] : memref<98x36xf32, #tpu.memory_space<vmem>>, vector<7x4xf32>
    tpu.vector_store %arg14[%c70_296, %c16_297], %188 {strides = array<i32>} : memref<98x36xf32, #tpu.memory_space<vmem>>, vector<7x4xf32>,
    %c370 = arith.constant 370 : index
    %c0_298 = arith.constant 0 : index
    %190 = tpu.strided_load %arg2[%c370, %c0_298] {strides = array<i32: 2, 1>} : memref<512x4xf32, #tpu.memory_space<vmem>>, vector<7x4xf32>
    %c70_299 = arith.constant 70 : index
    %c20_300 = arith.constant 20 : index
    %191 = vector.load %arg14[%c70_299, %c20_300] : memref<98x36xf32, #tpu.memory_space<vmem>>, vector<7x4xf32>
    tpu.vector_store %arg14[%c70_299, %c20_300], %190 {strides = array<i32>} : memref<98x36xf32, #tpu.memory_space<vmem>>, vector<7x4xf32>,
    %c384 = arith.constant 384 : index
    %c0_301 = arith.constant 0 : index
    %192 = tpu.strided_load %arg2[%c384, %c0_301] {strides = array<i32: 2, 1>} : memref<512x4xf32, #tpu.memory_space<vmem>>, vector<7x4xf32>
    %c70_302 = arith.constant 70 : index
    %c24_303 = arith.constant 24 : index
    %193 = vector.load %arg14[%c70_302, %c24_303] : memref<98x36xf32, #tpu.memory_space<vmem>>, vector<7x4xf32>
    tpu.vector_store %arg14[%c70_302, %c24_303], %192 {strides = array<i32>} : memref<98x36xf32, #tpu.memory_space<vmem>>, vector<7x4xf32>,
    %c385 = arith.constant 385 : index
    %c0_304 = arith.constant 0 : index
    %194 = tpu.strided_load %arg2[%c385, %c0_304] {strides = array<i32: 2, 1>} : memref<512x4xf32, #tpu.memory_space<vmem>>, vector<7x4xf32>
    %c70_305 = arith.constant 70 : index
    %c28_306 = arith.constant 28 : index
    %195 = vector.load %arg14[%c70_305, %c28_306] : memref<98x36xf32, #tpu.memory_space<vmem>>, vector<7x4xf32>
    tpu.vector_store %arg14[%c70_305, %c28_306], %194 {strides = array<i32>} : memref<98x36xf32, #tpu.memory_space<vmem>>, vector<7x4xf32>,
    %c386 = arith.constant 386 : index
    %c0_307 = arith.constant 0 : index
    %196 = tpu.strided_load %arg2[%c386, %c0_307] {strides = array<i32: 2, 1>} : memref<512x4xf32, #tpu.memory_space<vmem>>, vector<7x4xf32>
    %c70_308 = arith.constant 70 : index
    %c32_309 = arith.constant 32 : index
    %197 = vector.load %arg14[%c70_308, %c32_309] : memref<98x36xf32, #tpu.memory_space<vmem>>, vector<7x4xf32>
    tpu.vector_store %arg14[%c70_308, %c32_309], %196 {strides = array<i32>} : memref<98x36xf32, #tpu.memory_space<vmem>>, vector<7x4xf32>,
    %c384_310 = arith.constant 384 : index
    %c0_311 = arith.constant 0 : index
    %198 = tpu.strided_load %arg2[%c384_310, %c0_311] {strides = array<i32: 2, 1>} : memref<512x4xf32, #tpu.memory_space<vmem>>, vector<7x4xf32>
    %c77 = arith.constant 77 : index
    %c0_312 = arith.constant 0 : index
    %199 = vector.load %arg14[%c77, %c0_312] : memref<98x36xf32, #tpu.memory_space<vmem>>, vector<7x4xf32>
    tpu.vector_store %arg14[%c77, %c0_312], %198 {strides = array<i32>} : memref<98x36xf32, #tpu.memory_space<vmem>>, vector<7x4xf32>,
    %c385_313 = arith.constant 385 : index
    %c0_314 = arith.constant 0 : index
    %200 = tpu.strided_load %arg2[%c385_313, %c0_314] {strides = array<i32: 2, 1>} : memref<512x4xf32, #tpu.memory_space<vmem>>, vector<7x4xf32>
    %c77_315 = arith.constant 77 : index
    %c4_316 = arith.constant 4 : index
    %201 = vector.load %arg14[%c77_315, %c4_316] : memref<98x36xf32, #tpu.memory_space<vmem>>, vector<7x4xf32>
    tpu.vector_store %arg14[%c77_315, %c4_316], %200 {strides = array<i32>} : memref<98x36xf32, #tpu.memory_space<vmem>>, vector<7x4xf32>,
    %c386_317 = arith.constant 386 : index
    %c0_318 = arith.constant 0 : index
    %202 = tpu.strided_load %arg2[%c386_317, %c0_318] {strides = array<i32: 2, 1>} : memref<512x4xf32, #tpu.memory_space<vmem>>, vector<7x4xf32>
    %c77_319 = arith.constant 77 : index
    %c8_320 = arith.constant 8 : index
    %203 = vector.load %arg14[%c77_319, %c8_320] : memref<98x36xf32, #tpu.memory_space<vmem>>, vector<7x4xf32>
    tpu.vector_store %arg14[%c77_319, %c8_320], %202 {strides = array<i32>} : memref<98x36xf32, #tpu.memory_space<vmem>>, vector<7x4xf32>,
    %c400 = arith.constant 400 : index
    %c0_321 = arith.constant 0 : index
    %204 = tpu.strided_load %arg2[%c400, %c0_321] {strides = array<i32: 2, 1>} : memref<512x4xf32, #tpu.memory_space<vmem>>, vector<7x4xf32>
    %c77_322 = arith.constant 77 : index
    %c12_323 = arith.constant 12 : index
    %205 = vector.load %arg14[%c77_322, %c12_323] : memref<98x36xf32, #tpu.memory_space<vmem>>, vector<7x4xf32>
    tpu.vector_store %arg14[%c77_322, %c12_323], %204 {strides = array<i32>} : memref<98x36xf32, #tpu.memory_space<vmem>>, vector<7x4xf32>,
    %c401 = arith.constant 401 : index
    %c0_324 = arith.constant 0 : index
    %206 = tpu.strided_load %arg2[%c401, %c0_324] {strides = array<i32: 2, 1>} : memref<512x4xf32, #tpu.memory_space<vmem>>, vector<7x4xf32>
    %c77_325 = arith.constant 77 : index
    %c16_326 = arith.constant 16 : index
    %207 = vector.load %arg14[%c77_325, %c16_326] : memref<98x36xf32, #tpu.memory_space<vmem>>, vector<7x4xf32>
    tpu.vector_store %arg14[%c77_325, %c16_326], %206 {strides = array<i32>} : memref<98x36xf32, #tpu.memory_space<vmem>>, vector<7x4xf32>,
    %c402 = arith.constant 402 : index
    %c0_327 = arith.constant 0 : index
    %208 = tpu.strided_load %arg2[%c402, %c0_327] {strides = array<i32: 2, 1>} : memref<512x4xf32, #tpu.memory_space<vmem>>, vector<7x4xf32>
    %c77_328 = arith.constant 77 : index
    %c20_329 = arith.constant 20 : index
    %209 = vector.load %arg14[%c77_328, %c20_329] : memref<98x36xf32, #tpu.memory_space<vmem>>, vector<7x4xf32>
    tpu.vector_store %arg14[%c77_328, %c20_329], %208 {strides = array<i32>} : memref<98x36xf32, #tpu.memory_space<vmem>>, vector<7x4xf32>,
    %c416 = arith.constant 416 : index
    %c0_330 = arith.constant 0 : index
    %210 = tpu.strided_load %arg2[%c416, %c0_330] {strides = array<i32: 2, 1>} : memref<512x4xf32, #tpu.memory_space<vmem>>, vector<7x4xf32>
    %c77_331 = arith.constant 77 : index
    %c24_332 = arith.constant 24 : index
    %211 = vector.load %arg14[%c77_331, %c24_332] : memref<98x36xf32, #tpu.memory_space<vmem>>, vector<7x4xf32>
    tpu.vector_store %arg14[%c77_331, %c24_332], %210 {strides = array<i32>} : memref<98x36xf32, #tpu.memory_space<vmem>>, vector<7x4xf32>,
    %c417 = arith.constant 417 : index
    %c0_333 = arith.constant 0 : index
    %212 = tpu.strided_load %arg2[%c417, %c0_333] {strides = array<i32: 2, 1>} : memref<512x4xf32, #tpu.memory_space<vmem>>, vector<7x4xf32>
    %c77_334 = arith.constant 77 : index
    %c28_335 = arith.constant 28 : index
    %213 = vector.load %arg14[%c77_334, %c28_335] : memref<98x36xf32, #tpu.memory_space<vmem>>, vector<7x4xf32>
    tpu.vector_store %arg14[%c77_334, %c28_335], %212 {strides = array<i32>} : memref<98x36xf32, #tpu.memory_space<vmem>>, vector<7x4xf32>,
    %c418 = arith.constant 418 : index
    %c0_336 = arith.constant 0 : index
    %214 = tpu.strided_load %arg2[%c418, %c0_336] {strides = array<i32: 2, 1>} : memref<512x4xf32, #tpu.memory_space<vmem>>, vector<7x4xf32>
    %c77_337 = arith.constant 77 : index
    %c32_338 = arith.constant 32 : index
    %215 = vector.load %arg14[%c77_337, %c32_338] : memref<98x36xf32, #tpu.memory_space<vmem>>, vector<7x4xf32>
    tpu.vector_store %arg14[%c77_337, %c32_338], %214 {strides = array<i32>} : memref<98x36xf32, #tpu.memory_space<vmem>>, vector<7x4xf32>,
    %c416_339 = arith.constant 416 : index
    %c0_340 = arith.constant 0 : index
    %216 = tpu.strided_load %arg2[%c416_339, %c0_340] {strides = array<i32: 2, 1>} : memref<512x4xf32, #tpu.memory_space<vmem>>, vector<7x4xf32>
    %c84 = arith.constant 84 : index
    %c0_341 = arith.constant 0 : index
    %217 = vector.load %arg14[%c84, %c0_341] : memref<98x36xf32, #tpu.memory_space<vmem>>, vector<7x4xf32>
    tpu.vector_store %arg14[%c84, %c0_341], %216 {strides = array<i32>} : memref<98x36xf32, #tpu.memory_space<vmem>>, vector<7x4xf32>,
    %c417_342 = arith.constant 417 : index
    %c0_343 = arith.constant 0 : index
    %218 = tpu.strided_load %arg2[%c417_342, %c0_343] {strides = array<i32: 2, 1>} : memref<512x4xf32, #tpu.memory_space<vmem>>, vector<7x4xf32>
    %c84_344 = arith.constant 84 : index
    %c4_345 = arith.constant 4 : index
    %219 = vector.load %arg14[%c84_344, %c4_345] : memref<98x36xf32, #tpu.memory_space<vmem>>, vector<7x4xf32>
    tpu.vector_store %arg14[%c84_344, %c4_345], %218 {strides = array<i32>} : memref<98x36xf32, #tpu.memory_space<vmem>>, vector<7x4xf32>,
    %c418_346 = arith.constant 418 : index
    %c0_347 = arith.constant 0 : index
    %220 = tpu.strided_load %arg2[%c418_346, %c0_347] {strides = array<i32: 2, 1>} : memref<512x4xf32, #tpu.memory_space<vmem>>, vector<7x4xf32>
    %c84_348 = arith.constant 84 : index
    %c8_349 = arith.constant 8 : index
    %221 = vector.load %arg14[%c84_348, %c8_349] : memref<98x36xf32, #tpu.memory_space<vmem>>, vector<7x4xf32>
    tpu.vector_store %arg14[%c84_348, %c8_349], %220 {strides = array<i32>} : memref<98x36xf32, #tpu.memory_space<vmem>>, vector<7x4xf32>,
    %c432 = arith.constant 432 : index
    %c0_350 = arith.constant 0 : index
    %222 = tpu.strided_load %arg2[%c432, %c0_350] {strides = array<i32: 2, 1>} : memref<512x4xf32, #tpu.memory_space<vmem>>, vector<7x4xf32>
    %c84_351 = arith.constant 84 : index
    %c12_352 = arith.constant 12 : index
    %223 = vector.load %arg14[%c84_351, %c12_352] : memref<98x36xf32, #tpu.memory_space<vmem>>, vector<7x4xf32>
    tpu.vector_store %arg14[%c84_351, %c12_352], %222 {strides = array<i32>} : memref<98x36xf32, #tpu.memory_space<vmem>>, vector<7x4xf32>,
    %c433 = arith.constant 433 : index
    %c0_353 = arith.constant 0 : index
    %224 = tpu.strided_load %arg2[%c433, %c0_353] {strides = array<i32: 2, 1>} : memref<512x4xf32, #tpu.memory_space<vmem>>, vector<7x4xf32>
    %c84_354 = arith.constant 84 : index
    %c16_355 = arith.constant 16 : index
    %225 = vector.load %arg14[%c84_354, %c16_355] : memref<98x36xf32, #tpu.memory_space<vmem>>, vector<7x4xf32>
    tpu.vector_store %arg14[%c84_354, %c16_355], %224 {strides = array<i32>} : memref<98x36xf32, #tpu.memory_space<vmem>>, vector<7x4xf32>,
    %c434 = arith.constant 434 : index
    %c0_356 = arith.constant 0 : index
    %226 = tpu.strided_load %arg2[%c434, %c0_356] {strides = array<i32: 2, 1>} : memref<512x4xf32, #tpu.memory_space<vmem>>, vector<7x4xf32>
    %c84_357 = arith.constant 84 : index
    %c20_358 = arith.constant 20 : index
    %227 = vector.load %arg14[%c84_357, %c20_358] : memref<98x36xf32, #tpu.memory_space<vmem>>, vector<7x4xf32>
    tpu.vector_store %arg14[%c84_357, %c20_358], %226 {strides = array<i32>} : memref<98x36xf32, #tpu.memory_space<vmem>>, vector<7x4xf32>,
    %c448 = arith.constant 448 : index
    %c0_359 = arith.constant 0 : index
    %228 = tpu.strided_load %arg2[%c448, %c0_359] {strides = array<i32: 2, 1>} : memref<512x4xf32, #tpu.memory_space<vmem>>, vector<7x4xf32>
    %c84_360 = arith.constant 84 : index
    %c24_361 = arith.constant 24 : index
    %229 = vector.load %arg14[%c84_360, %c24_361] : memref<98x36xf32, #tpu.memory_space<vmem>>, vector<7x4xf32>
    tpu.vector_store %arg14[%c84_360, %c24_361], %228 {strides = array<i32>} : memref<98x36xf32, #tpu.memory_space<vmem>>, vector<7x4xf32>,
    %c449 = arith.constant 449 : index
    %c0_362 = arith.constant 0 : index
    %230 = tpu.strided_load %arg2[%c449, %c0_362] {strides = array<i32: 2, 1>} : memref<512x4xf32, #tpu.memory_space<vmem>>, vector<7x4xf32>
    %c84_363 = arith.constant 84 : index
    %c28_364 = arith.constant 28 : index
    %231 = vector.load %arg14[%c84_363, %c28_364] : memref<98x36xf32, #tpu.memory_space<vmem>>, vector<7x4xf32>
    tpu.vector_store %arg14[%c84_363, %c28_364], %230 {strides = array<i32>} : memref<98x36xf32, #tpu.memory_space<vmem>>, vector<7x4xf32>,
    %c450 = arith.constant 450 : index
    %c0_365 = arith.constant 0 : index
    %232 = tpu.strided_load %arg2[%c450, %c0_365] {strides = array<i32: 2, 1>} : memref<512x4xf32, #tpu.memory_space<vmem>>, vector<7x4xf32>
    %c84_366 = arith.constant 84 : index
    %c32_367 = arith.constant 32 : index
    %233 = vector.load %arg14[%c84_366, %c32_367] : memref<98x36xf32, #tpu.memory_space<vmem>>, vector<7x4xf32>
    tpu.vector_store %arg14[%c84_366, %c32_367], %232 {strides = array<i32>} : memref<98x36xf32, #tpu.memory_space<vmem>>, vector<7x4xf32>,
    %c448_368 = arith.constant 448 : index
    %c0_369 = arith.constant 0 : index
    %234 = tpu.strided_load %arg2[%c448_368, %c0_369] {strides = array<i32: 2, 1>} : memref<512x4xf32, #tpu.memory_space<vmem>>, vector<7x4xf32>
    %c91 = arith.constant 91 : index
    %c0_370 = arith.constant 0 : index
    %235 = vector.load %arg14[%c91, %c0_370] : memref<98x36xf32, #tpu.memory_space<vmem>>, vector<7x4xf32>
    tpu.vector_store %arg14[%c91, %c0_370], %234 {strides = array<i32>} : memref<98x36xf32, #tpu.memory_space<vmem>>, vector<7x4xf32>,
    %c449_371 = arith.constant 449 : index
    %c0_372 = arith.constant 0 : index
    %236 = tpu.strided_load %arg2[%c449_371, %c0_372] {strides = array<i32: 2, 1>} : memref<512x4xf32, #tpu.memory_space<vmem>>, vector<7x4xf32>
    %c91_373 = arith.constant 91 : index
    %c4_374 = arith.constant 4 : index
    %237 = vector.load %arg14[%c91_373, %c4_374] : memref<98x36xf32, #tpu.memory_space<vmem>>, vector<7x4xf32>
    tpu.vector_store %arg14[%c91_373, %c4_374], %236 {strides = array<i32>} : memref<98x36xf32, #tpu.memory_space<vmem>>, vector<7x4xf32>,
    %c450_375 = arith.constant 450 : index
    %c0_376 = arith.constant 0 : index
    %238 = tpu.strided_load %arg2[%c450_375, %c0_376] {strides = array<i32: 2, 1>} : memref<512x4xf32, #tpu.memory_space<vmem>>, vector<7x4xf32>
    %c91_377 = arith.constant 91 : index
    %c8_378 = arith.constant 8 : index
    %239 = vector.load %arg14[%c91_377, %c8_378] : memref<98x36xf32, #tpu.memory_space<vmem>>, vector<7x4xf32>
    tpu.vector_store %arg14[%c91_377, %c8_378], %238 {strides = array<i32>} : memref<98x36xf32, #tpu.memory_space<vmem>>, vector<7x4xf32>,
    %c464 = arith.constant 464 : index
    %c0_379 = arith.constant 0 : index
    %240 = tpu.strided_load %arg2[%c464, %c0_379] {strides = array<i32: 2, 1>} : memref<512x4xf32, #tpu.memory_space<vmem>>, vector<7x4xf32>
    %c91_380 = arith.constant 91 : index
    %c12_381 = arith.constant 12 : index
    %241 = vector.load %arg14[%c91_380, %c12_381] : memref<98x36xf32, #tpu.memory_space<vmem>>, vector<7x4xf32>
    tpu.vector_store %arg14[%c91_380, %c12_381], %240 {strides = array<i32>} : memref<98x36xf32, #tpu.memory_space<vmem>>, vector<7x4xf32>,
    %c465 = arith.constant 465 : index
    %c0_382 = arith.constant 0 : index
    %242 = tpu.strided_load %arg2[%c465, %c0_382] {strides = array<i32: 2, 1>} : memref<512x4xf32, #tpu.memory_space<vmem>>, vector<7x4xf32>
    %c91_383 = arith.constant 91 : index
    %c16_384 = arith.constant 16 : index
    %243 = vector.load %arg14[%c91_383, %c16_384] : memref<98x36xf32, #tpu.memory_space<vmem>>, vector<7x4xf32>
    tpu.vector_store %arg14[%c91_383, %c16_384], %242 {strides = array<i32>} : memref<98x36xf32, #tpu.memory_space<vmem>>, vector<7x4xf32>,
    %c466 = arith.constant 466 : index
    %c0_385 = arith.constant 0 : index
    %244 = tpu.strided_load %arg2[%c466, %c0_385] {strides = array<i32: 2, 1>} : memref<512x4xf32, #tpu.memory_space<vmem>>, vector<7x4xf32>
    %c91_386 = arith.constant 91 : index
    %c20_387 = arith.constant 20 : index
    %245 = vector.load %arg14[%c91_386, %c20_387] : memref<98x36xf32, #tpu.memory_space<vmem>>, vector<7x4xf32>
    tpu.vector_store %arg14[%c91_386, %c20_387], %244 {strides = array<i32>} : memref<98x36xf32, #tpu.memory_space<vmem>>, vector<7x4xf32>,
    %c480 = arith.constant 480 : index
    %c0_388 = arith.constant 0 : index
    %246 = tpu.strided_load %arg2[%c480, %c0_388] {strides = array<i32: 2, 1>} : memref<512x4xf32, #tpu.memory_space<vmem>>, vector<7x4xf32>
    %c91_389 = arith.constant 91 : index
    %c24_390 = arith.constant 24 : index
    %247 = vector.load %arg14[%c91_389, %c24_390] : memref<98x36xf32, #tpu.memory_space<vmem>>, vector<7x4xf32>
    tpu.vector_store %arg14[%c91_389, %c24_390], %246 {strides = array<i32>} : memref<98x36xf32, #tpu.memory_space<vmem>>, vector<7x4xf32>,
    %c481 = arith.constant 481 : index
    %c0_391 = arith.constant 0 : index
    %248 = tpu.strided_load %arg2[%c481, %c0_391] {strides = array<i32: 2, 1>} : memref<512x4xf32, #tpu.memory_space<vmem>>, vector<7x4xf32>
    %c91_392 = arith.constant 91 : index
    %c28_393 = arith.constant 28 : index
    %249 = vector.load %arg14[%c91_392, %c28_393] : memref<98x36xf32, #tpu.memory_space<vmem>>, vector<7x4xf32>
    tpu.vector_store %arg14[%c91_392, %c28_393], %248 {strides = array<i32>} : memref<98x36xf32, #tpu.memory_space<vmem>>, vector<7x4xf32>,
    %c482 = arith.constant 482 : index
    %c0_394 = arith.constant 0 : index
    %250 = tpu.strided_load %arg2[%c482, %c0_394] {strides = array<i32: 2, 1>} : memref<512x4xf32, #tpu.memory_space<vmem>>, vector<7x4xf32>
    %c91_395 = arith.constant 91 : index
    %c32_396 = arith.constant 32 : index
    %251 = vector.load %arg14[%c91_395, %c32_396] : memref<98x36xf32, #tpu.memory_space<vmem>>, vector<7x4xf32>
    tpu.vector_store %arg14[%c91_395, %c32_396], %250 {strides = array<i32>} : memref<98x36xf32, #tpu.memory_space<vmem>>, vector<7x4xf32>,
    %c0_397 = arith.constant 0 : index
    %c0_398 = arith.constant 0 : index
    %252 = vector.load %arg14[%c0_397, %c0_398] : memref<98x36xf32, #tpu.memory_space<vmem>>, vector<98x36xf32>
    %c0_399 = arith.constant 0 : index
    %c0_400 = arith.constant 0 : index
    %253 = vector.load %arg3[%c0_399, %c0_400] : memref<36x8xbf16, #tpu.memory_space<vmem>>, vector<36x8xbf16>
    %254 = arith.extf %253 : vector<36x8xbf16> to vector<36x8xf32>
    %cst = arith.constant dense<0.000000e+00> : vector<98x8xf32>
    %255 = tpu.matmul %252, %254, %cst {dimension_numbers = #tpu.dot_dimension_numbers<[1], [0], [0], [1], [0, 0, 1, 1], [], []>} : vector<98x36xf32>, vector<36x8xf32>, vector<98x8xf32> -> vector<98x8xf32>
    %c0_401 = arith.constant 0 : index
    %c0_402 = arith.constant 0 : index
    %256 = vector.load %arg4[%c0_401, %c0_402] : memref<1x8xf32, #tpu.memory_space<vmem>>, vector<1x8xf32>
    %257 = vector.broadcast %256 : vector<1x8xf32> to vector<98x8xf32>
    %258 = arith.addf %255, %257 : vector<98x8xf32>
    %cst_403 = arith.constant 0.000000e+00 : f32
    %259 = vector.broadcast %cst_403 : f32 to vector<98x8xf32>
    %260 = arith.maximumf %258, %259 : vector<98x8xf32>
    %c0_404 = arith.constant 0 : index
    %c0_405 = arith.constant 0 : index
    %261 = vector.load %arg15[%c0_404, %c0_405] : memref<98x8xf32, #tpu.memory_space<vmem>>, vector<98x8xf32>
    tpu.vector_store %arg15[%c0_404, %c0_405], %260 {strides = array<i32>} : memref<98x8xf32, #tpu.memory_space<vmem>>, vector<98x8xf32>,
    %c0_406 = arith.constant 0 : index
    %c0_407 = arith.constant 0 : index
    %262 = tpu.strided_load %arg15[%c0_406, %c0_407] {strides = array<i32: 2, 1>} : memref<98x8xf32, #tpu.memory_space<vmem>>, vector<3x8xf32>
    %c0_408 = arith.constant 0 : index
    %c0_409 = arith.constant 0 : index
    %263 = vector.load %arg16[%c0_408, %c0_409] : memref<18x72xf32, #tpu.memory_space<vmem>>, vector<3x8xf32>
    tpu.vector_store %arg16[%c0_408, %c0_409], %262 {strides = array<i32>} : memref<18x72xf32, #tpu.memory_space<vmem>>, vector<3x8xf32>,
    %c1_410 = arith.constant 1 : index
    %c0_411 = arith.constant 0 : index
    %264 = tpu.strided_load %arg15[%c1_410, %c0_411] {strides = array<i32: 2, 1>} : memref<98x8xf32, #tpu.memory_space<vmem>>, vector<3x8xf32>
    %c0_412 = arith.constant 0 : index
    %c8_413 = arith.constant 8 : index
    %265 = vector.load %arg16[%c0_412, %c8_413] : memref<18x72xf32, #tpu.memory_space<vmem>>, vector<3x8xf32>
    tpu.vector_store %arg16[%c0_412, %c8_413], %264 {strides = array<i32>} : memref<18x72xf32, #tpu.memory_space<vmem>>, vector<3x8xf32>,
    %c2_414 = arith.constant 2 : index
    %c0_415 = arith.constant 0 : index
    %266 = tpu.strided_load %arg15[%c2_414, %c0_415] {strides = array<i32: 2, 1>} : memref<98x8xf32, #tpu.memory_space<vmem>>, vector<3x8xf32>
    %c0_416 = arith.constant 0 : index
    %c16_417 = arith.constant 16 : index
    %267 = vector.load %arg16[%c0_416, %c16_417] : memref<18x72xf32, #tpu.memory_space<vmem>>, vector<3x8xf32>
    tpu.vector_store %arg16[%c0_416, %c16_417], %266 {strides = array<i32>} : memref<18x72xf32, #tpu.memory_space<vmem>>, vector<3x8xf32>,
    %c7_418 = arith.constant 7 : index
    %c0_419 = arith.constant 0 : index
    %268 = tpu.strided_load %arg15[%c7_418, %c0_419] {strides = array<i32: 2, 1>} : memref<98x8xf32, #tpu.memory_space<vmem>>, vector<3x8xf32>
    %c0_420 = arith.constant 0 : index
    %c24_421 = arith.constant 24 : index
    %269 = vector.load %arg16[%c0_420, %c24_421] : memref<18x72xf32, #tpu.memory_space<vmem>>, vector<3x8xf32>
    tpu.vector_store %arg16[%c0_420, %c24_421], %268 {strides = array<i32>} : memref<18x72xf32, #tpu.memory_space<vmem>>, vector<3x8xf32>,
    %c8_422 = arith.constant 8 : index
    %c0_423 = arith.constant 0 : index
    %270 = tpu.strided_load %arg15[%c8_422, %c0_423] {strides = array<i32: 2, 1>} : memref<98x8xf32, #tpu.memory_space<vmem>>, vector<3x8xf32>
    %c0_424 = arith.constant 0 : index
    %c32_425 = arith.constant 32 : index
    %271 = vector.load %arg16[%c0_424, %c32_425] : memref<18x72xf32, #tpu.memory_space<vmem>>, vector<3x8xf32>
    tpu.vector_store %arg16[%c0_424, %c32_425], %270 {strides = array<i32>} : memref<18x72xf32, #tpu.memory_space<vmem>>, vector<3x8xf32>,
    %c9 = arith.constant 9 : index
    %c0_426 = arith.constant 0 : index
    %272 = tpu.strided_load %arg15[%c9, %c0_426] {strides = array<i32: 2, 1>} : memref<98x8xf32, #tpu.memory_space<vmem>>, vector<3x8xf32>
    %c0_427 = arith.constant 0 : index
    %c40 = arith.constant 40 : index
    %273 = vector.load %arg16[%c0_427, %c40] : memref<18x72xf32, #tpu.memory_space<vmem>>, vector<3x8xf32>
    tpu.vector_store %arg16[%c0_427, %c40], %272 {strides = array<i32>} : memref<18x72xf32, #tpu.memory_space<vmem>>, vector<3x8xf32>,
    %c14_428 = arith.constant 14 : index
    %c0_429 = arith.constant 0 : index
    %274 = tpu.strided_load %arg15[%c14_428, %c0_429] {strides = array<i32: 2, 1>} : memref<98x8xf32, #tpu.memory_space<vmem>>, vector<3x8xf32>
    %c0_430 = arith.constant 0 : index
    %c48_431 = arith.constant 48 : index
    %275 = vector.load %arg16[%c0_430, %c48_431] : memref<18x72xf32, #tpu.memory_space<vmem>>, vector<3x8xf32>
    tpu.vector_store %arg16[%c0_430, %c48_431], %274 {strides = array<i32>} : memref<18x72xf32, #tpu.memory_space<vmem>>, vector<3x8xf32>,
    %c15 = arith.constant 15 : index
    %c0_432 = arith.constant 0 : index
    %276 = tpu.strided_load %arg15[%c15, %c0_432] {strides = array<i32: 2, 1>} : memref<98x8xf32, #tpu.memory_space<vmem>>, vector<3x8xf32>
    %c0_433 = arith.constant 0 : index
    %c56_434 = arith.constant 56 : index
    %277 = vector.load %arg16[%c0_433, %c56_434] : memref<18x72xf32, #tpu.memory_space<vmem>>, vector<3x8xf32>
    tpu.vector_store %arg16[%c0_433, %c56_434], %276 {strides = array<i32>} : memref<18x72xf32, #tpu.memory_space<vmem>>, vector<3x8xf32>,
    %c16_435 = arith.constant 16 : index
    %c0_436 = arith.constant 0 : index
    %278 = tpu.strided_load %arg15[%c16_435, %c0_436] {strides = array<i32: 2, 1>} : memref<98x8xf32, #tpu.memory_space<vmem>>, vector<3x8xf32>
    %c0_437 = arith.constant 0 : index
    %c64_438 = arith.constant 64 : index
    %279 = vector.load %arg16[%c0_437, %c64_438] : memref<18x72xf32, #tpu.memory_space<vmem>>, vector<3x8xf32>
    tpu.vector_store %arg16[%c0_437, %c64_438], %278 {strides = array<i32>} : memref<18x72xf32, #tpu.memory_space<vmem>>, vector<3x8xf32>,
    %c14_439 = arith.constant 14 : index
    %c0_440 = arith.constant 0 : index
    %280 = tpu.strided_load %arg15[%c14_439, %c0_440] {strides = array<i32: 2, 1>} : memref<98x8xf32, #tpu.memory_space<vmem>>, vector<3x8xf32>
    %c3 = arith.constant 3 : index
    %c0_441 = arith.constant 0 : index
    %281 = vector.load %arg16[%c3, %c0_441] : memref<18x72xf32, #tpu.memory_space<vmem>>, vector<3x8xf32>
    tpu.vector_store %arg16[%c3, %c0_441], %280 {strides = array<i32>} : memref<18x72xf32, #tpu.memory_space<vmem>>, vector<3x8xf32>,
    %c15_442 = arith.constant 15 : index
    %c0_443 = arith.constant 0 : index
    %282 = tpu.strided_load %arg15[%c15_442, %c0_443] {strides = array<i32: 2, 1>} : memref<98x8xf32, #tpu.memory_space<vmem>>, vector<3x8xf32>
    %c3_444 = arith.constant 3 : index
    %c8_445 = arith.constant 8 : index
    %283 = vector.load %arg16[%c3_444, %c8_445] : memref<18x72xf32, #tpu.memory_space<vmem>>, vector<3x8xf32>
    tpu.vector_store %arg16[%c3_444, %c8_445], %282 {strides = array<i32>} : memref<18x72xf32, #tpu.memory_space<vmem>>, vector<3x8xf32>,
    %c16_446 = arith.constant 16 : index
    %c0_447 = arith.constant 0 : index
    %284 = tpu.strided_load %arg15[%c16_446, %c0_447] {strides = array<i32: 2, 1>} : memref<98x8xf32, #tpu.memory_space<vmem>>, vector<3x8xf32>
    %c3_448 = arith.constant 3 : index
    %c16_449 = arith.constant 16 : index
    %285 = vector.load %arg16[%c3_448, %c16_449] : memref<18x72xf32, #tpu.memory_space<vmem>>, vector<3x8xf32>
    tpu.vector_store %arg16[%c3_448, %c16_449], %284 {strides = array<i32>} : memref<18x72xf32, #tpu.memory_space<vmem>>, vector<3x8xf32>,
    %c21_450 = arith.constant 21 : index
    %c0_451 = arith.constant 0 : index
    %286 = tpu.strided_load %arg15[%c21_450, %c0_451] {strides = array<i32: 2, 1>} : memref<98x8xf32, #tpu.memory_space<vmem>>, vector<3x8xf32>
    %c3_452 = arith.constant 3 : index
    %c24_453 = arith.constant 24 : index
    %287 = vector.load %arg16[%c3_452, %c24_453] : memref<18x72xf32, #tpu.memory_space<vmem>>, vector<3x8xf32>
    tpu.vector_store %arg16[%c3_452, %c24_453], %286 {strides = array<i32>} : memref<18x72xf32, #tpu.memory_space<vmem>>, vector<3x8xf32>,
    %c22 = arith.constant 22 : index
    %c0_454 = arith.constant 0 : index
    %288 = tpu.strided_load %arg15[%c22, %c0_454] {strides = array<i32: 2, 1>} : memref<98x8xf32, #tpu.memory_space<vmem>>, vector<3x8xf32>
    %c3_455 = arith.constant 3 : index
    %c32_456 = arith.constant 32 : index
    %289 = vector.load %arg16[%c3_455, %c32_456] : memref<18x72xf32, #tpu.memory_space<vmem>>, vector<3x8xf32>
    tpu.vector_store %arg16[%c3_455, %c32_456], %288 {strides = array<i32>} : memref<18x72xf32, #tpu.memory_space<vmem>>, vector<3x8xf32>,
    %c23 = arith.constant 23 : index
    %c0_457 = arith.constant 0 : index
    %290 = tpu.strided_load %arg15[%c23, %c0_457] {strides = array<i32: 2, 1>} : memref<98x8xf32, #tpu.memory_space<vmem>>, vector<3x8xf32>
    %c3_458 = arith.constant 3 : index
    %c40_459 = arith.constant 40 : index
    %291 = vector.load %arg16[%c3_458, %c40_459] : memref<18x72xf32, #tpu.memory_space<vmem>>, vector<3x8xf32>
    tpu.vector_store %arg16[%c3_458, %c40_459], %290 {strides = array<i32>} : memref<18x72xf32, #tpu.memory_space<vmem>>, vector<3x8xf32>,
    %c28_460 = arith.constant 28 : index
    %c0_461 = arith.constant 0 : index
    %292 = tpu.strided_load %arg15[%c28_460, %c0_461] {strides = array<i32: 2, 1>} : memref<98x8xf32, #tpu.memory_space<vmem>>, vector<3x8xf32>
    %c3_462 = arith.constant 3 : index
    %c48_463 = arith.constant 48 : index
    %293 = vector.load %arg16[%c3_462, %c48_463] : memref<18x72xf32, #tpu.memory_space<vmem>>, vector<3x8xf32>
    tpu.vector_store %arg16[%c3_462, %c48_463], %292 {strides = array<i32>} : memref<18x72xf32, #tpu.memory_space<vmem>>, vector<3x8xf32>,
    %c29 = arith.constant 29 : index
    %c0_464 = arith.constant 0 : index
    %294 = tpu.strided_load %arg15[%c29, %c0_464] {strides = array<i32: 2, 1>} : memref<98x8xf32, #tpu.memory_space<vmem>>, vector<3x8xf32>
    %c3_465 = arith.constant 3 : index
    %c56_466 = arith.constant 56 : index
    %295 = vector.load %arg16[%c3_465, %c56_466] : memref<18x72xf32, #tpu.memory_space<vmem>>, vector<3x8xf32>
    tpu.vector_store %arg16[%c3_465, %c56_466], %294 {strides = array<i32>} : memref<18x72xf32, #tpu.memory_space<vmem>>, vector<3x8xf32>,
    %c30 = arith.constant 30 : index
    %c0_467 = arith.constant 0 : index
    %296 = tpu.strided_load %arg15[%c30, %c0_467] {strides = array<i32: 2, 1>} : memref<98x8xf32, #tpu.memory_space<vmem>>, vector<3x8xf32>
    %c3_468 = arith.constant 3 : index
    %c64_469 = arith.constant 64 : index
    %297 = vector.load %arg16[%c3_468, %c64_469] : memref<18x72xf32, #tpu.memory_space<vmem>>, vector<3x8xf32>
    tpu.vector_store %arg16[%c3_468, %c64_469], %296 {strides = array<i32>} : memref<18x72xf32, #tpu.memory_space<vmem>>, vector<3x8xf32>,
    %c28_470 = arith.constant 28 : index
    %c0_471 = arith.constant 0 : index
    %298 = tpu.strided_load %arg15[%c28_470, %c0_471] {strides = array<i32: 2, 1>} : memref<98x8xf32, #tpu.memory_space<vmem>>, vector<3x8xf32>
    %c6 = arith.constant 6 : index
    %c0_472 = arith.constant 0 : index
    %299 = vector.load %arg16[%c6, %c0_472] : memref<18x72xf32, #tpu.memory_space<vmem>>, vector<3x8xf32>
    tpu.vector_store %arg16[%c6, %c0_472], %298 {strides = array<i32>} : memref<18x72xf32, #tpu.memory_space<vmem>>, vector<3x8xf32>,
    %c29_473 = arith.constant 29 : index
    %c0_474 = arith.constant 0 : index
    %300 = tpu.strided_load %arg15[%c29_473, %c0_474] {strides = array<i32: 2, 1>} : memref<98x8xf32, #tpu.memory_space<vmem>>, vector<3x8xf32>
    %c6_475 = arith.constant 6 : index
    %c8_476 = arith.constant 8 : index
    %301 = vector.load %arg16[%c6_475, %c8_476] : memref<18x72xf32, #tpu.memory_space<vmem>>, vector<3x8xf32>
    tpu.vector_store %arg16[%c6_475, %c8_476], %300 {strides = array<i32>} : memref<18x72xf32, #tpu.memory_space<vmem>>, vector<3x8xf32>,
    %c30_477 = arith.constant 30 : index
    %c0_478 = arith.constant 0 : index
    %302 = tpu.strided_load %arg15[%c30_477, %c0_478] {strides = array<i32: 2, 1>} : memref<98x8xf32, #tpu.memory_space<vmem>>, vector<3x8xf32>
    %c6_479 = arith.constant 6 : index
    %c16_480 = arith.constant 16 : index
    %303 = vector.load %arg16[%c6_479, %c16_480] : memref<18x72xf32, #tpu.memory_space<vmem>>, vector<3x8xf32>
    tpu.vector_store %arg16[%c6_479, %c16_480], %302 {strides = array<i32>} : memref<18x72xf32, #tpu.memory_space<vmem>>, vector<3x8xf32>,
    %c35_481 = arith.constant 35 : index
    %c0_482 = arith.constant 0 : index
    %304 = tpu.strided_load %arg15[%c35_481, %c0_482] {strides = array<i32: 2, 1>} : memref<98x8xf32, #tpu.memory_space<vmem>>, vector<3x8xf32>
    %c6_483 = arith.constant 6 : index
    %c24_484 = arith.constant 24 : index
    %305 = vector.load %arg16[%c6_483, %c24_484] : memref<18x72xf32, #tpu.memory_space<vmem>>, vector<3x8xf32>
    tpu.vector_store %arg16[%c6_483, %c24_484], %304 {strides = array<i32>} : memref<18x72xf32, #tpu.memory_space<vmem>>, vector<3x8xf32>,
    %c36 = arith.constant 36 : index
    %c0_485 = arith.constant 0 : index
    %306 = tpu.strided_load %arg15[%c36, %c0_485] {strides = array<i32: 2, 1>} : memref<98x8xf32, #tpu.memory_space<vmem>>, vector<3x8xf32>
    %c6_486 = arith.constant 6 : index
    %c32_487 = arith.constant 32 : index
    %307 = vector.load %arg16[%c6_486, %c32_487] : memref<18x72xf32, #tpu.memory_space<vmem>>, vector<3x8xf32>
    tpu.vector_store %arg16[%c6_486, %c32_487], %306 {strides = array<i32>} : memref<18x72xf32, #tpu.memory_space<vmem>>, vector<3x8xf32>,
    %c37 = arith.constant 37 : index
    %c0_488 = arith.constant 0 : index
    %308 = tpu.strided_load %arg15[%c37, %c0_488] {strides = array<i32: 2, 1>} : memref<98x8xf32, #tpu.memory_space<vmem>>, vector<3x8xf32>
    %c6_489 = arith.constant 6 : index
    %c40_490 = arith.constant 40 : index
    %309 = vector.load %arg16[%c6_489, %c40_490] : memref<18x72xf32, #tpu.memory_space<vmem>>, vector<3x8xf32>
    tpu.vector_store %arg16[%c6_489, %c40_490], %308 {strides = array<i32>} : memref<18x72xf32, #tpu.memory_space<vmem>>, vector<3x8xf32>,
    %c42_491 = arith.constant 42 : index
    %c0_492 = arith.constant 0 : index
    %310 = tpu.strided_load %arg15[%c42_491, %c0_492] {strides = array<i32: 2, 1>} : memref<98x8xf32, #tpu.memory_space<vmem>>, vector<3x8xf32>
    %c6_493 = arith.constant 6 : index
    %c48_494 = arith.constant 48 : index
    %311 = vector.load %arg16[%c6_493, %c48_494] : memref<18x72xf32, #tpu.memory_space<vmem>>, vector<3x8xf32>
    tpu.vector_store %arg16[%c6_493, %c48_494], %310 {strides = array<i32>} : memref<18x72xf32, #tpu.memory_space<vmem>>, vector<3x8xf32>,
    %c43 = arith.constant 43 : index
    %c0_495 = arith.constant 0 : index
    %312 = tpu.strided_load %arg15[%c43, %c0_495] {strides = array<i32: 2, 1>} : memref<98x8xf32, #tpu.memory_space<vmem>>, vector<3x8xf32>
    %c6_496 = arith.constant 6 : index
    %c56_497 = arith.constant 56 : index
    %313 = vector.load %arg16[%c6_496, %c56_497] : memref<18x72xf32, #tpu.memory_space<vmem>>, vector<3x8xf32>
    tpu.vector_store %arg16[%c6_496, %c56_497], %312 {strides = array<i32>} : memref<18x72xf32, #tpu.memory_space<vmem>>, vector<3x8xf32>,
    %c44 = arith.constant 44 : index
    %c0_498 = arith.constant 0 : index
    %314 = tpu.strided_load %arg15[%c44, %c0_498] {strides = array<i32: 2, 1>} : memref<98x8xf32, #tpu.memory_space<vmem>>, vector<3x8xf32>
    %c6_499 = arith.constant 6 : index
    %c64_500 = arith.constant 64 : index
    %315 = vector.load %arg16[%c6_499, %c64_500] : memref<18x72xf32, #tpu.memory_space<vmem>>, vector<3x8xf32>
    tpu.vector_store %arg16[%c6_499, %c64_500], %314 {strides = array<i32>} : memref<18x72xf32, #tpu.memory_space<vmem>>, vector<3x8xf32>,
    %c49_501 = arith.constant 49 : index
    %c0_502 = arith.constant 0 : index
    %316 = tpu.strided_load %arg15[%c49_501, %c0_502] {strides = array<i32: 2, 1>} : memref<98x8xf32, #tpu.memory_space<vmem>>, vector<3x8xf32>
    %c9_503 = arith.constant 9 : index
    %c0_504 = arith.constant 0 : index
    %317 = vector.load %arg16[%c9_503, %c0_504] : memref<18x72xf32, #tpu.memory_space<vmem>>, vector<3x8xf32>
    tpu.vector_store %arg16[%c9_503, %c0_504], %316 {strides = array<i32>} : memref<18x72xf32, #tpu.memory_space<vmem>>, vector<3x8xf32>,
    %c50_505 = arith.constant 50 : index
    %c0_506 = arith.constant 0 : index
    %318 = tpu.strided_load %arg15[%c50_505, %c0_506] {strides = array<i32: 2, 1>} : memref<98x8xf32, #tpu.memory_space<vmem>>, vector<3x8xf32>
    %c9_507 = arith.constant 9 : index
    %c8_508 = arith.constant 8 : index
    %319 = vector.load %arg16[%c9_507, %c8_508] : memref<18x72xf32, #tpu.memory_space<vmem>>, vector<3x8xf32>
    tpu.vector_store %arg16[%c9_507, %c8_508], %318 {strides = array<i32>} : memref<18x72xf32, #tpu.memory_space<vmem>>, vector<3x8xf32>,
    %c51 = arith.constant 51 : index
    %c0_509 = arith.constant 0 : index
    %320 = tpu.strided_load %arg15[%c51, %c0_509] {strides = array<i32: 2, 1>} : memref<98x8xf32, #tpu.memory_space<vmem>>, vector<3x8xf32>
    %c9_510 = arith.constant 9 : index
    %c16_511 = arith.constant 16 : index
    %321 = vector.load %arg16[%c9_510, %c16_511] : memref<18x72xf32, #tpu.memory_space<vmem>>, vector<3x8xf32>
    tpu.vector_store %arg16[%c9_510, %c16_511], %320 {strides = array<i32>} : memref<18x72xf32, #tpu.memory_space<vmem>>, vector<3x8xf32>,
    %c56_512 = arith.constant 56 : index
    %c0_513 = arith.constant 0 : index
    %322 = tpu.strided_load %arg15[%c56_512, %c0_513] {strides = array<i32: 2, 1>} : memref<98x8xf32, #tpu.memory_space<vmem>>, vector<3x8xf32>
    %c9_514 = arith.constant 9 : index
    %c24_515 = arith.constant 24 : index
    %323 = vector.load %arg16[%c9_514, %c24_515] : memref<18x72xf32, #tpu.memory_space<vmem>>, vector<3x8xf32>
    tpu.vector_store %arg16[%c9_514, %c24_515], %322 {strides = array<i32>} : memref<18x72xf32, #tpu.memory_space<vmem>>, vector<3x8xf32>,
    %c57 = arith.constant 57 : index
    %c0_516 = arith.constant 0 : index
    %324 = tpu.strided_load %arg15[%c57, %c0_516] {strides = array<i32: 2, 1>} : memref<98x8xf32, #tpu.memory_space<vmem>>, vector<3x8xf32>
    %c9_517 = arith.constant 9 : index
    %c32_518 = arith.constant 32 : index
    %325 = vector.load %arg16[%c9_517, %c32_518] : memref<18x72xf32, #tpu.memory_space<vmem>>, vector<3x8xf32>
    tpu.vector_store %arg16[%c9_517, %c32_518], %324 {strides = array<i32>} : memref<18x72xf32, #tpu.memory_space<vmem>>, vector<3x8xf32>,
    %c58 = arith.constant 58 : index
    %c0_519 = arith.constant 0 : index
    %326 = tpu.strided_load %arg15[%c58, %c0_519] {strides = array<i32: 2, 1>} : memref<98x8xf32, #tpu.memory_space<vmem>>, vector<3x8xf32>
    %c9_520 = arith.constant 9 : index
    %c40_521 = arith.constant 40 : index
    %327 = vector.load %arg16[%c9_520, %c40_521] : memref<18x72xf32, #tpu.memory_space<vmem>>, vector<3x8xf32>
    tpu.vector_store %arg16[%c9_520, %c40_521], %326 {strides = array<i32>} : memref<18x72xf32, #tpu.memory_space<vmem>>, vector<3x8xf32>,
    %c63_522 = arith.constant 63 : index
    %c0_523 = arith.constant 0 : index
    %328 = tpu.strided_load %arg15[%c63_522, %c0_523] {strides = array<i32: 2, 1>} : memref<98x8xf32, #tpu.memory_space<vmem>>, vector<3x8xf32>
    %c9_524 = arith.constant 9 : index
    %c48_525 = arith.constant 48 : index
    %329 = vector.load %arg16[%c9_524, %c48_525] : memref<18x72xf32, #tpu.memory_space<vmem>>, vector<3x8xf32>
    tpu.vector_store %arg16[%c9_524, %c48_525], %328 {strides = array<i32>} : memref<18x72xf32, #tpu.memory_space<vmem>>, vector<3x8xf32>,
    %c64_526 = arith.constant 64 : index
    %c0_527 = arith.constant 0 : index
    %330 = tpu.strided_load %arg15[%c64_526, %c0_527] {strides = array<i32: 2, 1>} : memref<98x8xf32, #tpu.memory_space<vmem>>, vector<3x8xf32>
    %c9_528 = arith.constant 9 : index
    %c56_529 = arith.constant 56 : index
    %331 = vector.load %arg16[%c9_528, %c56_529] : memref<18x72xf32, #tpu.memory_space<vmem>>, vector<3x8xf32>
    tpu.vector_store %arg16[%c9_528, %c56_529], %330 {strides = array<i32>} : memref<18x72xf32, #tpu.memory_space<vmem>>, vector<3x8xf32>,
    %c65_530 = arith.constant 65 : index
    %c0_531 = arith.constant 0 : index
    %332 = tpu.strided_load %arg15[%c65_530, %c0_531] {strides = array<i32: 2, 1>} : memref<98x8xf32, #tpu.memory_space<vmem>>, vector<3x8xf32>
    %c9_532 = arith.constant 9 : index
    %c64_533 = arith.constant 64 : index
    %333 = vector.load %arg16[%c9_532, %c64_533] : memref<18x72xf32, #tpu.memory_space<vmem>>, vector<3x8xf32>
    tpu.vector_store %arg16[%c9_532, %c64_533], %332 {strides = array<i32>} : memref<18x72xf32, #tpu.memory_space<vmem>>, vector<3x8xf32>,
    %c63_534 = arith.constant 63 : index
    %c0_535 = arith.constant 0 : index
    %334 = tpu.strided_load %arg15[%c63_534, %c0_535] {strides = array<i32: 2, 1>} : memref<98x8xf32, #tpu.memory_space<vmem>>, vector<3x8xf32>
    %c12_536 = arith.constant 12 : index
    %c0_537 = arith.constant 0 : index
    %335 = vector.load %arg16[%c12_536, %c0_537] : memref<18x72xf32, #tpu.memory_space<vmem>>, vector<3x8xf32>
    tpu.vector_store %arg16[%c12_536, %c0_537], %334 {strides = array<i32>} : memref<18x72xf32, #tpu.memory_space<vmem>>, vector<3x8xf32>,
    %c64_538 = arith.constant 64 : index
    %c0_539 = arith.constant 0 : index
    %336 = tpu.strided_load %arg15[%c64_538, %c0_539] {strides = array<i32: 2, 1>} : memref<98x8xf32, #tpu.memory_space<vmem>>, vector<3x8xf32>
    %c12_540 = arith.constant 12 : index
    %c8_541 = arith.constant 8 : index
    %337 = vector.load %arg16[%c12_540, %c8_541] : memref<18x72xf32, #tpu.memory_space<vmem>>, vector<3x8xf32>
    tpu.vector_store %arg16[%c12_540, %c8_541], %336 {strides = array<i32>} : memref<18x72xf32, #tpu.memory_space<vmem>>, vector<3x8xf32>,
    %c65_542 = arith.constant 65 : index
    %c0_543 = arith.constant 0 : index
    %338 = tpu.strided_load %arg15[%c65_542, %c0_543] {strides = array<i32: 2, 1>} : memref<98x8xf32, #tpu.memory_space<vmem>>, vector<3x8xf32>
    %c12_544 = arith.constant 12 : index
    %c16_545 = arith.constant 16 : index
    %339 = vector.load %arg16[%c12_544, %c16_545] : memref<18x72xf32, #tpu.memory_space<vmem>>, vector<3x8xf32>
    tpu.vector_store %arg16[%c12_544, %c16_545], %338 {strides = array<i32>} : memref<18x72xf32, #tpu.memory_space<vmem>>, vector<3x8xf32>,
    %c70_546 = arith.constant 70 : index
    %c0_547 = arith.constant 0 : index
    %340 = tpu.strided_load %arg15[%c70_546, %c0_547] {strides = array<i32: 2, 1>} : memref<98x8xf32, #tpu.memory_space<vmem>>, vector<3x8xf32>
    %c12_548 = arith.constant 12 : index
    %c24_549 = arith.constant 24 : index
    %341 = vector.load %arg16[%c12_548, %c24_549] : memref<18x72xf32, #tpu.memory_space<vmem>>, vector<3x8xf32>
    tpu.vector_store %arg16[%c12_548, %c24_549], %340 {strides = array<i32>} : memref<18x72xf32, #tpu.memory_space<vmem>>, vector<3x8xf32>,
    %c71 = arith.constant 71 : index
    %c0_550 = arith.constant 0 : index
    %342 = tpu.strided_load %arg15[%c71, %c0_550] {strides = array<i32: 2, 1>} : memref<98x8xf32, #tpu.memory_space<vmem>>, vector<3x8xf32>
    %c12_551 = arith.constant 12 : index
    %c32_552 = arith.constant 32 : index
    %343 = vector.load %arg16[%c12_551, %c32_552] : memref<18x72xf32, #tpu.memory_space<vmem>>, vector<3x8xf32>
    tpu.vector_store %arg16[%c12_551, %c32_552], %342 {strides = array<i32>} : memref<18x72xf32, #tpu.memory_space<vmem>>, vector<3x8xf32>,
    %c72 = arith.constant 72 : index
    %c0_553 = arith.constant 0 : index
    %344 = tpu.strided_load %arg15[%c72, %c0_553] {strides = array<i32: 2, 1>} : memref<98x8xf32, #tpu.memory_space<vmem>>, vector<3x8xf32>
    %c12_554 = arith.constant 12 : index
    %c40_555 = arith.constant 40 : index
    %345 = vector.load %arg16[%c12_554, %c40_555] : memref<18x72xf32, #tpu.memory_space<vmem>>, vector<3x8xf32>
    tpu.vector_store %arg16[%c12_554, %c40_555], %344 {strides = array<i32>} : memref<18x72xf32, #tpu.memory_space<vmem>>, vector<3x8xf32>,
    %c77_556 = arith.constant 77 : index
    %c0_557 = arith.constant 0 : index
    %346 = tpu.strided_load %arg15[%c77_556, %c0_557] {strides = array<i32: 2, 1>} : memref<98x8xf32, #tpu.memory_space<vmem>>, vector<3x8xf32>
    %c12_558 = arith.constant 12 : index
    %c48_559 = arith.constant 48 : index
    %347 = vector.load %arg16[%c12_558, %c48_559] : memref<18x72xf32, #tpu.memory_space<vmem>>, vector<3x8xf32>
    tpu.vector_store %arg16[%c12_558, %c48_559], %346 {strides = array<i32>} : memref<18x72xf32, #tpu.memory_space<vmem>>, vector<3x8xf32>,
    %c78 = arith.constant 78 : index
    %c0_560 = arith.constant 0 : index
    %348 = tpu.strided_load %arg15[%c78, %c0_560] {strides = array<i32: 2, 1>} : memref<98x8xf32, #tpu.memory_space<vmem>>, vector<3x8xf32>
    %c12_561 = arith.constant 12 : index
    %c56_562 = arith.constant 56 : index
    %349 = vector.load %arg16[%c12_561, %c56_562] : memref<18x72xf32, #tpu.memory_space<vmem>>, vector<3x8xf32>
    tpu.vector_store %arg16[%c12_561, %c56_562], %348 {strides = array<i32>} : memref<18x72xf32, #tpu.memory_space<vmem>>, vector<3x8xf32>,
    %c79 = arith.constant 79 : index
    %c0_563 = arith.constant 0 : index
    %350 = tpu.strided_load %arg15[%c79, %c0_563] {strides = array<i32: 2, 1>} : memref<98x8xf32, #tpu.memory_space<vmem>>, vector<3x8xf32>
    %c12_564 = arith.constant 12 : index
    %c64_565 = arith.constant 64 : index
    %351 = vector.load %arg16[%c12_564, %c64_565] : memref<18x72xf32, #tpu.memory_space<vmem>>, vector<3x8xf32>
    tpu.vector_store %arg16[%c12_564, %c64_565], %350 {strides = array<i32>} : memref<18x72xf32, #tpu.memory_space<vmem>>, vector<3x8xf32>,
    %c77_566 = arith.constant 77 : index
    %c0_567 = arith.constant 0 : index
    %352 = tpu.strided_load %arg15[%c77_566, %c0_567] {strides = array<i32: 2, 1>} : memref<98x8xf32, #tpu.memory_space<vmem>>, vector<3x8xf32>
    %c15_568 = arith.constant 15 : index
    %c0_569 = arith.constant 0 : index
    %353 = vector.load %arg16[%c15_568, %c0_569] : memref<18x72xf32, #tpu.memory_space<vmem>>, vector<3x8xf32>
    tpu.vector_store %arg16[%c15_568, %c0_569], %352 {strides = array<i32>} : memref<18x72xf32, #tpu.memory_space<vmem>>, vector<3x8xf32>,
    %c78_570 = arith.constant 78 : index
    %c0_571 = arith.constant 0 : index
    %354 = tpu.strided_load %arg15[%c78_570, %c0_571] {strides = array<i32: 2, 1>} : memref<98x8xf32, #tpu.memory_space<vmem>>, vector<3x8xf32>
    %c15_572 = arith.constant 15 : index
    %c8_573 = arith.constant 8 : index
    %355 = vector.load %arg16[%c15_572, %c8_573] : memref<18x72xf32, #tpu.memory_space<vmem>>, vector<3x8xf32>
    tpu.vector_store %arg16[%c15_572, %c8_573], %354 {strides = array<i32>} : memref<18x72xf32, #tpu.memory_space<vmem>>, vector<3x8xf32>,
    %c79_574 = arith.constant 79 : index
    %c0_575 = arith.constant 0 : index
    %356 = tpu.strided_load %arg15[%c79_574, %c0_575] {strides = array<i32: 2, 1>} : memref<98x8xf32, #tpu.memory_space<vmem>>, vector<3x8xf32>
    %c15_576 = arith.constant 15 : index
    %c16_577 = arith.constant 16 : index
    %357 = vector.load %arg16[%c15_576, %c16_577] : memref<18x72xf32, #tpu.memory_space<vmem>>, vector<3x8xf32>
    tpu.vector_store %arg16[%c15_576, %c16_577], %356 {strides = array<i32>} : memref<18x72xf32, #tpu.memory_space<vmem>>, vector<3x8xf32>,
    %c84_578 = arith.constant 84 : index
    %c0_579 = arith.constant 0 : index
    %358 = tpu.strided_load %arg15[%c84_578, %c0_579] {strides = array<i32: 2, 1>} : memref<98x8xf32, #tpu.memory_space<vmem>>, vector<3x8xf32>
    %c15_580 = arith.constant 15 : index
    %c24_581 = arith.constant 24 : index
    %359 = vector.load %arg16[%c15_580, %c24_581] : memref<18x72xf32, #tpu.memory_space<vmem>>, vector<3x8xf32>
    tpu.vector_store %arg16[%c15_580, %c24_581], %358 {strides = array<i32>} : memref<18x72xf32, #tpu.memory_space<vmem>>, vector<3x8xf32>,
    %c85 = arith.constant 85 : index
    %c0_582 = arith.constant 0 : index
    %360 = tpu.strided_load %arg15[%c85, %c0_582] {strides = array<i32: 2, 1>} : memref<98x8xf32, #tpu.memory_space<vmem>>, vector<3x8xf32>
    %c15_583 = arith.constant 15 : index
    %c32_584 = arith.constant 32 : index
    %361 = vector.load %arg16[%c15_583, %c32_584] : memref<18x72xf32, #tpu.memory_space<vmem>>, vector<3x8xf32>
    tpu.vector_store %arg16[%c15_583, %c32_584], %360 {strides = array<i32>} : memref<18x72xf32, #tpu.memory_space<vmem>>, vector<3x8xf32>,
    %c86 = arith.constant 86 : index
    %c0_585 = arith.constant 0 : index
    %362 = tpu.strided_load %arg15[%c86, %c0_585] {strides = array<i32: 2, 1>} : memref<98x8xf32, #tpu.memory_space<vmem>>, vector<3x8xf32>
    %c15_586 = arith.constant 15 : index
    %c40_587 = arith.constant 40 : index
    %363 = vector.load %arg16[%c15_586, %c40_587] : memref<18x72xf32, #tpu.memory_space<vmem>>, vector<3x8xf32>
    tpu.vector_store %arg16[%c15_586, %c40_587], %362 {strides = array<i32>} : memref<18x72xf32, #tpu.memory_space<vmem>>, vector<3x8xf32>,
    %c91_588 = arith.constant 91 : index
    %c0_589 = arith.constant 0 : index
    %364 = tpu.strided_load %arg15[%c91_588, %c0_589] {strides = array<i32: 2, 1>} : memref<98x8xf32, #tpu.memory_space<vmem>>, vector<3x8xf32>
    %c15_590 = arith.constant 15 : index
    %c48_591 = arith.constant 48 : index
    %365 = vector.load %arg16[%c15_590, %c48_591] : memref<18x72xf32, #tpu.memory_space<vmem>>, vector<3x8xf32>
    tpu.vector_store %arg16[%c15_590, %c48_591], %364 {strides = array<i32>} : memref<18x72xf32, #tpu.memory_space<vmem>>, vector<3x8xf32>,
    %c92 = arith.constant 92 : index
    %c0_592 = arith.constant 0 : index
    %366 = tpu.strided_load %arg15[%c92, %c0_592] {strides = array<i32: 2, 1>} : memref<98x8xf32, #tpu.memory_space<vmem>>, vector<3x8xf32>
    %c15_593 = arith.constant 15 : index
    %c56_594 = arith.constant 56 : index
    %367 = vector.load %arg16[%c15_593, %c56_594] : memref<18x72xf32, #tpu.memory_space<vmem>>, vector<3x8xf32>
    tpu.vector_store %arg16[%c15_593, %c56_594], %366 {strides = array<i32>} : memref<18x72xf32, #tpu.memory_space<vmem>>, vector<3x8xf32>,
    %c93 = arith.constant 93 : index
    %c0_595 = arith.constant 0 : index
    %368 = tpu.strided_load %arg15[%c93, %c0_595] {strides = array<i32: 2, 1>} : memref<98x8xf32, #tpu.memory_space<vmem>>, vector<3x8xf32>
    %c15_596 = arith.constant 15 : index
    %c64_597 = arith.constant 64 : index
    %369 = vector.load %arg16[%c15_596, %c64_597] : memref<18x72xf32, #tpu.memory_space<vmem>>, vector<3x8xf32>
    tpu.vector_store %arg16[%c15_596, %c64_597], %368 {strides = array<i32>} : memref<18x72xf32, #tpu.memory_space<vmem>>, vector<3x8xf32>,
    %c0_598 = arith.constant 0 : index
    %c0_599 = arith.constant 0 : index
    %370 = vector.load %arg16[%c0_598, %c0_599] : memref<18x72xf32, #tpu.memory_space<vmem>>, vector<18x72xf32>
    %c0_600 = arith.constant 0 : index
    %c0_601 = arith.constant 0 : index
    %371 = vector.load %arg5[%c0_600, %c0_601] : memref<72x16xbf16, #tpu.memory_space<vmem>>, vector<72x16xbf16>
    %372 = arith.extf %371 : vector<72x16xbf16> to vector<72x16xf32>
    %cst_602 = arith.constant dense<0.000000e+00> : vector<18x16xf32>
    %373 = tpu.matmul %370, %372, %cst_602 {dimension_numbers = #tpu.dot_dimension_numbers<[1], [0], [0], [1], [0, 0, 1, 1], [], []>} : vector<18x72xf32>, vector<72x16xf32>, vector<18x16xf32> -> vector<18x16xf32>
    %c0_603 = arith.constant 0 : index
    %c0_604 = arith.constant 0 : index
    %374 = vector.load %arg6[%c0_603, %c0_604] : memref<1x16xf32, #tpu.memory_space<vmem>>, vector<1x16xf32>
    %375 = vector.broadcast %374 : vector<1x16xf32> to vector<18x16xf32>
    %376 = arith.addf %373, %375 : vector<18x16xf32>
    %cst_605 = arith.constant 0.000000e+00 : f32
    %377 = vector.broadcast %cst_605 : f32 to vector<18x16xf32>
    %378 = arith.maximumf %376, %377 : vector<18x16xf32>
    %c0_606 = arith.constant 0 : index
    %c0_607 = arith.constant 0 : index
    %379 = vector.load %arg17[%c0_606, %c0_607] : memref<18x16xf32, #tpu.memory_space<vmem>>, vector<18x16xf32>
    tpu.vector_store %arg17[%c0_606, %c0_607], %378 {strides = array<i32>} : memref<18x16xf32, #tpu.memory_space<vmem>>, vector<18x16xf32>,
    %c0_608 = arith.constant 0 : index
    %c0_609 = arith.constant 0 : index
    %380 = tpu.strided_load %arg17[%c0_608, %c0_609] {strides = array<i32: 9, 1>} : memref<18x16xf32, #tpu.memory_space<vmem>>, vector<2x16xf32>
    %c0_610 = arith.constant 0 : index
    %c0_611 = arith.constant 0 : index
    %381 = vector.load %arg18[%c0_610, %c0_611] : memref<2x144xf32, #tpu.memory_space<vmem>>, vector<2x16xf32>
    tpu.vector_store %arg18[%c0_610, %c0_611], %380 {strides = array<i32>} : memref<2x144xf32, #tpu.memory_space<vmem>>, vector<2x16xf32>,
    %c1_612 = arith.constant 1 : index
    %c0_613 = arith.constant 0 : index
    %382 = tpu.strided_load %arg17[%c1_612, %c0_613] {strides = array<i32: 9, 1>} : memref<18x16xf32, #tpu.memory_space<vmem>>, vector<2x16xf32>
    %c0_614 = arith.constant 0 : index
    %c16_615 = arith.constant 16 : index
    %383 = vector.load %arg18[%c0_614, %c16_615] : memref<2x144xf32, #tpu.memory_space<vmem>>, vector<2x16xf32>
    tpu.vector_store %arg18[%c0_614, %c16_615], %382 {strides = array<i32>} : memref<2x144xf32, #tpu.memory_space<vmem>>, vector<2x16xf32>,
    %c2_616 = arith.constant 2 : index
    %c0_617 = arith.constant 0 : index
    %384 = tpu.strided_load %arg17[%c2_616, %c0_617] {strides = array<i32: 9, 1>} : memref<18x16xf32, #tpu.memory_space<vmem>>, vector<2x16xf32>
    %c0_618 = arith.constant 0 : index
    %c32_619 = arith.constant 32 : index
    %385 = vector.load %arg18[%c0_618, %c32_619] : memref<2x144xf32, #tpu.memory_space<vmem>>, vector<2x16xf32>
    tpu.vector_store %arg18[%c0_618, %c32_619], %384 {strides = array<i32>} : memref<2x144xf32, #tpu.memory_space<vmem>>, vector<2x16xf32>,
    %c3_620 = arith.constant 3 : index
    %c0_621 = arith.constant 0 : index
    %386 = tpu.strided_load %arg17[%c3_620, %c0_621] {strides = array<i32: 9, 1>} : memref<18x16xf32, #tpu.memory_space<vmem>>, vector<2x16xf32>
    %c0_622 = arith.constant 0 : index
    %c48_623 = arith.constant 48 : index
    %387 = vector.load %arg18[%c0_622, %c48_623] : memref<2x144xf32, #tpu.memory_space<vmem>>, vector<2x16xf32>
    tpu.vector_store %arg18[%c0_622, %c48_623], %386 {strides = array<i32>} : memref<2x144xf32, #tpu.memory_space<vmem>>, vector<2x16xf32>,
    %c4_624 = arith.constant 4 : index
    %c0_625 = arith.constant 0 : index
    %388 = tpu.strided_load %arg17[%c4_624, %c0_625] {strides = array<i32: 9, 1>} : memref<18x16xf32, #tpu.memory_space<vmem>>, vector<2x16xf32>
    %c0_626 = arith.constant 0 : index
    %c64_627 = arith.constant 64 : index
    %389 = vector.load %arg18[%c0_626, %c64_627] : memref<2x144xf32, #tpu.memory_space<vmem>>, vector<2x16xf32>
    tpu.vector_store %arg18[%c0_626, %c64_627], %388 {strides = array<i32>} : memref<2x144xf32, #tpu.memory_space<vmem>>, vector<2x16xf32>,
    %c5 = arith.constant 5 : index
    %c0_628 = arith.constant 0 : index
    %390 = tpu.strided_load %arg17[%c5, %c0_628] {strides = array<i32: 9, 1>} : memref<18x16xf32, #tpu.memory_space<vmem>>, vector<2x16xf32>
    %c0_629 = arith.constant 0 : index
    %c80_630 = arith.constant 80 : index
    %391 = vector.load %arg18[%c0_629, %c80_630] : memref<2x144xf32, #tpu.memory_space<vmem>>, vector<2x16xf32>
    tpu.vector_store %arg18[%c0_629, %c80_630], %390 {strides = array<i32>} : memref<2x144xf32, #tpu.memory_space<vmem>>, vector<2x16xf32>,
    %c6_631 = arith.constant 6 : index
    %c0_632 = arith.constant 0 : index
    %392 = tpu.strided_load %arg17[%c6_631, %c0_632] {strides = array<i32: 9, 1>} : memref<18x16xf32, #tpu.memory_space<vmem>>, vector<2x16xf32>
    %c0_633 = arith.constant 0 : index
    %c96_634 = arith.constant 96 : index
    %393 = vector.load %arg18[%c0_633, %c96_634] : memref<2x144xf32, #tpu.memory_space<vmem>>, vector<2x16xf32>
    tpu.vector_store %arg18[%c0_633, %c96_634], %392 {strides = array<i32>} : memref<2x144xf32, #tpu.memory_space<vmem>>, vector<2x16xf32>,
    %c7_635 = arith.constant 7 : index
    %c0_636 = arith.constant 0 : index
    %394 = tpu.strided_load %arg17[%c7_635, %c0_636] {strides = array<i32: 9, 1>} : memref<18x16xf32, #tpu.memory_space<vmem>>, vector<2x16xf32>
    %c0_637 = arith.constant 0 : index
    %c112_638 = arith.constant 112 : index
    %395 = vector.load %arg18[%c0_637, %c112_638] : memref<2x144xf32, #tpu.memory_space<vmem>>, vector<2x16xf32>
    tpu.vector_store %arg18[%c0_637, %c112_638], %394 {strides = array<i32>} : memref<2x144xf32, #tpu.memory_space<vmem>>, vector<2x16xf32>,
    %c8_639 = arith.constant 8 : index
    %c0_640 = arith.constant 0 : index
    %396 = tpu.strided_load %arg17[%c8_639, %c0_640] {strides = array<i32: 9, 1>} : memref<18x16xf32, #tpu.memory_space<vmem>>, vector<2x16xf32>
    %c0_641 = arith.constant 0 : index
    %c128_642 = arith.constant 128 : index
    %397 = vector.load %arg18[%c0_641, %c128_642] : memref<2x144xf32, #tpu.memory_space<vmem>>, vector<2x16xf32>
    tpu.vector_store %arg18[%c0_641, %c128_642], %396 {strides = array<i32>} : memref<2x144xf32, #tpu.memory_space<vmem>>, vector<2x16xf32>,
    %c0_643 = arith.constant 0 : index
    %c0_644 = arith.constant 0 : index
    %398 = vector.load %arg18[%c0_643, %c0_644] : memref<2x144xf32, #tpu.memory_space<vmem>>, vector<2x144xf32>
    %c0_645 = arith.constant 0 : index
    %c0_646 = arith.constant 0 : index
    %399 = vector.load %arg7[%c0_645, %c0_646] : memref<144x32xbf16, #tpu.memory_space<vmem>>, vector<144x32xbf16>
    %400 = arith.extf %399 : vector<144x32xbf16> to vector<144x32xf32>
    %cst_647 = arith.constant dense<0.000000e+00> : vector<2x32xf32>
    %401 = tpu.matmul %398, %400, %cst_647 {dimension_numbers = #tpu.dot_dimension_numbers<[1], [0], [0], [1], [0, 0, 1, 1], [], []>} : vector<2x144xf32>, vector<144x32xf32>, vector<2x32xf32> -> vector<2x32xf32>
    %c0_648 = arith.constant 0 : index
    %c0_649 = arith.constant 0 : index
    %402 = vector.load %arg8[%c0_648, %c0_649] : memref<1x32xf32, #tpu.memory_space<vmem>>, vector<1x32xf32>
    %403 = vector.broadcast %402 : vector<1x32xf32> to vector<2x32xf32>
    %404 = arith.addf %401, %403 : vector<2x32xf32>
    %cst_650 = arith.constant 0.000000e+00 : f32
    %405 = vector.broadcast %cst_650 : f32 to vector<2x32xf32>
    %406 = arith.maximumf %404, %405 : vector<2x32xf32>
    %c0_651 = arith.constant 0 : index
    %c0_652 = arith.constant 0 : index
    %407 = vector.load %arg9[%c0_651, %c0_652] : memref<32x32xbf16, #tpu.memory_space<vmem>>, vector<32x32xbf16>
    %408 = arith.extf %407 : vector<32x32xbf16> to vector<32x32xf32>
    %cst_653 = arith.constant dense<0.000000e+00> : vector<2x32xf32>
    %409 = tpu.matmul %406, %408, %cst_653 {dimension_numbers = #tpu.dot_dimension_numbers<[1], [0], [0], [1], [0, 0, 1, 1], [], []>} : vector<2x32xf32>, vector<32x32xf32>, vector<2x32xf32> -> vector<2x32xf32>
    %c0_654 = arith.constant 0 : index
    %c0_655 = arith.constant 0 : index
    %410 = vector.load %arg10[%c0_654, %c0_655] : memref<1x32xf32, #tpu.memory_space<vmem>>, vector<1x32xf32>
    %411 = vector.broadcast %410 : vector<1x32xf32> to vector<2x32xf32>
    %412 = arith.addf %409, %411 : vector<2x32xf32>
    %cst_656 = arith.constant 0.000000e+00 : f32
    %413 = vector.broadcast %cst_656 : f32 to vector<2x32xf32>
    %414 = arith.maximumf %412, %413 : vector<2x32xf32>
    %c0_657 = arith.constant 0 : index
    %c0_658 = arith.constant 0 : index
    %c0_659 = arith.constant 0 : index
    %415 = vector.load %arg11[%c0_657, %c0_658, %c0_659] : memref<1x32x128xbf16, #tpu.memory_space<vmem>>, vector<1x32x128xbf16>
    %416 = vector.shape_cast %415 : vector<1x32x128xbf16> to vector<32x128xbf16>
    %417 = arith.extf %416 : vector<32x128xbf16> to vector<32x128xf32>
    %cst_660 = arith.constant dense<0.000000e+00> : vector<2x128xf32>
    %418 = tpu.matmul %414, %417, %cst_660 {dimension_numbers = #tpu.dot_dimension_numbers<[1], [0], [0], [1], [0, 0, 1, 1], [], []>} : vector<2x32xf32>, vector<32x128xf32>, vector<2x128xf32> -> vector<2x128xf32>
    %c0_661 = arith.constant 0 : index
    %c0_662 = arith.constant 0 : index
    %c0_663 = arith.constant 0 : index
    %419 = vector.load %arg12[%c0_661, %c0_662, %c0_663] : memref<1x1x128xf32, #tpu.memory_space<vmem>>, vector<1x1x128xf32>
    %420 = vector.shape_cast %419 : vector<1x1x128xf32> to vector<1x128xf32>
    %421 = vector.broadcast %420 : vector<1x128xf32> to vector<2x128xf32>
    %422 = arith.addf %418, %421 : vector<2x128xf32>
    %c0_664 = arith.constant 0 : index
    %c0_665 = arith.constant 0 : index
    %423 = vector.load %arg13[%c0_664, %c0_665] : memref<2x128xf32, #tpu.memory_space<vmem>>, vector<2x128xf32>
    tpu.vector_store %arg13[%c0_664, %c0_665], %422 {strides = array<i32>} : memref<2x128xf32, #tpu.memory_space<vmem>>, vector<2x128xf32>,
    return
  }
  func.func @transform_0(%arg0: i32, %arg1: memref<1xi32, #tpu.memory_space<smem>>) -> (i32, i32) {
    %c0_i32 = arith.constant 0 : i32
    %c0_i32_0 = arith.constant 0 : i32
    return %arg0, %c0_i32 : i32, i32
  }
  func.func @transform_1(%arg0: i32, %arg1: memref<1xi32, #tpu.memory_space<smem>>) -> (i32, i32) {
    %c0_i32 = arith.constant 0 : i32
    %c0_i32_0 = arith.constant 0 : i32
    %c0_i32_1 = arith.constant 0 : i32
    return %c0_i32, %c0_i32_0 : i32, i32
  }
  func.func @transform_2(%arg0: i32, %arg1: memref<1xi32, #tpu.memory_space<smem>>) -> (i32, i32) {
    %c0_i32 = arith.constant 0 : i32
    %c0_i32_0 = arith.constant 0 : i32
    %c0_i32_1 = arith.constant 0 : i32
    return %c0_i32, %c0_i32_0 : i32, i32
  }
  func.func @transform_3(%arg0: i32, %arg1: memref<1xi32, #tpu.memory_space<smem>>) -> (i32, i32) {
    %c0_i32 = arith.constant 0 : i32
    %c0_i32_0 = arith.constant 0 : i32
    %c0_i32_1 = arith.constant 0 : i32
    return %c0_i32, %c0_i32_0 : i32, i32
  }
  func.func @transform_4(%arg0: i32, %arg1: memref<1xi32, #tpu.memory_space<smem>>) -> (i32, i32) {
    %c0_i32 = arith.constant 0 : i32
    %c0_i32_0 = arith.constant 0 : i32
    %c0_i32_1 = arith.constant 0 : i32
    return %c0_i32, %c0_i32_0 : i32, i32
  }
  func.func @transform_5(%arg0: i32, %arg1: memref<1xi32, #tpu.memory_space<smem>>) -> (i32, i32) {
    %c0_i32 = arith.constant 0 : i32
    %c0_i32_0 = arith.constant 0 : i32
    %c0_i32_1 = arith.constant 0 : i32
    return %c0_i32, %c0_i32_0 : i32, i32
  }
  func.func @transform_6(%arg0: i32, %arg1: memref<1xi32, #tpu.memory_space<smem>>) -> (i32, i32) {
    %c0_i32 = arith.constant 0 : i32
    %c0_i32_0 = arith.constant 0 : i32
    %c0_i32_1 = arith.constant 0 : i32
    return %c0_i32, %c0_i32_0 : i32, i32
  }
  func.func @transform_7(%arg0: i32, %arg1: memref<1xi32, #tpu.memory_space<smem>>) -> (i32, i32) {
    %c0_i32 = arith.constant 0 : i32
    %c0_i32_0 = arith.constant 0 : i32
    %c0_i32_1 = arith.constant 0 : i32
    return %c0_i32, %c0_i32_0 : i32, i32
  }
  func.func @transform_8(%arg0: i32, %arg1: memref<1xi32, #tpu.memory_space<smem>>) -> (i32, i32) {
    %c0_i32 = arith.constant 0 : i32
    %c0_i32_0 = arith.constant 0 : i32
    %c0_i32_1 = arith.constant 0 : i32
    return %c0_i32, %c0_i32_0 : i32, i32
  }
  func.func @transform_9(%arg0: i32, %arg1: memref<1xi32, #tpu.memory_space<smem>>) -> (i32, i32, i32) {
    %c0 = arith.constant 0 : index
    %0 = memref.load %arg1[%c0] : memref<1xi32, #tpu.memory_space<smem>>
    %c0_i32 = arith.constant 0 : i32
    %c0_i32_0 = arith.constant 0 : i32
    %c0_i32_1 = arith.constant 0 : i32
    return %0, %c0_i32, %c0_i32_0 : i32, i32, i32
  }
  func.func @transform_10(%arg0: i32, %arg1: memref<1xi32, #tpu.memory_space<smem>>) -> (i32, i32, i32) {
    %c0 = arith.constant 0 : index
    %0 = memref.load %arg1[%c0] : memref<1xi32, #tpu.memory_space<smem>>
    %c0_i32 = arith.constant 0 : i32
    %c0_i32_0 = arith.constant 0 : i32
    %c0_i32_1 = arith.constant 0 : i32
    return %0, %c0_i32, %c0_i32_0 : i32, i32, i32
  }
  func.func @transform_11(%arg0: i32, %arg1: memref<1xi32, #tpu.memory_space<smem>>) -> (i32, i32) {
    %c0_i32 = arith.constant 0 : i32
    %c0_i32_0 = arith.constant 0 : i32
    return %arg0, %c0_i32 : i32, i32
  }
}

</mosaic_0001>

<bundles_post_ra>
// kernel: _run.1
= control target key start
LH: loop header
LB: loop body
LE: loop exit
PB: predicated region body
PF: predicated region fallthrough
CT: control target
= control target key end

     0   :  { %s2503_s23 = smov 8   ;;  %s2504_s26 = smov 4   ;;  %vm76_vm0 = vcmask 30720   ;;  %v2511_v25 = vmov 0.0|0.0   ;;  %vm2512_vm1 = vmmov 0   ;;  %v2513_v35 = vmov 0.0   ;;  %s3509_s0 = inlined_call_operand.<no memory space> [shape: s32[1], index: 0, kind: input, shape index: {}]   ;;  %s3510_s1 = inlined_call_operand.vmem [shape: f32[512,4], index: 1, kind: input, shape index: {}]   ;;  %s3511_s2 = inlined_call_operand.vmem [shape: bf16[36,8], index: 2, kind: input, shape index: {}]   ;;  %s3512_s3 = inlined_call_operand.vmem [shape: f32[1,8], index: 3, kind: input, shape index: {}]   ;;  %s3513_s4 = inlined_call_operand.vmem [shape: bf16[72,16], index: 4, kind: input, shape index: {}]   ;;  %s3514_s5 = inlined_call_operand.vmem [shape: f32[1,16], index: 5, kind: input, shape index: {}]   ;;  %s3515_s6 = inlined_call_operand.vmem [shape: bf16[144,32], index: 6, kind: input, shape index: {}]   ;;  %s3516_s7 = inlined_call_operand.vmem [shape: f32[1,32], index: 7, kind: input, shape index: {}]   ;;  %s3517_s8 = inlined_call_operand.vmem [shape: bf16[32,32], index: 8, kind: input, shape index: {}]   ;;  %s3518_s9 = inlined_call_operand.vmem [shape: f32[1,32], index: 9, kind: input, shape index: {}]   ;;  %s3519_s10 = inlined_call_operand.vmem [shape: bf16[3,32,128], index: 10, kind: input, shape index: {}]   ;;  %s3520_s11 = inlined_call_operand.vmem [shape: f32[3,1,128], index: 11, kind: input, shape index: {}]   ;;  %s3521_s12 = inlined_call_operand.hbm [shape: f32[2,128], index: 12, kind: output, shape index: {}]  }
   0x1   :  { %v2023_v0 = vld [vmem:[%s3510_s1 + $0x2] ss:$2 sm:$0x7f]  ;;  %v2022_v1 = vld [vmem:[%s3510_s1 + $0x1] ss:$2 sm:$0x7f]  ;;  %2402 = vmatprep.subr.bf16.mxu0 %v2511_v25  ;;  %2408 = vmatprep.subr.bf16.mxu1 %v2511_v25 }
   0x2   :  { %89 = vrot.lane.b32.xlu1 %v2023_v0, %s2503_s23  ;;  %81 = vrot.lane.b32.xlu0 %v2022_v1, %s2504_s26  ;;  %v2032_v2 = vld [vmem:[%s3510_s1 + $0x22] ss:$2 sm:$0x7f]  ;;  %v2031_v3 = vld [vmem:[%s3510_s1 + $0x21] ss:$2 sm:$0x7f] }
   0x3   :  { %v2033_v4 = vld [vmem:[%s3510_s1 + $0x30] ss:$2 sm:$0x7f]  ;;  %s2505_s17 = smov 12   ;;  %s2506_s22 = smov 16   ;;  %v2175_v27 = vld [vmem:[%s3511_s2] sm:$0xff]   ;;  %2314 = vmatprep.mubr.msk.f32.mxu0 %vm2512_vm1, %v2513_v35  ;;  %2371 = vmatprep.mubr.msk.f32.mxu1 %vm2512_vm1, %v2513_v35 }
   0x4   :  { %v2024_v5 = vld [vmem:[%s3510_s1 + $0x10] ss:$2 sm:$0x7f]  ;;  %v2034_v6 = vld [vmem:[%s3510_s1 + $0x31] ss:$2 sm:$0x7f]  ;;  %2404 = vmatpush3.bf16.msra.mxu0 %v2175_v27 }
   0x5   :  { %v2025_v7 = vld [vmem:[%s3510_s1 + $0x11] ss:$2 sm:$0x7f]  ;;  %v2035_v8 = vld [vmem:[%s3510_s1 + $0x32] ss:$2 sm:$0x7f]  ;;  %2405 = vmatprep.subr.bf16.mxu0 %v2511_v25 }
   0x6   :  { %152 = vrot.lane.b32.xlu1 %v2032_v2, %s2503_s23  ;;  %146 = vrot.lane.b32.xlu0 %v2031_v3, %s2504_s26  ;;  %v2026_v9 = vld [vmem:[%s3510_s1 + $0x12] ss:$2 sm:$0x7f]  ;;  %s2507_s29 = smov 20   ;;  %s2508_s16 = smov 24   ;;  %v2250_v29 = vld [vmem:[%s3511_s2 + $0x8] sm:$0xff]  }
   0x7   :  { %v2027_v10 = vld [vmem:[%s3510_s1 + $0x20] ss:$2 sm:$0x7f]  ;;  %v2040_v11 = vld [vmem:[%s3510_s1 + $0x41] ss:$2 sm:$0x7f] }
   0x8   :  { %v2041_v12 = vld [vmem:[%s3510_s1 + $0x42] ss:$2 sm:$0x7f]  ;;  %v2037_v14 = vld [vmem:[%s3510_s1 + $0x41] ss:$2 sm:$0x7f]  ;;  %2407 = vmatpush3.bf16.msra.mxu0 %v2250_v29 }
   0x9   :  { %v2036_v13 = vld [vmem:[%s3510_s1 + $0x40] ss:$2 sm:$0x7f]  ;;  %v2028_v15 = vld [vmem:[%s3510_s1 + $0x21] ss:$2 sm:$0x7f]  ;;  %2312 = vmatprep.subr.mxu0 %v2513_v35 }
   0xa   :  { %159 = vrot.lane.b32.xlu1 %v2033_v4, %s2505_s17  ;;  %97 = vrot.lane.b32.xlu0 %v2024_v5, %s2505_s17  ;;  %s2509_s30 = smov 28   ;;  %v2029_v16 = vld [vmem:[%s3510_s1 + $0x22] ss:$2 sm:$0x7f]  ;;  %s2510_s25 = smov 32   ;;  %vm943_vm2 = vcmask 1043456  }
   0xb   :  { %v2042_v17 = vld [vmem:[%s3510_s1 + $0x50] ss:$2 sm:$0x7f]  ;;  %v75_v18 = vld [vmem:[%s3510_s1] ss:$2 sm:$0x7f] }
   0xc   :  { %77 = vst.msk [vmem:[#allocation2] sm:$0x7f] %vm76_vm0, %v75_v18  ;;  %v2030_v19 = vld [vmem:[%s3510_s1 + $0x20] ss:$2 sm:$0x7f] }
   0xd   :  { %143 = vst.msk [vmem:[#allocation2 + $0x7] sm:$0x7f] %vm76_vm0, %v2030_v19  ;;  %v2043_v20 = vld [vmem:[%s3510_s1 + $0x51] ss:$2 sm:$0x7f] }
   0xe   :  { %166 = vrot.lane.b32.xlu1 %v2034_v6, %s2506_s22  ;;  %105 = vrot.lane.b32.xlu0 %v2025_v7, %s2506_s22  ;;  %v2038_v21 = vld [vmem:[%s3510_s1 + $0x42] ss:$2 sm:$0x7f]  ;;  %v2049_v23 = vld [vmem:[%s3510_s1 + $0x61] ss:$2 sm:$0x7f] }
   0xf   :  { %v2039_v22 = vld [vmem:[%s3510_s1 + $0x40] ss:$2 sm:$0x7f]  ;;  %v2044_v24 = vld [vmem:[%s3510_s1 + $0x52] ss:$2 sm:$0x7f] }
  0x10   :  { %199 = vst.msk [vmem:[#allocation2 + $0xe] sm:$0x7f] %vm76_vm0, %v2039_v22  ;;  %v2050_v26 = vld [vmem:[%s3510_s1 + $0x62] ss:$2 sm:$0x7f] }
  0x11   :  { %v2045_v28 = vld [vmem:[%s3510_s1 + $0x60] ss:$2 sm:$0x7f]  ;;  %v890_v31 = vld [vmem:[%s3511_s2 + $0x10] sm:$0x3] }
  0x12   :  { %173 = vrot.lane.b32.xlu1 %v2035_v8, %s2507_s29  ;;  %113 = vrot.lane.b32.xlu0 %v2026_v9, %s2507_s29  ;;  %v2048_v30 = vld [vmem:[%s3510_s1 + $0x60] ss:$2 sm:$0x7f]  ;;  %v2051_v32 = vld [vmem:[%s3510_s1 + $0x70] ss:$2 sm:$0x7f]  ;;  %v895_v34 = vunpack.c.l.bf16 %v890_v31 }
  0x13   :  { %255 = vst.msk [vmem:[#allocation2 + $0x15] sm:$0x7f] %vm76_vm0, %v2048_v30  ;;  %v2046_v33 = vld [vmem:[%s3510_s1 + $0x61] ss:$2 sm:$0x7f] }
  0x14   :  { %v2057_v36 = vld [vmem:[%s3510_s1 + $0x80] ss:$2 sm:$0x7f]  ;;  %v2052_v37 = vld [vmem:[%s3510_s1 + $0x71] ss:$2 sm:$0x7f]  ;;  %2313 = vmatpush3.msk.msra.mxu0 %vm943_vm2, %v895_v34 }
  0x15   :  { %311 = vst.msk [vmem:[#allocation2 + $0x1c] sm:$0x7f] %vm76_vm0, %v2057_v36  ;;  %v2047_v38 = vld [vmem:[%s3510_s1 + $0x62] ss:$2 sm:$0x7f]  ;;  %2447 = vmatprep.subr.bf16.mxu0 %v2511_v25 }
  0x16   :  { %121 = vrot.lane.b32.xlu1 %v2027_v10, %s2508_s16  ;;  %202 = vrot.lane.b32.xlu0 %v2040_v11, %s2504_s26 }
  0x1a   :  { %208 = vrot.lane.b32.xlu1 %v2041_v12, %s2503_s23  ;;  %180 = vrot.lane.b32.xlu0 %v2036_v13, %s2508_s16 }
  0x1e   :  { %187 = vrot.lane.b32.xlu1 %v2037_v14, %s2509_s30  ;;  %129 = vrot.lane.b32.xlu0 %v2028_v15, %s2509_s30 }
  0x22   :  { %137 = vrot.lane.b32.xlu1 %v2029_v16, %s2510_s25  ;;  %215 = vrot.lane.b32.xlu0 %v2042_v17, %s2505_s17 }
  0x26   :  { %222 = vrot.lane.b32.xlu1 %v2043_v20, %s2506_s22  ;;  %194 = vrot.lane.b32.xlu0 %v2038_v21, %s2510_s25 }
  0x2a   :  { %258 = vrot.lane.b32.xlu1 %v2049_v23, %s2504_s26  ;;  %229 = vrot.lane.b32.xlu0 %v2044_v24, %s2507_s29 }
  0x2e   :  { %264 = vrot.lane.b32.xlu1 %v2050_v26, %s2503_s23  ;;  %236 = vrot.lane.b32.xlu0 %v2045_v28, %s2508_s16 }
  0x32   :  { %271 = vrot.lane.b32.xlu1 %v2051_v32, %s2505_s17  ;;  %243 = vrot.lane.b32.xlu0 %v2046_v33, %s2509_s30 }
  0x33   :  { %18 = vsyncpa [#allocation10], 0  ;;  %v2058_v39 = vld [vmem:[%s3510_s1 + $0x81] ss:$2 sm:$0x7f]  ;;  %vm84_vm3 = vcmask 63520  }
  0x34   :  { %v2053_v40 = vld [vmem:[%s3510_s1 + $0x72] ss:$2 sm:$0x7f]  ;;  %v2059_v41 = vld [vmem:[%s3510_s1 + $0x82] ss:$2 sm:$0x7f] }
  0x35   :  { %v2066_v42 = vld [vmem:[%s3510_s1 + $0xa0] ss:$2 sm:$0x7f]  ;;  %v2060_v44 = vld [vmem:[%s3510_s1 + $0x90] ss:$2 sm:$0x7f] }
  0x36   :  { %278 = vrot.lane.b32.xlu1 %v2052_v37, %s2506_s22  ;;  %250 = vrot.lane.b32.xlu0 %v2047_v38, %s2510_s25  ;;  %v2054_v43 = vld [vmem:[%s3510_s1 + $0x80] ss:$2 sm:$0x7f]  ;;  %367 = vst.msk [vmem:[#allocation2 + $0x23] sm:$0x7f] %vm76_vm0, %v2066_v42  ;;  %vm92_vm4 = vcmask 96320  }
  0x37   :  { %v2055_v45 = vld [vmem:[%s3510_s1 + $0x81] ss:$2 sm:$0x7f]  ;;  %v2061_v46 = vld [vmem:[%s3510_s1 + $0x91] ss:$2 sm:$0x7f] }
  0x38   :  { %v2056_v47 = vld [vmem:[%s3510_s1 + $0x82] ss:$2 sm:$0x7f]  ;;  %v2067_v48 = vld [vmem:[%s3510_s1 + $0xa1] ss:$2 sm:$0x7f] }
  0x39   :  { %v2062_v49 = vld [vmem:[%s3510_s1 + $0x92] ss:$2 sm:$0x7f]  ;;  %v2068_v50 = vld [vmem:[%s3510_s1 + $0xa2] ss:$2 sm:$0x7f] }
  0x3a   :  { %314 = vrot.lane.b32.xlu1 %v2058_v39, %s2504_s26  ;;  %285 = vrot.lane.b32.xlu0 %v2053_v40, %s2507_s29  ;;  %v2075_v51 = vld [vmem:[%s3510_s1 + $0xc0] ss:$2 sm:$0x7f]  ;;  %v2069_v53 = vld [vmem:[%s3510_s1 + $0xb0] ss:$2 sm:$0x7f] }
  0x3b   :  { %v2063_v52 = vld [vmem:[%s3510_s1 + $0xa0] ss:$2 sm:$0x7f]  ;;  %423 = vst.msk [vmem:[#allocation2 + $0x2a] sm:$0x7f] %vm76_vm0, %v2075_v51  ;;  %vm100_vm5 = vcmask 129120  }
  0x3c   :  { %v2064_v54 = vld [vmem:[%s3510_s1 + $0xa1] ss:$2 sm:$0x7f]  ;;  %v2070_v55 = vld [vmem:[%s3510_s1 + $0xb1] ss:$2 sm:$0x7f] }
  0x3d   :  { %v2065_v56 = vld [vmem:[%s3510_s1 + $0xa2] ss:$2 sm:$0x7f]  ;;  %v2076_v57 = vld [vmem:[%s3510_s1 + $0xc1] ss:$2 sm:$0x7f] }
  0x3e   :  { %320 = vrot.lane.b32.xlu1 %v2059_v41, %s2503_s23  ;;  %292 = vrot.lane.b32.xlu0 %v2054_v43, %s2508_s16  ;;  %v2071_v58 = vld [vmem:[%s3510_s1 + $0xb2] ss:$2 sm:$0x7f]  ;;  %v2077_v59 = vld [vmem:[%s3510_s1 + $0xc2] ss:$2 sm:$0x7f] }
  0x3f   :  { %v2084_v60 = vld [vmem:[%s3510_s1 + $0x100] ss:$2 sm:$0x7f]  ;;  %v2078_v62 = vld [vmem:[%s3510_s1 + $0xd0] ss:$2 sm:$0x7f] }
  0x40   :  { %v2072_v61 = vld [vmem:[%s3510_s1 + $0xc0] ss:$2 sm:$0x7f]  ;;  %480 = vst.msk [vmem:[#allocation2 + $0x31] sm:$0x7f] %vm76_vm0, %v2084_v60  ;;  %vm108_vm6 = vcmask 161920  }
  0x41   :  { %v2073_v63 = vld [vmem:[%s3510_s1 + $0xc1] ss:$2 sm:$0x7f]  ;;  %v2079_v0 = vld [vmem:[%s3510_s1 + $0xd1] ss:$2 sm:$0x7f] }
  0x42   :  { %327 = vrot.lane.b32.xlu1 %v2060_v44, %s2505_s17  ;;  %299 = vrot.lane.b32.xlu0 %v2055_v45, %s2509_s30  ;;  %v2074_v1 = vld [vmem:[%s3510_s1 + $0xc2] ss:$2 sm:$0x7f]  ;;  %v2085_v2 = vld [vmem:[%s3510_s1 + $0x101] ss:$2 sm:$0x7f] }
  0x43   :  { %v2080_v3 = vld [vmem:[%s3510_s1 + $0xd2] ss:$2 sm:$0x7f]  ;;  %v2093_v4 = vld [vmem:[%s3510_s1 + $0x120] ss:$2 sm:$0x7f] }
  0x44   :  { %v2086_v5 = vld [vmem:[%s3510_s1 + $0x102] ss:$2 sm:$0x7f]  ;;  %538 = vst.msk [vmem:[#allocation2 + $0x38] sm:$0x7f] %vm76_vm0, %v2093_v4  ;;  %vm116_vm7 = vcmask 194720  }
  0x45   :  { %v2081_v6 = vld [vmem:[%s3510_s1 + $0xe0] ss:$2 sm:$0x7f]  ;;  %v2087_v7 = vld [vmem:[%s3510_s1 + $0x110] ss:$2 sm:$0x7f] }
  0x46   :  { %334 = vrot.lane.b32.xlu1 %v2061_v46, %s2506_s22  ;;  %306 = vrot.lane.b32.xlu0 %v2056_v47, %s2510_s25  ;;  %v2082_v8 = vld [vmem:[%s3510_s1 + $0xe1] ss:$2 sm:$0x7f]  ;;  %v2102_v9 = vld [vmem:[%s3510_s1 + $0x140] ss:$2 sm:$0x7f] }
  0x47   :  { %594 = vst.msk [vmem:[#allocation2 + $0x3f] sm:$0x7f] %vm76_vm0, %v2102_v9  ;;  %v2088_v10 = vld [vmem:[%s3510_s1 + $0x111] ss:$2 sm:$0x7f]  ;;  %vm124_vm8 = vcmask 227520  }
  0x48   :  { %v2083_v12 = vld [vmem:[%s3510_s1 + $0xe2] ss:$2 sm:$0x7f]  ;;  %v2094_v14 = vld [vmem:[%s3510_s1 + $0x121] ss:$2 sm:$0x7f] }
  0x49   :  { %v2089_v16 = vld [vmem:[%s3510_s1 + $0x112] ss:$2 sm:$0x7f]  ;;  %v2090_v18 = vld [vmem:[%s3510_s1 + $0x120] ss:$2 sm:$0x7f] }
  0x4a   :  { %370 = vrot.lane.b32.xlu1 %v2067_v48, %s2504_s26  ;;  %341 = vrot.lane.b32.xlu0 %v2062_v49, %s2507_s29  ;;  %v2103_v20 = vld [vmem:[%s3510_s1 + $0x141] ss:$2 sm:$0x7f]  ;;  %v2104_v22 = vld [vmem:[%s3510_s1 + $0x142] ss:$2 sm:$0x7f] }
  0x4b   :  { %v2095_v24 = vld [vmem:[%s3510_s1 + $0x122] ss:$2 sm:$0x7f]  ;;  %v2096_v27 = vld [vmem:[%s3510_s1 + $0x130] ss:$2 sm:$0x7f] }
  0x4c   :  { %v2091_v29 = vld [vmem:[%s3510_s1 + $0x121] ss:$2 sm:$0x7f]  ;;  %v2111_v31 = vld [vmem:[%s3510_s1 + $0x160] ss:$2 sm:$0x7f] }
  0x4d   :  { %v2092_v32 = vld [vmem:[%s3510_s1 + $0x122] ss:$2 sm:$0x7f]  ;;  %650 = vst.msk [vmem:[#allocation2 + $0x46] sm:$0x7f] %vm76_vm0, %v2111_v31  ;;  %vm132_vm9 = vcmask 260320  }
  0x4e   :  { %376 = vrot.lane.b32.xlu1 %v2068_v50, %s2503_s23  ;;  %348 = vrot.lane.b32.xlu0 %v2063_v52, %s2508_s16  ;;  %v2105_v34 = vld [vmem:[%s3510_s1 + $0x150] ss:$2 sm:$0x7f]  ;;  %v2106_v37 = vld [vmem:[%s3510_s1 + $0x151] ss:$2 sm:$0x7f] }
  0x4f   :  { %v2097_v39 = vld [vmem:[%s3510_s1 + $0x131] ss:$2 sm:$0x7f]  ;;  %v2107_v41 = vld [vmem:[%s3510_s1 + $0x152] ss:$2 sm:$0x7f] }
  0x50   :  { %v2098_v43 = vld [vmem:[%s3510_s1 + $0x132] ss:$2 sm:$0x7f]  ;;  %vm140_vm10 = vcmask 293120   ;;  %vm903_vm11 = vcmask 293888   ;;  %vm1090_vm12 = vcmask 64512  }
  0x51   :  { %v2099_v45 = vld [vmem:[%s3510_s1 + $0x140] ss:$2 sm:$0x7f]  ;;  %v2112_v47 = vld [vmem:[%s3510_s1 + $0x161] ss:$2 sm:$0x7f] }
  0x52   :  { %383 = vrot.lane.b32.xlu1 %v2069_v53, %s2505_s17  ;;  %355 = vrot.lane.b32.xlu0 %v2064_v54, %s2509_s30  ;;  %v2113_v49 = vld [vmem:[%s3510_s1 + $0x162] ss:$2 sm:$0x7f]  ;;  %v2109_v53 = vld [vmem:[%s3510_s1 + $0x161] ss:$2 sm:$0x7f] }
  0x53   :  { %v2108_v51 = vld [vmem:[%s3510_s1 + $0x160] ss:$2 sm:$0x7f]  ;;  %v2114_v60 = vld [vmem:[%s3510_s1 + $0x170] ss:$2 sm:$0x7f] }
  0x54   :  { %v2117_v9 = vld [vmem:[%s3510_s1 + $0x180] ss:$2 sm:$0x7f]  ;;  %v2132_v31 = vld [vmem:[%s3510_s1 + $0x1b0] ss:$2 sm:$0x7f] }
  0x55   :  { %vm1106_vm13 = vcmask 59392   ;;  %s2516_s20 = smov 56   ;;  %s2517_s21 = smov 64   ;;  %vm1114_vm14 = vcmask 124992   ;;  %vm1122_vm15 = vcmask 190592   ;;  %vm1138_vm2 = vcmask 321792  }
  0x56   :  { %390 = vrot.lane.b32.xlu1 %v2070_v55, %s2506_s22  ;;  %362 = vrot.lane.b32.xlu0 %v2065_v56, %s2510_s25  ;;  %v2100_v55 = vld [vmem:[%s3510_s1 + $0x141] ss:$2 sm:$0x7f]  ;;  %s2519_s2 = smov 96   ;;  %p64_p0 = scmp.lt.s32.totalorder %s3509_s0, 2 }
  0x57   :  { %s2522_s15 = smov [#allocation9]  }
  0x58   :  { %s3523_s0 = smov (!%p64_p0, %s3509_s0), 2  ;;  %s2003_s18 = sshll.u32 %s2522_s15, 4  ;;  %s2004_s18 = int_to_ptr.vmem [resolvable:$true] %s2003_s18 }
  0x59   :  { %p2484_p2 = scmp.lt.s32.totalorder %s2004_s18, %s2004_s18 }
  0x5a   :  { %426 = vrot.lane.b32.xlu1 %v2076_v57, %s2504_s26  ;;  %397 = vrot.lane.b32.xlu0 %v2071_v58, %s2507_s29  ;;  %v2120_v57 = vld [vmem:[%s3510_s1 + $0x180] ss:$2 sm:$0x7f] }
  0x5b   :  { %v2101_v58 = vld [vmem:[%s3510_s1 + $0x142] ss:$2 sm:$0x7f]  ;;  %706 = vst.msk [vmem:[#allocation2 + $0x4d] sm:$0x7f] %vm76_vm0, %v2120_v57 }
  0x5e   :  { %432 = vrot.lane.b32.xlu1 %v2077_v59, %s2503_s23  ;;  %404 = vrot.lane.b32.xlu0 %v2072_v61, %s2508_s16 }
  0x62   :  { %439 = vrot.lane.b32.xlu1 %v2078_v62, %s2505_s17  ;;  %411 = vrot.lane.b32.xlu0 %v2073_v63, %s2509_s30  ;;  %v2115_v63 = vld [vmem:[%s3510_s1 + $0x171] ss:$2 sm:$0x7f] }
  0x66   :  { %446 = vrot.lane.b32.xlu1 %v2079_v0, %s2506_s22  ;;  %418 = vrot.lane.b32.xlu0 %v2074_v1, %s2510_s25  ;;  %v2110_v1 = vld [vmem:[%s3510_s1 + $0x162] ss:$2 sm:$0x7f] }
  0x6a   :  { %484 = vrot.lane.b32.xlu1 %v2085_v2, %s2504_s26  ;;  %453 = vrot.lane.b32.xlu0 %v2080_v3, %s2507_s29  ;;  %v2121_v3 = vld [vmem:[%s3510_s1 + $0x181] ss:$2 sm:$0x7f] }
  0x6e   :  { %491 = vrot.lane.b32.xlu1 %v2086_v5, %s2503_s23  ;;  %460 = vrot.lane.b32.xlu0 %v2081_v6, %s2508_s16  ;;  %v2116_v5 = vld [vmem:[%s3510_s1 + $0x172] ss:$2 sm:$0x7f] }
  0x72   :  { %498 = vrot.lane.b32.xlu1 %v2087_v7, %s2505_s17  ;;  %467 = vrot.lane.b32.xlu0 %v2082_v8, %s2509_s30  ;;  %v2122_v7 = vld [vmem:[%s3510_s1 + $0x182] ss:$2 sm:$0x7f] }
  0x74   :  { %v90_v11 = vpop.permute.xlu1 %89  ;;  %v82_v13 = vpop.permute.xlu0 %81 }
  0x75   :  { %85 = vst.msk [vmem:[#allocation2] sm:$0x7f] %vm84_vm3, %v82_v13 }
  0x76   :  { %505 = vrot.lane.b32.xlu1 %v2088_v10, %s2506_s22  ;;  %474 = vrot.lane.b32.xlu0 %v2083_v12, %s2510_s25  ;;  %93 = vst.msk [vmem:[#allocation2] sm:$0x7f] %vm92_vm4, %v90_v11  ;;  %v2129_v11 = vld [vmem:[%s3510_s1 + $0x1a0] ss:$2 sm:$0x7f] }
  0x77   :  { %v2123_v12 = vld [vmem:[%s3510_s1 + $0x190] ss:$2 sm:$0x7f]  ;;  %762 = vst.msk [vmem:[#allocation2 + $0x54] sm:$0x7f] %vm76_vm0, %v2129_v11 }
  0x78   :  { %v153_v15 = vpop.permute.xlu1 %152  ;;  %v147_v17 = vpop.permute.xlu0 %146 }
  0x79   :  { %149 = vst.msk [vmem:[#allocation2 + $0x7] sm:$0x7f] %vm84_vm3, %v147_v17  ;;  %v2124_v17 = vld [vmem:[%s3510_s1 + $0x191] ss:$2 sm:$0x7f] }
  0x7a   :  { %541 = vrot.lane.b32.xlu1 %v2094_v14, %s2504_s26  ;;  %512 = vrot.lane.b32.xlu0 %v2089_v16, %s2507_s29  ;;  %155 = vst.msk [vmem:[#allocation2 + $0x7] sm:$0x7f] %vm92_vm4, %v153_v15  ;;  %v2118_v14 = vld [vmem:[%s3510_s1 + $0x181] ss:$2 sm:$0x7f] }
  0x7c   :  { %v160_v19 = vpop.permute.xlu1 %159  ;;  %v98_v21 = vpop.permute.xlu0 %97 }
  0x7d   :  { %162 = vst.msk [vmem:[#allocation2 + $0x7] sm:$0x7f] %vm100_vm5, %v160_v19  ;;  %101 = vst.msk [vmem:[#allocation2] sm:$0x7f] %vm100_vm5, %v98_v21 }
  0x7e   :  { %519 = vrot.lane.b32.xlu1 %v2090_v18, %s2508_s16  ;;  %597 = vrot.lane.b32.xlu0 %v2103_v20, %s2504_s26  ;;  %v2119_v19 = vld [vmem:[%s3510_s1 + $0x182] ss:$2 sm:$0x7f]  ;;  %v2130_v21 = vld [vmem:[%s3510_s1 + $0x1a1] ss:$2 sm:$0x7f] }
  0x80   :  { %v167_v23 = vpop.permute.xlu1 %166  ;;  %v106_v26 = vpop.permute.xlu0 %105 }
  0x81   :  { %169 = vst.msk [vmem:[#allocation2 + $0x7] sm:$0x7f] %vm108_vm6, %v167_v23  ;;  %109 = vst.msk [vmem:[#allocation2] sm:$0x7f] %vm108_vm6, %v106_v26 }
  0x82   :  { %603 = vrot.lane.b32.xlu1 %v2104_v22, %s2503_s23  ;;  %547 = vrot.lane.b32.xlu0 %v2095_v24, %s2503_s23  ;;  %v2125_v23 = vld [vmem:[%s3510_s1 + $0x192] ss:$2 sm:$0x7f]  ;;  %v2131_v26 = vld [vmem:[%s3510_s1 + $0x1a2] ss:$2 sm:$0x7f] }
  0x84   :  { %v174_v28 = vpop.permute.xlu1 %173  ;;  %v114_v30 = vpop.permute.xlu0 %113 }
  0x85   :  { %176 = vst.msk [vmem:[#allocation2 + $0x7] sm:$0x7f] %vm116_vm7, %v174_v28  ;;  %117 = vst.msk [vmem:[#allocation2] sm:$0x7f] %vm116_vm7, %v114_v30 }
  0x86   :  { %554 = vrot.lane.b32.xlu1 %v2096_v27, %s2505_s17  ;;  %526 = vrot.lane.b32.xlu0 %v2091_v29, %s2509_s30  ;;  %v2126_v28 = vld [vmem:[%s3510_s1 + $0x1a0] ss:$2 sm:$0x7f] }
  0x87   :  { %v2138_v30 = vld [vmem:[%s3510_s1 + $0x1c0] ss:$2 sm:$0x7f] }
  0x88   :  { %v122_v33 = vpop.permute.xlu1 %121  ;;  %v203_v36 = vpop.permute.xlu0 %202  ;;  %818 = vst.msk [vmem:[#allocation2 + $0x5b] sm:$0x7f] %vm76_vm0, %v2138_v30  ;;  %vm1130_vm0 = vcmask 256192  }
  0x89   :  { %125 = vst.msk [vmem:[#allocation2] sm:$0x7f] %vm124_vm8, %v122_v33  ;;  %v2127_v33 = vld [vmem:[%s3510_s1 + $0x1a1] ss:$2 sm:$0x7f] }
  0x8a   :  { %205 = vst.msk [vmem:[#allocation2 + $0xe] sm:$0x7f] %vm84_vm3, %v203_v36  ;;  %533 = vrot.lane.b32.xlu1 %v2092_v32, %s2510_s25  ;;  %610 = vrot.lane.b32.xlu0 %v2105_v34, %s2505_s17 }
  0x8c   :  { %v209_v38 = vpop.permute.xlu1 %208  ;;  %v181_v40 = vpop.permute.xlu0 %180 }
  0x8d   :  { %211 = vst.msk [vmem:[#allocation2 + $0xe] sm:$0x7f] %vm92_vm4, %v209_v38 }
  0x8e   :  { %183 = vst.msk [vmem:[#allocation2 + $0x7] sm:$0x7f] %vm124_vm8, %v181_v40  ;;  %617 = vrot.lane.b32.xlu1 %v2106_v37, %s2506_s22  ;;  %561 = vrot.lane.b32.xlu0 %v2097_v39, %s2506_s22  ;;  %v2133_v37 = vld [vmem:[%s3510_s1 + $0x1b1] ss:$2 sm:$0x7f] }
  0x8f   :  { %v2128_v39 = vld [vmem:[%s3510_s1 + $0x1a2] ss:$2 sm:$0x7f] }
  0x90   :  { %v188_v42 = vpop.permute.xlu1 %187  ;;  %v130_v44 = vpop.permute.xlu0 %129 }
  0x91   :  { %190 = vst.msk [vmem:[#allocation2 + $0x7] sm:$0x7f] %vm132_vm9, %v188_v42  ;;  %133 = vst.msk [vmem:[#allocation2] sm:$0x7f] %vm132_vm9, %v130_v44 }
  0x92   :  { %624 = vrot.lane.b32.xlu1 %v2107_v41, %s2507_s29  ;;  %568 = vrot.lane.b32.xlu0 %v2098_v43, %s2507_s29  ;;  %v2139_v41 = vld [vmem:[%s3510_s1 + $0x1c1] ss:$2 sm:$0x7f]  ;;  %v2134_v43 = vld [vmem:[%s3510_s1 + $0x1b2] ss:$2 sm:$0x7f] }
  0x94   :  { %v138_v46 = vpop.permute.xlu1 %137  ;;  %v216_v48 = vpop.permute.xlu0 %215 }
  0x95   :  { %141 = vst.msk [vmem:[#allocation2] sm:$0x7f] %vm140_vm10, %v138_v46 }
  0x96   :  { %218 = vst.msk [vmem:[#allocation2 + $0xe] sm:$0x7f] %vm100_vm5, %v216_v48  ;;  %575 = vrot.lane.b32.xlu1 %v2099_v45, %s2508_s16  ;;  %653 = vrot.lane.b32.xlu0 %v2112_v47, %s2504_s26  ;;  %v2140_v45 = vld [vmem:[%s3510_s1 + $0x1c2] ss:$2 sm:$0x7f] }
  0x97   :  { %v2135_v47 = vld [vmem:[%s3510_s1 + $0x1c0] ss:$2 sm:$0x7f] }
  0x98   :  { %v223_v50 = vpop.permute.xlu1 %222  ;;  %v195_v52 = vpop.permute.xlu0 %194 }
  0x99   :  { %225 = vst.msk [vmem:[#allocation2 + $0xe] sm:$0x7f] %vm108_vm6, %v223_v50 }
  0x9a   :  { %197 = vst.msk [vmem:[#allocation2 + $0x7] sm:$0x7f] %vm140_vm10, %v195_v52  ;;  %659 = vrot.lane.b32.xlu1 %v2113_v49, %s2503_s23  ;;  %631 = vrot.lane.b32.xlu0 %v2108_v51, %s2508_s16  ;;  %v2141_v49 = vld [vmem:[%s3510_s1 + $0x1d0] ss:$2 sm:$0x7f] }
  0x9b   :  { %v2136_v51 = vld [vmem:[%s3510_s1 + $0x1c1] ss:$2 sm:$0x7f] }
  0x9c   :  { %v259_v54 = vpop.permute.xlu1 %258  ;;  %v230_v56 = vpop.permute.xlu0 %229 }
  0x9d   :  { %261 = vst.msk [vmem:[#allocation2 + $0x15] sm:$0x7f] %vm84_vm3, %v259_v54  ;;  %v2142_v54 = vld [vmem:[%s3510_s1 + $0x1d1] ss:$2 sm:$0x7f] }
  0x9e   :  { %232 = vst.msk [vmem:[#allocation2 + $0xe] sm:$0x7f] %vm116_vm7, %v230_v56  ;;  %638 = vrot.lane.b32.xlu1 %v2109_v53, %s2509_s30  ;;  %582 = vrot.lane.b32.xlu0 %v2100_v55, %s2509_s30  ;;  %v2137_v56 = vld [vmem:[%s3510_s1 + $0x1c2] ss:$2 sm:$0x7f] }
  0xa0   :  { %v265_v59 = vpop.permute.xlu1 %264  ;;  %v237_v61 = vpop.permute.xlu0 %236 }
  0xa1   :  { %267 = vst.msk [vmem:[#allocation2 + $0x15] sm:$0x7f] %vm92_vm4, %v265_v59  ;;  %v873_v62 = vld [vmem:[#allocation2] sm:$0xff] }
  0xa2   :  { %239 = vst.msk [vmem:[#allocation2 + $0xe] sm:$0x7f] %vm124_vm8, %v237_v61  ;;  %2315 = vmatmul.mubr.msk.f32.vlgmr.msra.gmra.mrb[0].mxu0 %vm903_vm11, %v873_v62  ;;  %589 = vrot.lane.b32.xlu1 %v2101_v58, %s2510_s25  ;;  %v2144_v58 = vld [vmem:[%s3510_s1 + $0x1e0] ss:$2 sm:$0x7f] }
  0xa3   :  { %666 = vrot.lane.b32.xlu0 %v2114_v60, %s2505_s17  ;;  %2317 = vmatprep.mubr.msk.f32.mxu0 %vm2512_vm1, %v2513_v35  ;;  %v2143_v60 = vld [vmem:[%s3510_s1 + $0x1d2] ss:$2 sm:$0x7f]  ;;  %v2146_v62 = vld [vmem:[%s3510_s1 + $0x1e2] ss:$2 sm:$0x7f] }
  0xa4   :  { %v272_v0 = vpop.permute.xlu1 %271  ;;  %v244_v2 = vpop.permute.xlu0 %243 }
  0xa5   :  { %274 = vst.msk [vmem:[#allocation2 + $0x15] sm:$0x7f] %vm100_vm5, %v272_v0  ;;  %v2145_v0 = vld [vmem:[%s3510_s1 + $0x1e1] ss:$2 sm:$0x7f] }
  0xa6   :  { %246 = vst.msk [vmem:[#allocation2 + $0xe] sm:$0x7f] %vm132_vm9, %v244_v2  ;;  %673 = vrot.lane.b32.xlu1 %v2115_v63, %s2506_s22 }
  0xa7   :  { %645 = vrot.lane.b32.xlu0 %v2110_v1, %s2510_s25 }
  0xa8   :  { %v279_v4 = vpop.permute.xlu1 %278  ;;  %v251_v6 = vpop.permute.xlu0 %250 }
  0xa9   :  { %281 = vst.msk [vmem:[#allocation2 + $0x15] sm:$0x7f] %vm108_vm6, %v279_v4 }
  0xaa   :  { %253 = vst.msk [vmem:[#allocation2 + $0xe] sm:$0x7f] %vm140_vm10, %v251_v6  ;;  %709 = vrot.lane.b32.xlu1 %v2121_v3, %s2504_s26 }
  0xab   :  { %680 = vrot.lane.b32.xlu0 %v2116_v5, %s2507_s29 }
  0xac   :  { %v315_v8 = vpop.permute.xlu1 %314  ;;  %v286_v10 = vpop.permute.xlu0 %285 }
  0xad   :  { %317 = vst.msk [vmem:[#allocation2 + $0x1c] sm:$0x7f] %vm84_vm3, %v315_v8 }
  0xae   :  { %288 = vst.msk [vmem:[#allocation2 + $0x15] sm:$0x7f] %vm116_vm7, %v286_v10  ;;  %715 = vrot.lane.b32.xlu1 %v2122_v7, %s2503_s23 }
  0xaf   :  { %687 = vrot.lane.b32.xlu0 %v2117_v9, %s2508_s16 }
  0xb0   :  { %v321_v13 = vpop.permute.xlu1 %320  ;;  %v293_v15 = vpop.permute.xlu0 %292 }
  0xb1   :  { %323 = vst.msk [vmem:[#allocation2 + $0x1c] sm:$0x7f] %vm92_vm4, %v321_v13  ;;  %v874_v16 = vld [vmem:[#allocation2 + $0x8] sm:$0xff] }
  0xb2   :  { %295 = vst.msk [vmem:[#allocation2 + $0x15] sm:$0x7f] %vm124_vm8, %v293_v15  ;;  %2318 = vmatmul.mubr.msk.f32.gmra.mrb[2].mxu0 %vm903_vm11, %v874_v16  ;;  %722 = vrot.lane.b32.xlu1 %v2123_v12, %s2505_s17 }
  0xb3   :  { %694 = vrot.lane.b32.xlu0 %v2118_v14, %s2509_s30  ;;  %2320 = vmatprep.mubr.msk.f32.mxu0 %vm2512_vm1, %v2513_v35 }
  0xb4   :  { %v328_v18 = vpop.permute.xlu1 %327  ;;  %v300_v20 = vpop.permute.xlu0 %299 }
  0xb5   :  { %330 = vst.msk [vmem:[#allocation2 + $0x1c] sm:$0x7f] %vm100_vm5, %v328_v18 }
  0xb6   :  { %302 = vst.msk [vmem:[#allocation2 + $0x15] sm:$0x7f] %vm132_vm9, %v300_v20  ;;  %729 = vrot.lane.b32.xlu1 %v2124_v17, %s2506_s22 }
  0xb7   :  { %701 = vrot.lane.b32.xlu0 %v2119_v19, %s2510_s25 }
  0xb8   :  { %v335_v22 = vpop.permute.xlu1 %334  ;;  %v307_v24 = vpop.permute.xlu0 %306 }
  0xb9   :  { %337 = vst.msk [vmem:[#allocation2 + $0x1c] sm:$0x7f] %vm108_vm6, %v335_v22 }
  0xba   :  { %309 = vst.msk [vmem:[#allocation2 + $0x15] sm:$0x7f] %vm140_vm10, %v307_v24  ;;  %765 = vrot.lane.b32.xlu1 %v2130_v21, %s2504_s26 }
  0xbb   :  { %736 = vrot.lane.b32.xlu0 %v2125_v23, %s2507_s29 }
  0xbc   :  { %v371_v27 = vpop.permute.xlu1 %370  ;;  %v342_v29 = vpop.permute.xlu0 %341 }
  0xbd   :  { %373 = vst.msk [vmem:[#allocation2 + $0x23] sm:$0x7f] %vm84_vm3, %v371_v27 }
  0xbe   :  { %344 = vst.msk [vmem:[#allocation2 + $0x1c] sm:$0x7f] %vm116_vm7, %v342_v29  ;;  %771 = vrot.lane.b32.xlu1 %v2131_v26, %s2503_s23 }
  0xbf   :  { %743 = vrot.lane.b32.xlu0 %v2126_v28, %s2508_s16 }
  0xc0   :  { %v377_v32 = vpop.permute.xlu1 %376  ;;  %v349_v34 = vpop.permute.xlu0 %348 }
  0xc1   :  { %379 = vst.msk [vmem:[#allocation2 + $0x23] sm:$0x7f] %vm92_vm4, %v377_v32  ;;  %v875_v36 = vld [vmem:[#allocation2 + $0x10] sm:$0xff] }
  0xc2   :  { %351 = vst.msk [vmem:[#allocation2 + $0x1c] sm:$0x7f] %vm124_vm8, %v349_v34  ;;  %2321 = vmatmul.mubr.msk.f32.gmra.mrb[4].mxu0 %vm903_vm11, %v875_v36  ;;  %778 = vrot.lane.b32.xlu1 %v2132_v31, %s2505_s17 }
  0xc3   :  { %750 = vrot.lane.b32.xlu0 %v2127_v33, %s2509_s30  ;;  %2323 = vmatprep.mubr.msk.f32.mxu0 %vm2512_vm1, %v2513_v35 }
  0xc4   :  { %v384_v38 = vpop.permute.xlu1 %383  ;;  %v356_v40 = vpop.permute.xlu0 %355 }
  0xc5   :  { %386 = vst.msk [vmem:[#allocation2 + $0x23] sm:$0x7f] %vm100_vm5, %v384_v38 }
  0xc6   :  { %358 = vst.msk [vmem:[#allocation2 + $0x1c] sm:$0x7f] %vm132_vm9, %v356_v40  ;;  %785 = vrot.lane.b32.xlu1 %v2133_v37, %s2506_s22 }
  0xc7   :  { %757 = vrot.lane.b32.xlu0 %v2128_v39, %s2510_s25 }
  0xc8   :  { %v391_v42 = vpop.permute.xlu1 %390  ;;  %v363_v44 = vpop.permute.xlu0 %362 }
  0xc9   :  { %393 = vst.msk [vmem:[#allocation2 + $0x23] sm:$0x7f] %vm108_vm6, %v391_v42 }
  0xca   :  { %365 = vst.msk [vmem:[#allocation2 + $0x1c] sm:$0x7f] %vm140_vm10, %v363_v44  ;;  %821 = vrot.lane.b32.xlu1 %v2139_v41, %s2504_s26  ;;  %s2479_s26 = scalar_lea.vmem %s2004_s18, 32 }
  0xcb   :  { %792 = vrot.lane.b32.xlu0 %v2134_v43, %s2507_s29  ;;  %p2480_p1 = scmp.ne.s32.totalorder %s2004_s18, %s2479_s26  ;;  %p2485_p3 = scmp.lt.s32.totalorder %s2479_s26, %s2479_s26 }
  0xcc   :  { %v427_v46 = vpop.permute.xlu1 %426  ;;  %v398_v48 = vpop.permute.xlu0 %397 }
  0xcd   :  { %429 = vst.msk [vmem:[#allocation2 + $0x2a] sm:$0x7f] %vm84_vm3, %v427_v46  ;;  %p2486_p4 = por %p2485_p3, %p2484_p2 }
  0xce   :  { %400 = vst.msk [vmem:[#allocation2 + $0x23] sm:$0x7f] %vm116_vm7, %v398_v48  ;;  %827 = vrot.lane.b32.xlu1 %v2140_v45, %s2503_s23 }
  0xcf   :  { %799 = vrot.lane.b32.xlu0 %v2135_v47, %s2508_s16  ;;  %p2487_p5 = pnand %p2486_p4, %p2480_p1 }
  0xd0   :  { %v433_v50 = vpop.permute.xlu1 %432  ;;  %v405_v52 = vpop.permute.xlu0 %404 }
  0xd1   :  { %435 = vst.msk [vmem:[#allocation2 + $0x2a] sm:$0x7f] %vm92_vm4, %v433_v50  ;;  %v876_v53 = vld [vmem:[#allocation2 + $0x18] sm:$0xff] }
  0xd2   :  { %407 = vst.msk [vmem:[#allocation2 + $0x23] sm:$0x7f] %vm124_vm8, %v405_v52  ;;  %2324 = vmatmul.mubr.msk.f32.gmra.mrb[6].mxu0 %vm903_vm11, %v876_v53  ;;  %834 = vrot.lane.b32.xlu1 %v2141_v49, %s2505_s17 }
  0xd3   :  { %806 = vrot.lane.b32.xlu0 %v2136_v51, %s2509_s30  ;;  %2326 = vmatprep.mubr.msk.f32.mxu0 %vm2512_vm1, %v2513_v35 }
  0xd4   :  { %v440_v55 = vpop.permute.xlu1 %439  ;;  %v412_v57 = vpop.permute.xlu0 %411 }
  0xd5   :  { %442 = vst.msk [vmem:[#allocation2 + $0x2a] sm:$0x7f] %vm100_vm5, %v440_v55 }
  0xd6   :  { %414 = vst.msk [vmem:[#allocation2 + $0x23] sm:$0x7f] %vm132_vm9, %v412_v57  ;;  %841 = vrot.lane.b32.xlu1 %v2142_v54, %s2506_s22 }
  0xd7   :  { %813 = vrot.lane.b32.xlu0 %v2137_v56, %s2510_s25 }
  0xd8   :  { %v447_v59 = vpop.permute.xlu1 %446  ;;  %v419_v61 = vpop.permute.xlu0 %418 }
  0xd9   :  { %449 = vst.msk [vmem:[#allocation2 + $0x2a] sm:$0x7f] %vm108_vm6, %v447_v59 }
  0xda   :  { %421 = vst.msk [vmem:[#allocation2 + $0x23] sm:$0x7f] %vm140_vm10, %v419_v61  ;;  %855 = vrot.lane.b32.xlu1 %v2144_v58, %s2508_s16 }
  0xdb   :  { %848 = vrot.lane.b32.xlu0 %v2143_v60, %s2507_s29 }
  0xdc   :  { %v485_v63 = vpop.permute.xlu1 %484  ;;  %v454_v1 = vpop.permute.xlu0 %453 }
  0xdd   :  { %487 = vst.msk [vmem:[#allocation2 + $0x31] sm:$0x7f] %vm84_vm3, %v485_v63 }
  0xde   :  { %456 = vst.msk [vmem:[#allocation2 + $0x2a] sm:$0x7f] %vm116_vm7, %v454_v1  ;;  %869 = vrot.lane.b32.xlu1 %v2146_v62, %s2510_s25 }
  0xdf   :  { %862 = vrot.lane.b32.xlu0 %v2145_v0, %s2509_s30  ;;  %s2515_s30 = smov 48  }
  0xe0   :  { %v492_v2 = vpop.permute.xlu1 %491  ;;  %v461_v3 = vpop.permute.xlu0 %460 }
  0xe1   :  { %494 = vst.msk [vmem:[#allocation2 + $0x31] sm:$0x7f] %vm92_vm4, %v492_v2  ;;  %v877_v4 = vld [vmem:[#allocation2 + $0x20] sm:$0xff] }
  0xe2   :  { %463 = vst.msk [vmem:[#allocation2 + $0x2a] sm:$0x7f] %vm124_vm8, %v461_v3  ;;  %2327 = vmatmul.mubr.msk.f32.gmra.mrb[8].mxu0 %vm903_vm11, %v877_v4 }
  0xe3   :  { %2329 = vmatprep.mubr.msk.f32.mxu0 %vm2512_vm1, %v2513_v35 }
  0xe4   :  { %v499_v5 = vpop.permute.xlu1 %498  ;;  %v468_v6 = vpop.permute.xlu0 %467 }
  0xe5   :  { %501 = vst.msk [vmem:[#allocation2 + $0x31] sm:$0x7f] %vm100_vm5, %v499_v5 }
  0xe6   :  { %470 = vst.msk [vmem:[#allocation2 + $0x2a] sm:$0x7f] %vm132_vm9, %v468_v6 }
  0xe8   :  { %v506_v7 = vpop.permute.xlu1 %505  ;;  %v475_v8 = vpop.permute.xlu0 %474 }
  0xe9   :  { %508 = vst.msk [vmem:[#allocation2 + $0x31] sm:$0x7f] %vm108_vm6, %v506_v7  ;;  %v3264_v7 = vld [vmem:[%s3512_s3] ss:$0 sm:$0xff]  ;;  %s2514_s3 = smov 40  }
  0xea   :  { %477 = vst.msk [vmem:[#allocation2 + $0x2a] sm:$0x7f] %vm140_vm10, %v475_v8 }
  0xec   :  { %v542_v9 = vpop.permute.xlu1 %541  ;;  %v513_v10 = vpop.permute.xlu0 %512 }
  0xed   :  { %544 = vst.msk [vmem:[#allocation2 + $0x38] sm:$0x7f] %vm84_vm3, %v542_v9 }
  0xee   :  { %515 = vst.msk [vmem:[#allocation2 + $0x31] sm:$0x7f] %vm116_vm7, %v513_v10 }
  0xf0   :  { %v520_v11 = vpop.permute.xlu1 %519  ;;  %v598_v12 = vpop.permute.xlu0 %597 }
  0xf1   :  { %522 = vst.msk [vmem:[#allocation2 + $0x31] sm:$0x7f] %vm124_vm8, %v520_v11  ;;  %v878_v13 = vld [vmem:[#allocation2 + $0x28] sm:$0xff] }
  0xf2   :  { %600 = vst.msk [vmem:[#allocation2 + $0x3f] sm:$0x7f] %vm84_vm3, %v598_v12  ;;  %2330 = vmatmul.mubr.msk.f32.gmra.mrb[10].mxu0 %vm903_vm11, %v878_v13 }
  0xf3   :  { %2332 = vmatprep.mubr.msk.f32.mxu0 %vm2512_vm1, %v2513_v35 }
  0xf4   :  { %v604_v14 = vpop.permute.xlu1 %603  ;;  %v548_v15 = vpop.permute.xlu0 %547 }
  0xf5   :  { %606 = vst.msk [vmem:[#allocation2 + $0x3f] sm:$0x7f] %vm92_vm4, %v604_v14  ;;  %550 = vst.msk [vmem:[#allocation2 + $0x38] sm:$0x7f] %vm92_vm4, %v548_v15 }
  0xf8   :  { %v555_v16 = vpop.permute.xlu1 %554  ;;  %v527_v17 = vpop.permute.xlu0 %526 }
  0xf9   :  { %557 = vst.msk [vmem:[#allocation2 + $0x38] sm:$0x7f] %vm100_vm5, %v555_v16 }
  0xfa   :  { %529 = vst.msk [vmem:[#allocation2 + $0x31] sm:$0x7f] %vm132_vm9, %v527_v17 }
  0xfc   :  { %v534_v18 = vpop.permute.xlu1 %533  ;;  %v611_v19 = vpop.permute.xlu0 %610 }
  0xfd   :  { %536 = vst.msk [vmem:[#allocation2 + $0x31] sm:$0x7f] %vm140_vm10, %v534_v18 }
  0xfe   :  { %613 = vst.msk [vmem:[#allocation2 + $0x3f] sm:$0x7f] %vm100_vm5, %v611_v19 }
 0x100   :  { %v618_v20 = vpop.permute.xlu1 %617  ;;  %v562_v21 = vpop.permute.xlu0 %561 }
 0x101   :  { %620 = vst.msk [vmem:[#allocation2 + $0x3f] sm:$0x7f] %vm108_vm6, %v618_v20  ;;  %564 = vst.msk [vmem:[#allocation2 + $0x38] sm:$0x7f] %vm108_vm6, %v562_v21 }
 0x104   :  { %v625_v22 = vpop.permute.xlu1 %624  ;;  %v879_v23 = vld [vmem:[#allocation2 + $0x30] sm:$0xff]  ;;  %v569_v24 = vpop.permute.xlu0 %568 }
 0x105   :  { %627 = vst.msk [vmem:[#allocation2 + $0x3f] sm:$0x7f] %vm116_vm7, %v625_v22  ;;  %2333 = vmatmul.mubr.msk.f32.gmra.mrb[12].mxu0 %vm903_vm11, %v879_v23  ;;  %571 = vst.msk [vmem:[#allocation2 + $0x38] sm:$0x7f] %vm116_vm7, %v569_v24 }
 0x106   :  { %2335 = vmatprep.mubr.msk.f32.mxu0 %vm2512_vm1, %v2513_v35 }
 0x108   :  { %v576_v26 = vpop.permute.xlu1 %575  ;;  %v654_v27 = vpop.permute.xlu0 %653 }
 0x109   :  { %578 = vst.msk [vmem:[#allocation2 + $0x38] sm:$0x7f] %vm124_vm8, %v576_v26 }
 0x10a   :  { %656 = vst.msk [vmem:[#allocation2 + $0x46] sm:$0x7f] %vm84_vm3, %v654_v27 }
 0x10c   :  { %v660_v28 = vpop.permute.xlu1 %659  ;;  %v632_v29 = vpop.permute.xlu0 %631 }
 0x10d   :  { %662 = vst.msk [vmem:[#allocation2 + $0x46] sm:$0x7f] %vm92_vm4, %v660_v28 }
 0x10e   :  { %634 = vst.msk [vmem:[#allocation2 + $0x3f] sm:$0x7f] %vm124_vm8, %v632_v29 }
 0x110   :  { %v639_v30 = vpop.permute.xlu1 %638  ;;  %v583_v31 = vpop.permute.xlu0 %582 }
 0x111   :  { %641 = vst.msk [vmem:[#allocation2 + $0x3f] sm:$0x7f] %vm132_vm9, %v639_v30  ;;  %585 = vst.msk [vmem:[#allocation2 + $0x38] sm:$0x7f] %vm132_vm9, %v583_v31 }
 0x114   :  { %v590_v32 = vpop.permute.xlu1 %589 }
 0x115   :  { %v667_v33 = vpop.permute.xlu0 %666  ;;  %592 = vst.msk [vmem:[#allocation2 + $0x38] sm:$0x7f] %vm140_vm10, %v590_v32 }
 0x116   :  { %669 = vst.msk [vmem:[#allocation2 + $0x46] sm:$0x7f] %vm100_vm5, %v667_v33 }
 0x118   :  { %v674_v34 = vpop.permute.xlu1 %673 }
 0x119   :  { %v646_v36 = vpop.permute.xlu0 %645  ;;  %676 = vst.msk [vmem:[#allocation2 + $0x46] sm:$0x7f] %vm108_vm6, %v674_v34 }
 0x11a   :  { %648 = vst.msk [vmem:[#allocation2 + $0x3f] sm:$0x7f] %vm140_vm10, %v646_v36 }
 0x11c   :  { %v710_v37 = vpop.permute.xlu1 %709 }
 0x11d   :  { %v681_v38 = vpop.permute.xlu0 %680  ;;  %712 = vst.msk [vmem:[#allocation2 + $0x4d] sm:$0x7f] %vm84_vm3, %v710_v37 }
 0x11e   :  { %683 = vst.msk [vmem:[#allocation2 + $0x46] sm:$0x7f] %vm116_vm7, %v681_v38 }
 0x120   :  { %v716_v39 = vpop.permute.xlu1 %715 }
 0x121   :  { %v688_v40 = vpop.permute.xlu0 %687  ;;  %718 = vst.msk [vmem:[#allocation2 + $0x4d] sm:$0x7f] %vm92_vm4, %v716_v39  ;;  %v880_v41 = vld [vmem:[#allocation2 + $0x38] sm:$0xff] }
 0x122   :  { %690 = vst.msk [vmem:[#allocation2 + $0x46] sm:$0x7f] %vm124_vm8, %v688_v40  ;;  %2336 = vmatmul.mubr.msk.f32.gmra.mrb[14].mxu0 %vm903_vm11, %v880_v41 }
 0x123   :  { %2338 = vmatprep.mubr.msk.f32.mxu0 %vm2512_vm1, %v2513_v35 }
 0x124   :  { %v723_v42 = vpop.permute.xlu1 %722 }
 0x125   :  { %v695_v43 = vpop.permute.xlu0 %694  ;;  %725 = vst.msk [vmem:[#allocation2 + $0x4d] sm:$0x7f] %vm100_vm5, %v723_v42 }
 0x126   :  { %697 = vst.msk [vmem:[#allocation2 + $0x46] sm:$0x7f] %vm132_vm9, %v695_v43 }
 0x128   :  { %v730_v44 = vpop.permute.xlu1 %729 }
 0x129   :  { %v702_v45 = vpop.permute.xlu0 %701  ;;  %732 = vst.msk [vmem:[#allocation2 + $0x4d] sm:$0x7f] %vm108_vm6, %v730_v44 }
 0x12a   :  { %704 = vst.msk [vmem:[#allocation2 + $0x46] sm:$0x7f] %vm140_vm10, %v702_v45 }
 0x12c   :  { %v766_v46 = vpop.permute.xlu1 %765 }
 0x12d   :  { %v737_v47 = vpop.permute.xlu0 %736  ;;  %768 = vst.msk [vmem:[#allocation2 + $0x54] sm:$0x7f] %vm84_vm3, %v766_v46 }
 0x12e   :  { %739 = vst.msk [vmem:[#allocation2 + $0x4d] sm:$0x7f] %vm116_vm7, %v737_v47 }
 0x130   :  { %v772_v48 = vpop.permute.xlu1 %771 }
 0x131   :  { %v744_v49 = vpop.permute.xlu0 %743  ;;  %774 = vst.msk [vmem:[#allocation2 + $0x54] sm:$0x7f] %vm92_vm4, %v772_v48  ;;  %v881_v50 = vld [vmem:[#allocation2 + $0x40] sm:$0xff] }
 0x132   :  { %746 = vst.msk [vmem:[#allocation2 + $0x4d] sm:$0x7f] %vm124_vm8, %v744_v49  ;;  %2339 = vmatmul.mubr.msk.f32.gmra.mrb[16].mxu0 %vm903_vm11, %v881_v50 }
 0x133   :  { %2341 = vmatprep.mubr.msk.f32.mxu0 %vm2512_vm1, %v2513_v35 }
 0x134   :  { %v779_v51 = vpop.permute.xlu1 %778 }
 0x135   :  { %v751_v52 = vpop.permute.xlu0 %750  ;;  %781 = vst.msk [vmem:[#allocation2 + $0x54] sm:$0x7f] %vm100_vm5, %v779_v51 }
 0x136   :  { %753 = vst.msk [vmem:[#allocation2 + $0x4d] sm:$0x7f] %vm132_vm9, %v751_v52 }
 0x138   :  { %v786_v53 = vpop.permute.xlu1 %785 }
 0x139   :  { %v758_v54 = vpop.permute.xlu0 %757  ;;  %788 = vst.msk [vmem:[#allocation2 + $0x54] sm:$0x7f] %vm108_vm6, %v786_v53 }
 0x13a   :  { %760 = vst.msk [vmem:[#allocation2 + $0x4d] sm:$0x7f] %vm140_vm10, %v758_v54 }
 0x13c   :  { %v822_v55 = vpop.permute.xlu1 %821 }
 0x13d   :  { %v793_v56 = vpop.permute.xlu0 %792  ;;  %824 = vst.msk [vmem:[#allocation2 + $0x5b] sm:$0x7f] %vm84_vm3, %v822_v55  ;;  %vm1146_vm3 = vcmask 387392  }
 0x13e   :  { %795 = vst.msk [vmem:[#allocation2 + $0x54] sm:$0x7f] %vm116_vm7, %v793_v56  ;;  %v2183_v56 = vld [vmem:[%s3513_s4] sm:$0xff]  }
 0x13f   :  { %2410 = vmatpush3.bf16.msra.mxu1 %v2183_v56 }
 0x140   :  { %v828_v57 = vpop.permute.xlu1 %827  ;;  %2411 = vmatprep.subr.bf16.mxu1 %v2511_v25 }
 0x141   :  { %v800_v58 = vpop.permute.xlu0 %799  ;;  %830 = vst.msk [vmem:[#allocation2 + $0x5b] sm:$0x7f] %vm92_vm4, %v828_v57  ;;  %v882_v59 = vld [vmem:[#allocation2 + $0x48] sm:$0xff]  ;;  %vm1154_vm4 = vcmask 452992  }
 0x142   :  { %802 = vst.msk [vmem:[#allocation2 + $0x54] sm:$0x7f] %vm124_vm8, %v800_v58  ;;  %2342 = vmatmul.mubr.msk.f32.gmra.mrb[18].mxu0 %vm903_vm11, %v882_v59  ;;  %v2251_v57 = vld [vmem:[%s3513_s4 + $0x8] sm:$0xff]  }
 0x143   :  { %2344 = vmatprep.mubr.msk.f32.mxu0 %vm2512_vm1, %v2513_v35  ;;  %2413 = vmatpush3.bf16.msra.mxu1 %v2251_v57 }
 0x144   :  { %v835_v60 = vpop.permute.xlu1 %834  ;;  %2414 = vmatprep.subr.bf16.mxu1 %v2511_v25 }
 0x145   :  { %v807_v61 = vpop.permute.xlu0 %806  ;;  %837 = vst.msk [vmem:[#allocation2 + $0x5b] sm:$0x7f] %vm100_vm5, %v835_v60  ;;  %v2252_v60 = vld [vmem:[%s3513_s4 + $0x10] sm:$0xff]   ;;  %vm1162_vm5 = vcmask 518592  }
 0x146   :  { %809 = vst.msk [vmem:[#allocation2 + $0x54] sm:$0x7f] %vm132_vm9, %v807_v61 }
 0x147   :  { %2416 = vmatpush3.bf16.msra.mxu1 %v2252_v60 }
 0x148   :  { %v842_v62 = vpop.permute.xlu1 %841  ;;  %2417 = vmatprep.subr.bf16.mxu1 %v2511_v25 }
 0x149   :  { %v814_v63 = vpop.permute.xlu0 %813  ;;  %844 = vst.msk [vmem:[#allocation2 + $0x5b] sm:$0x7f] %vm108_vm6, %v842_v62  ;;  %vm1170_vm6 = vcmask 584192  }
 0x14a   :  { %816 = vst.msk [vmem:[#allocation2 + $0x54] sm:$0x7f] %vm140_vm10, %v814_v63  ;;  %v2253_v63 = vld [vmem:[%s3513_s4 + $0x18] sm:$0xff]  }
 0x14b   :  { %2419 = vmatpush3.bf16.msra.mxu1 %v2253_v63 }
 0x14c   :  { %v856_v0 = vpop.permute.xlu1 %855  ;;  %2369 = vmatprep.subr.mxu1 %v2513_v35 }
 0x14d   :  { %v849_v1 = vpop.permute.xlu0 %848 }
 0x14e   :  { %851 = vst.msk [vmem:[#allocation2 + $0x5b] sm:$0x7f] %vm116_vm7, %v849_v1  ;;  %vm1103_vm7 = vcmask 58368  }
 0x14f   :  { %858 = vst.msk [vmem:[#allocation2 + $0x5b] sm:$0x7f] %vm124_vm8, %v856_v0  ;;  %vm1483_vm8 = vcmask 588800  }
 0x150   :  { %v870_v2 = vpop.permute.xlu1 %869 }
 0x151   :  { %v863_v3 = vpop.permute.xlu0 %862  ;;  %v883_v4 = vld [vmem:[#allocation2 + $0x50] sm:$0xff] }
 0x152   :  { %865 = vst.msk [vmem:[#allocation2 + $0x5b] sm:$0x7f] %vm132_vm9, %v863_v3  ;;  %2345 = vmatmul.mubr.msk.f32.gmra.mrb[20].mxu0 %vm903_vm11, %v883_v4  ;;  %v1466_v4 = vld [vmem:[%s3513_s4 + $0x20] sm:$0xf]  ;;  %vm1576_vm9 = vcmask 130048   ;;  %s2520_s4 = smov 80  }
 0x153   :  { %872 = vst.msk [vmem:[#allocation2 + $0x5b] sm:$0x7f] %vm140_vm10, %v870_v2  ;;  %2347 = vmatprep.mubr.msk.f32.mxu0 %vm2512_vm1, %v2513_v35  ;;  %vm1579_vm10 = vcmask 123904  }
 0x15a   :  { %v884_v5 = vld [vmem:[#allocation2 + $0x58] sm:$0xff]  ;;  %v885_v6 = vld [vmem:[#allocation2 + $0x60] sm:$0x3] }
 0x15b   :  { %2348 = vmatmul.mubr.msk.f32.gmra.mrb[22].mxu0 %vm903_vm11, %v884_v5  ;;  %v1475_v5 = vunpack.c.l.bf16 %v1466_v4 }
 0x15c   :  { %2350 = vmatprep.mubr.msk.f32.mxu0 %vm2512_vm1, %v2513_v35 }
 0x15d   :  { %2370 = vmatpush3.msra.mxu1 %v1475_v5 }
 0x15e   :  { %2420 = vmatprep.subr.bf16.mxu1 %v2511_v25 }
 0x15f   :  { %2351 = vmatmul.mubr.msk.f32.gmra.mrb[24].mxu0 %vm903_vm11, %v885_v6  ;;  %vm1596_vm11 = vcmask 255104  }
 0x160   :  { %2388 = vmatprep.mubr.msk.f32.mxu0 %vm2512_vm1, %v2513_v35 }
 0x175   :  { %v1013_v8 = vpop.f32.mrb[0].mxu0 }
 0x176   :  { %v1014_v9 = vadd.f32 %v3264_v7, %v1013_v8  ;;  %v2316_v10 = vpop.f32.mrb[1].mxu0 }
 0x178   :  { %v1077_v11 = vmax.f32 %v1014_v9, 0.0 }
 0x17a   :  { %1091 = vst.msk [vmem:[#allocation3] sm:$0xff] %vm1090_vm12, %v1077_v11 }
 0x181   :  { %v1117_v12 = vld [vmem:[#allocation3 + $0x2] ss:$2 sm:$0x7]  ;;  %v1109_v13 = vld [vmem:[#allocation3 + $0x1] ss:$2 sm:$0x7] }
 0x182   :  { %1119 = vrot.lane.b32.xlu1 %v1117_v12, %s2506_s22  ;;  %1111 = vrot.lane.b32.xlu0 %v1109_v13, %s2503_s23  ;;  %v1105_v14 = vld [vmem:[#allocation3] ss:$2 sm:$0x7] }
 0x183   :  { %1107 = vst.msk [vmem:[#allocation4] sm:$0x7] %vm1106_vm13, %v1105_v14 }
 0x185   :  { %v1018_v15 = vpop.f32.mrb[2].mxu0 }
 0x186   :  { %v1019_v16 = vadd.f32 %v3264_v7, %v1018_v15  ;;  %v2319_v17 = vpop.f32.mrb[3].mxu0 }
 0x188   :  { %v1078_v18 = vmax.f32 %v1019_v16, 0.0 }
 0x18a   :  { %1092 = vst.msk [vmem:[#allocation3 + $0x8] sm:$0xff] %vm1090_vm12, %v1078_v18 }
 0x191   :  { %v1133_v19 = vld [vmem:[#allocation3 + $0x8] ss:$2 sm:$0x7]  ;;  %v1125_v20 = vld [vmem:[#allocation3 + $0x7] ss:$2 sm:$0x7] }
 0x192   :  { %1135 = vrot.lane.b32.xlu1 %v1133_v19, %s2510_s25  ;;  %1127 = vrot.lane.b32.xlu0 %v1125_v20, %s2508_s16  ;;  %v1141_v22 = vld [vmem:[#allocation3 + $0x9] ss:$2 sm:$0x7] }
 0x195   :  { %v1023_v21 = vpop.f32.mrb[4].mxu0 }
 0x196   :  { %v1024_v23 = vadd.f32 %v3264_v7, %v1023_v21  ;;  %1143 = vrot.lane.b32.xlu0 %v1141_v22, %s2514_s3  ;;  %v2322_v24 = vpop.f32.mrb[5].mxu0 }
 0x198   :  { %v1079_v26 = vmax.f32 %v1024_v23, 0.0 }
 0x19a   :  { %1093 = vst.msk [vmem:[#allocation3 + $0x10] sm:$0xff] %vm1090_vm12, %v1079_v26 }
 0x1a1   :  { %v1180_v27 = vld [vmem:[#allocation3 + $0x10] ss:$2 sm:$0x7]  ;;  %v1174_v28 = vld [vmem:[#allocation3 + $0xf] ss:$2 sm:$0x7] }
 0x1a2   :  { %1182 = vrot.lane.b32.xlu0 %v1180_v27, %s2506_s22  ;;  %1176 = vrot.lane.b32.xlu1 %v1174_v28, %s2503_s23  ;;  %v1172_v29 = vld [vmem:[#allocation3 + $0xe] ss:$2 sm:$0x7]  ;;  %v1157_v36 = vld [vmem:[#allocation3 + $0xf] ss:$2 sm:$0x7] }
 0x1a3   :  { %1173 = vst.msk [vmem:[#allocation4 + $0x3] sm:$0x7] %vm1106_vm13, %v1172_v29  ;;  %v1149_v31 = vld [vmem:[#allocation3 + $0xe] ss:$2 sm:$0x7] }
 0x1a4   :  { %v1165_v37 = vld [vmem:[#allocation3 + $0x10] ss:$2 sm:$0x7] }
 0x1a5   :  { %v1028_v30 = vpop.f32.mrb[6].mxu0 }
 0x1a6   :  { %v1029_v32 = vadd.f32 %v3264_v7, %v1028_v30  ;;  %1151 = vrot.lane.b32.xlu0 %v1149_v31, %s2515_s30  ;;  %v2325_v33 = vpop.f32.mrb[7].mxu0 }
 0x1a8   :  { %v1080_v34 = vmax.f32 %v1029_v32, 0.0 }
 0x1aa   :  { %1094 = vst.msk [vmem:[#allocation3 + $0x18] sm:$0xff] %vm1090_vm12, %v1080_v34  ;;  %1159 = vrot.lane.b32.xlu0 %v1157_v36, %s2516_s20 }
 0x1ae   :  { %1167 = vrot.lane.b32.xlu0 %v1165_v37, %s2517_s21 }
 0x1b1   :  { %v1194_v38 = vld [vmem:[#allocation3 + $0x16] ss:$2 sm:$0x7]  ;;  %v1187_v39 = vld [vmem:[#allocation3 + $0x15] ss:$2 sm:$0x7] }
 0x1b2   :  { %1196 = vrot.lane.b32.xlu0 %v1194_v38, %s2510_s25  ;;  %1189 = vrot.lane.b32.xlu1 %v1187_v39, %s2508_s16  ;;  %v1201_v41 = vld [vmem:[#allocation3 + $0x17] ss:$2 sm:$0x7] }
 0x1b5   :  { %v1033_v40 = vpop.f32.mrb[8].mxu0 }
 0x1b6   :  { %v1034_v42 = vadd.f32 %v3264_v7, %v1033_v40  ;;  %1203 = vrot.lane.b32.xlu1 %v1201_v41, %s2514_s3  ;;  %v2328_v43 = vpop.f32.mrb[9].mxu0 }
 0x1b8   :  { %v1081_v44 = vmax.f32 %v1034_v42, 0.0 }
 0x1ba   :  { %1095 = vst.msk [vmem:[#allocation3 + $0x20] sm:$0xff] %vm1090_vm12, %v1081_v44 }
 0x1c1   :  { %v1236_v45 = vld [vmem:[#allocation3 + $0x1e] ss:$2 sm:$0x7]  ;;  %v1230_v46 = vld [vmem:[#allocation3 + $0x1d] ss:$2 sm:$0x7] }
 0x1c2   :  { %1238 = vrot.lane.b32.xlu1 %v1236_v45, %s2506_s22  ;;  %1232 = vrot.lane.b32.xlu0 %v1230_v46, %s2503_s23  ;;  %v1243_v47 = vld [vmem:[#allocation3 + $0x23] ss:$2 sm:$0x7]  ;;  %v1228_v48 = vld [vmem:[#allocation3 + $0x1c] ss:$2 sm:$0x7] }
 0x1c3   :  { %v1208_v50 = vld [vmem:[#allocation3 + $0x1c] ss:$2 sm:$0x7]  ;;  %1229 = vst.msk [vmem:[#allocation4 + $0x6] sm:$0x7] %vm1106_vm13, %v1228_v48 }
 0x1c4   :  { %v1215_v54 = vld [vmem:[#allocation3 + $0x1d] ss:$2 sm:$0x7]  ;;  %v1222_v55 = vld [vmem:[#allocation3 + $0x1e] ss:$2 sm:$0x7] }
 0x1c5   :  { %v1038_v49 = vpop.f32.mrb[10].mxu0 }
 0x1c6   :  { %v1039_v51 = vadd.f32 %v3264_v7, %v1038_v49  ;;  %1245 = vrot.lane.b32.xlu0 %v1243_v47, %s2508_s16  ;;  %1210 = vrot.lane.b32.xlu1 %v1208_v50, %s2515_s30  ;;  %v2331_v52 = vpop.f32.mrb[11].mxu0 }
 0x1c8   :  { %v1082_v53 = vmax.f32 %v1039_v51, 0.0 }
 0x1ca   :  { %1096 = vst.msk [vmem:[#allocation3 + $0x28] sm:$0xff] %vm1090_vm12, %v1082_v53  ;;  %1217 = vrot.lane.b32.xlu1 %v1215_v54, %s2516_s20 }
 0x1ce   :  { %1224 = vrot.lane.b32.xlu1 %v1222_v55, %s2517_s21 }
 0x1d1   :  { %v1257_v58 = vld [vmem:[#allocation3 + $0x25] ss:$2 sm:$0x7]  ;;  %v1250_v59 = vld [vmem:[#allocation3 + $0x24] ss:$2 sm:$0x7] }
 0x1d2   :  { %1259 = vrot.lane.b32.xlu0 %v1257_v58, %s2514_s3  ;;  %1252 = vrot.lane.b32.xlu1 %v1250_v59, %s2510_s25  ;;  %v1264_v61 = vld [vmem:[#allocation3 + $0x2a] ss:$2 sm:$0x7]  ;;  %v1271_v1 = vld [vmem:[#allocation3 + $0x2b] ss:$2 sm:$0x7] }
 0x1d6   :  { %1266 = vrot.lane.b32.xlu0 %v1264_v61, %s2515_s30 }
 0x1d8   :  { %v1043_v62 = vpop.f32.mrb[12].mxu0 }
 0x1d9   :  { %v1044_v0 = vadd.f32 %v3264_v7, %v1043_v62  ;;  %v2334_v2 = vpop.f32.mrb[13].mxu0 }
 0x1da   :  { %1273 = vrot.lane.b32.xlu0 %v1271_v1, %s2516_s20 }
 0x1db   :  { %v1083_v3 = vmax.f32 %v1044_v0, 0.0 }
 0x1dd   :  { %1097 = vst.msk [vmem:[#allocation3 + $0x30] sm:$0xff] %vm1090_vm12, %v1083_v3 }
 0x1e4   :  { %v1288_v6 = vld [vmem:[#allocation3 + $0x32] ss:$2 sm:$0x7]  ;;  %v1278_v8 = vld [vmem:[#allocation3 + $0x2c] ss:$2 sm:$0x7] }
 0x1e5   :  { %1290 = vrot.lane.b32.xlu1 %v1288_v6, %s2503_s23  ;;  %1280 = vrot.lane.b32.xlu0 %v1278_v8, %s2517_s21  ;;  %v1285_v9 = vld [vmem:[#allocation3 + $0x31] ss:$2 sm:$0x7] }
 0x1e6   :  { %1286 = vst.msk [vmem:[#allocation4 + $0x9] sm:$0x7] %vm1106_vm13, %v1285_v9  ;;  %v1295_v10 = vld [vmem:[#allocation3 + $0x33] ss:$2 sm:$0x7] }
 0x1e9   :  { %1297 = vrot.lane.b32.xlu1 %v1295_v10, %s2506_s22 }
 0x1f4   :  { %v1120_v11 = vpop.permute.xlu1 %1119  ;;  %v1112_v12 = vpop.permute.xlu0 %1111 }
 0x1f5   :  { %1115 = vst.msk [vmem:[#allocation4] sm:$0x7] %vm1114_vm14, %v1112_v12  ;;  %v1048_v13 = vpop.f32.mrb[14].mxu0 }
 0x1f6   :  { %v1049_v14 = vadd.f32 %v3264_v7, %v1048_v13  ;;  %v2337_v15 = vpop.f32.mrb[15].mxu0  ;;  %1123 = vst.msk [vmem:[#allocation4] sm:$0x7] %vm1122_vm15, %v1120_v11 }
 0x1f8   :  { %v1084_v16 = vmax.f32 %v1049_v14, 0.0 }
 0x1fa   :  { %1098 = vst.msk [vmem:[#allocation3 + $0x38] sm:$0xff] %vm1090_vm12, %v1084_v16 }
 0x201   :  { %v1316_v17 = vld [vmem:[#allocation3 + $0x3a] ss:$2 sm:$0x7]  ;;  %v1309_v22 = vld [vmem:[#allocation3 + $0x39] ss:$2 sm:$0x7] }
 0x202   :  { %v1302_v18 = vld [vmem:[#allocation3 + $0x38] ss:$2 sm:$0x7]  ;;  %1318 = vrot.lane.b32.xlu0 %v1316_v17, %s2514_s3 }
 0x203   :  { %1304 = vrot.lane.b32.xlu1 %v1302_v18, %s2508_s16 }
 0x204   :  { %v1136_v19 = vpop.permute.xlu1 %1135  ;;  %v1128_v20 = vpop.permute.xlu0 %1127 }
 0x205   :  { %1131 = vst.msk [vmem:[#allocation4] sm:$0x7] %vm1130_vm0, %v1128_v20  ;;  %v1053_v21 = vpop.f32.mrb[16].mxu0 }
 0x206   :  { %v1054_v23 = vadd.f32 %v3264_v7, %v1053_v21  ;;  %v2340_v24 = vpop.f32.mrb[17].mxu0  ;;  %1139 = vst.msk [vmem:[#allocation4] sm:$0x7] %vm1138_vm2, %v1136_v19 }
 0x207   :  { %1311 = vrot.lane.b32.xlu1 %v1309_v22, %s2510_s25 }
 0x208   :  { %v1085_v26 = vmax.f32 %v1054_v23, 0.0  ;;  %v1144_v27 = vpop.permute.xlu0 %1143 }
 0x209   :  { %1147 = vst.msk [vmem:[#allocation4] sm:$0x7] %vm1146_vm3, %v1144_v27 }
 0x20a   :  { %1099 = vst.msk [vmem:[#allocation3 + $0x40] sm:$0xff] %vm1090_vm12, %v1085_v26 }
 0x211   :  { %v1345_v28 = vld [vmem:[#allocation3 + $0x40] ss:$2 sm:$0x7]  ;;  %v1323_v29 = vld [vmem:[#allocation3 + $0x3f] ss:$2 sm:$0x7] }
 0x212   :  { %1347 = vrot.lane.b32.xlu0 %v1345_v28, %s2503_s23  ;;  %1325 = vrot.lane.b32.xlu1 %v1323_v29, %s2515_s30  ;;  %v1343_v30 = vld [vmem:[#allocation3 + $0x3f] ss:$2 sm:$0x7]  ;;  %v1330_v41 = vld [vmem:[#allocation3 + $0x40] ss:$2 sm:$0x7] }
 0x213   :  { %v1351_v33 = vld [vmem:[#allocation3 + $0x41] ss:$2 sm:$0x7]  ;;  %1344 = vst.msk [vmem:[#allocation4 + $0xc] sm:$0x7] %vm1106_vm13, %v1343_v30 }
 0x214   :  { %v1183_v31 = vpop.permute.xlu0 %1182  ;;  %v1177_v32 = vpop.permute.xlu1 %1176  ;;  %v1337_v36 = vld [vmem:[#allocation3 + $0x41] ss:$2 sm:$0x7] }
 0x215   :  { %1179 = vst.msk [vmem:[#allocation4 + $0x3] sm:$0x7] %vm1114_vm14, %v1177_v32  ;;  %v1058_v34 = vpop.f32.mrb[18].mxu0 }
 0x216   :  { %1185 = vst.msk [vmem:[#allocation4 + $0x3] sm:$0x7] %vm1122_vm15, %v1183_v31  ;;  %v1059_v37 = vadd.f32 %v3264_v7, %v1058_v34  ;;  %1353 = vrot.lane.b32.xlu0 %v1351_v33, %s2506_s22  ;;  %1339 = vrot.lane.b32.xlu1 %v1337_v36, %s2517_s21  ;;  %v2343_v38 = vpop.f32.mrb[19].mxu0 }
 0x218   :  { %v1086_v39 = vmax.f32 %v1059_v37, 0.0  ;;  %v1152_v40 = vpop.permute.xlu0 %1151 }
 0x219   :  { %1155 = vst.msk [vmem:[#allocation4] sm:$0x7] %vm1154_vm4, %v1152_v40 }
 0x21a   :  { %1100 = vst.msk [vmem:[#allocation3 + $0x48] sm:$0xff] %vm1090_vm12, %v1086_v39  ;;  %1332 = vrot.lane.b32.xlu0 %v1330_v41, %s2516_s20 }
 0x21c   :  { %v1160_v42 = vpop.permute.xlu0 %1159 }
 0x21d   :  { %1163 = vst.msk [vmem:[#allocation4] sm:$0x7] %vm1162_vm5, %v1160_v42 }
 0x220   :  { %v1168_v43 = vpop.permute.xlu0 %1167 }
 0x221   :  { %1171 = vst.msk [vmem:[#allocation4] sm:$0x7] %vm1170_vm6, %v1168_v43  ;;  %v1372_v44 = vld [vmem:[#allocation3 + $0x48] ss:$2 sm:$0x7] }
 0x222   :  { %v1358_v45 = vld [vmem:[#allocation3 + $0x46] ss:$2 sm:$0x7]  ;;  %1374 = vrot.lane.b32.xlu1 %v1372_v44, %s2514_s3  ;;  %v1365_v49 = vld [vmem:[#allocation3 + $0x47] ss:$2 sm:$0x7] }
 0x223   :  { %1360 = vrot.lane.b32.xlu0 %v1358_v45, %s2508_s16 }
 0x224   :  { %v1197_v46 = vpop.permute.xlu0 %1196  ;;  %v1190_v47 = vpop.permute.xlu1 %1189 }
 0x225   :  { %1192 = vst.msk [vmem:[#allocation4 + $0x3] sm:$0x7] %vm1130_vm0, %v1190_v47  ;;  %v1063_v48 = vpop.f32.mrb[20].mxu0 }
 0x226   :  { %1199 = vst.msk [vmem:[#allocation4 + $0x3] sm:$0x7] %vm1138_vm2, %v1197_v46  ;;  %v1064_v50 = vadd.f32 %v3264_v7, %v1063_v48  ;;  %v2346_v51 = vpop.f32.mrb[21].mxu0 }
 0x227   :  { %1367 = vrot.lane.b32.xlu0 %v1365_v49, %s2510_s25 }
 0x228   :  { %v1087_v52 = vmax.f32 %v1064_v50, 0.0  ;;  %v1204_v53 = vpop.permute.xlu1 %1203  ;;  %v2162_v50 = vld [vmem:[%s3514_s5] ss:$0 sm:$0xff]  ;;  %s2173_s5 = sshll.u32 %s3523_s0, 4 }
 0x229   :  { %1206 = vst.msk [vmem:[#allocation4 + $0x3] sm:$0x7] %vm1146_vm3, %v1204_v53  ;;  %s68_s24 = scalar_lea.vmem %s3519_s10, %s2173_s5 }
 0x22a   :  { %1101 = vst.msk [vmem:[#allocation3 + $0x50] sm:$0xff] %vm1090_vm12, %v1087_v52  ;;  %v2199_v52 = vld [vmem:[%s3515_s6] sm:$0xff]  }
 0x22e   :  { %v1068_v54 = vpop.f32.mrb[22].mxu0 }
 0x22f   :  { %v1069_v55 = vadd.f32 %v3264_v7, %v1068_v54  ;;  %v2349_v56 = vpop.f32.mrb[23].mxu0 }
 0x231   :  { %v1088_v57 = vmax.f32 %v1069_v55, 0.0  ;;  %v1401_v58 = vld [vmem:[#allocation3 + $0x4e] ss:$2 sm:$0x7]  ;;  %v2254_v55 = vld [vmem:[%s3515_s6 + $0x8] sm:$0xff]  }
 0x232   :  { %1403 = vrot.lane.b32.xlu1 %v1401_v58, %s2503_s23  ;;  %v1379_v59 = vld [vmem:[#allocation3 + $0x4d] ss:$2 sm:$0x7]  ;;  %v1073_v60 = vpop.f32.mrb[24].mxu0 }
 0x233   :  { %1102 = vst.msk [vmem:[#allocation3 + $0x58] sm:$0xff] %vm1090_vm12, %v1088_v57  ;;  %1381 = vrot.lane.b32.xlu0 %v1379_v59, %s2515_s30  ;;  %v1074_v61 = vadd.f32 %v3264_v7, %v1073_v60  ;;  %v2352_v62 = vpop.f32.mrb[25].mxu0  ;;  %v1407_v1 = vld [vmem:[#allocation3 + $0x4f] ss:$2 sm:$0x7]  ;;  %vm1611_vm12 = vcmask 386304  }
 0x234   :  { %v1239_v63 = vpop.permute.xlu1 %1238  ;;  %v1233_v0 = vpop.permute.xlu0 %1232  ;;  %v1399_v3 = vld [vmem:[#allocation3 + $0x4d] ss:$2 sm:$0x7]  ;;  %v1386_v7 = vld [vmem:[#allocation3 + $0x4e] ss:$2 sm:$0x7] }
 0x235   :  { %v1089_v2 = vmax.f32 %v1074_v61, 0.0  ;;  %1235 = vst.msk [vmem:[#allocation4 + $0x6] sm:$0x7] %vm1114_vm14, %v1233_v0  ;;  %v1393_v13 = vld [vmem:[#allocation3 + $0x4f] ss:$2 sm:$0x7] }
 0x236   :  { %1241 = vst.msk [vmem:[#allocation4 + $0x6] sm:$0x7] %vm1122_vm15, %v1239_v63  ;;  %1409 = vrot.lane.b32.xlu1 %v1407_v1, %s2506_s22  ;;  %v2255_v57 = vld [vmem:[%s3515_s6 + $0x10] sm:$0xff]   ;;  %v2518_v61 = vmov 1983009808   ;;  %v1589_v63 = vlaneseq  ;;  %v2256_v0 = vld [vmem:[%s3515_s6 + $0x18] sm:$0xff]  }
 0x237   :  { %1400 = vst.msk [vmem:[#allocation4 + $0xf] sm:$0x7] %vm1106_vm13, %v1399_v3  ;;  %v1587_v62 = vunpack.c.l.s4 %v2518_v61  ;;  %vm1626_vm13 = vcmask 517504  }
 0x238   :  { %1104 = vst.msk [vmem:[#allocation3 + $0x60] sm:$0x3] %vm1103_vm7, %v1089_v2  ;;  %v1246_v4 = vpop.permute.xlu0 %1245  ;;  %v1211_v5 = vpop.permute.xlu1 %1210 }
 0x239   :  { %1248 = vst.msk [vmem:[#allocation4 + $0x6] sm:$0x7] %vm1130_vm0, %v1246_v4 }
 0x23a   :  { %1213 = vst.msk [vmem:[#allocation4 + $0x3] sm:$0x7] %vm1154_vm4, %v1211_v5  ;;  %1388 = vrot.lane.b32.xlu1 %v1386_v7, %s2516_s20  ;;  %v1428_v6 = vld [vmem:[#allocation3 + $0x56] ss:$2 sm:$0x7]  ;;  %v1588_v5 = vunpack.c.0.s8 %v1587_v62  ;;  %v1590_v7 = vshrl.u32 %v1589_v63, 7 }
 0x23b   :  { %1430 = vrot.lane.b32.xlu0 %v1428_v6, %s2514_s3  ;;  %v1414_v9 = vld [vmem:[#allocation3 + $0x54] ss:$2 sm:$0x7]  ;;  %v1421_v12 = vld [vmem:[#allocation3 + $0x55] ss:$2 sm:$0x7] }
 0x23c   :  { %v1218_v8 = vpop.permute.xlu1 %1217  ;;  %v1435_v16 = vld [vmem:[#allocation3 + $0x5b] ss:$2 sm:$0x7] }
 0x23d   :  { %1220 = vst.msk [vmem:[#allocation4 + $0x3] sm:$0x7] %vm1162_vm5, %v1218_v8  ;;  %v2257_v6 = vld [vmem:[%s3515_s6 + $0x20] sm:$0xff]  }
 0x23e   :  { %1416 = vrot.lane.b32.xlu1 %v1414_v9, %s2508_s16  ;;  %v1591_v9 = vsub.s32 %v1588_v5, %v1590_v7 }
 0x23f   :  { %v1442_v10 = vld [vmem:[#allocation3 + $0x5c] ss:$2 sm:$0x7]  ;;  %v1449_v18 = vld [vmem:[#allocation3 + $0x5d] ss:$2 sm:$0x7] }
 0x240   :  { %1444 = vrot.lane.b32.xlu0 %v1442_v10, %s2516_s20  ;;  %v1225_v11 = vpop.permute.xlu1 %1224  ;;  %v2258_v10 = vld [vmem:[%s3515_s6 + $0x28] sm:$0xff]  }
 0x241   :  { %1227 = vst.msk [vmem:[#allocation4 + $0x3] sm:$0x7] %vm1170_vm6, %v1225_v11 }
 0x242   :  { %1423 = vrot.lane.b32.xlu1 %v1421_v12, %s2510_s25 }
 0x244   :  { %1395 = vrot.lane.b32.xlu0 %v1393_v13, %s2517_s21  ;;  %v1260_v14 = vpop.permute.xlu0 %1259  ;;  %v1253_v15 = vpop.permute.xlu1 %1252 }
 0x245   :  { %1255 = vst.msk [vmem:[#allocation4 + $0x6] sm:$0x7] %vm1138_vm2, %v1253_v15 }
 0x246   :  { %1262 = vst.msk [vmem:[#allocation4 + $0x6] sm:$0x7] %vm1146_vm3, %v1260_v14  ;;  %1437 = vrot.lane.b32.xlu1 %v1435_v16, %s2515_s30 }
 0x248   :  { %v1267_v17 = vpop.permute.xlu0 %1266 }
 0x249   :  { %1269 = vst.msk [vmem:[#allocation4 + $0x6] sm:$0x7] %vm1154_vm4, %v1267_v17 }
 0x24a   :  { %1451 = vrot.lane.b32.xlu1 %v1449_v18, %s2517_s21  ;;  %v2259_v18 = vld [vmem:[%s3515_s6 + $0x30] sm:$0xff]  }
 0x24c   :  { %v1274_v19 = vpop.permute.xlu0 %1273 }
 0x24d   :  { %1276 = vst.msk [vmem:[#allocation4 + $0x6] sm:$0x7] %vm1162_vm5, %v1274_v19 }
 0x257   :  { %v1291_v20 = vpop.permute.xlu1 %1290  ;;  %v1281_v21 = vpop.permute.xlu0 %1280 }
 0x258   :  { %1293 = vst.msk [vmem:[#allocation4 + $0x9] sm:$0x7] %vm1114_vm14, %v1291_v20 }
 0x259   :  { %1283 = vst.msk [vmem:[#allocation4 + $0x6] sm:$0x7] %vm1170_vm6, %v1281_v21 }
 0x25b   :  { %v1298_v22 = vpop.permute.xlu1 %1297 }
 0x25c   :  { %1300 = vst.msk [vmem:[#allocation4 + $0x9] sm:$0x7] %vm1122_vm15, %v1298_v22  ;;  %v2260_v22 = vld [vmem:[%s3515_s6 + $0x38] sm:$0xff]  }
 0x260   :  { %v1455_v23 = vld [vmem:[#allocation4] sm:$0xff] }
 0x261   :  { %2372 = vmatmul.mubr.msk.f32.vlgmr.msra.gmra.mrb[0].mxu1 %vm1483_vm8, %v1455_v23 }
 0x262   :  { %2374 = vmatprep.mubr.msk.f32.mxu1 %vm2512_vm1, %v2513_v35  ;;  %2422 = vmatpush1.bf16.msra.mxu1 %v2199_v52 }
 0x263   :  { %2423 = vmatprep.subr.bf16.mxu1 %v2511_v25 }
 0x266   :  { %2425 = vmatpush1.bf16.msra.mxu1 %v2254_v55 }
 0x267   :  { %2426 = vmatprep.subr.bf16.mxu1 %v2511_v25 }
 0x26a   :  { %2428 = vmatpush1.bf16.msra.mxu1 %v2255_v57 }
 0x26b   :  { %2429 = vmatprep.subr.bf16.mxu1 %v2511_v25 }
 0x26e   :  { %2431 = vmatpush1.bf16.msra.mxu1 %v2256_v0 }
 0x26f   :  { %2432 = vmatprep.subr.bf16.mxu1 %v2511_v25 }
 0x272   :  { %2434 = vmatpush1.bf16.msra.mxu1 %v2257_v6 }
 0x273   :  { %2435 = vmatprep.subr.bf16.mxu1 %v2511_v25 }
 0x274   :  { %v1319_v27 = vpop.permute.xlu0 %1318 }
 0x275   :  { %v1305_v24 = vpop.permute.xlu1 %1304 }
 0x276   :  { %1307 = vst.msk [vmem:[#allocation4 + $0x9] sm:$0x7] %vm1130_vm0, %v1305_v24  ;;  %2437 = vmatpush1.bf16.msra.mxu1 %v2258_v10 }
 0x277   :  { %2438 = vmatprep.subr.bf16.mxu1 %v2511_v25 }
 0x279   :  { %v1312_v26 = vpop.permute.xlu1 %1311 }
 0x27a   :  { %1314 = vst.msk [vmem:[#allocation4 + $0x9] sm:$0x7] %vm1138_vm2, %v1312_v26  ;;  %2440 = vmatpush1.bf16.msra.mxu1 %v2259_v18 }
 0x27b   :  { %1321 = vst.msk [vmem:[#allocation4 + $0x9] sm:$0x7] %vm1146_vm3, %v1319_v27  ;;  %2441 = vmatprep.subr.bf16.mxu1 %v2511_v25 }
 0x27e   :  { %2443 = vmatpush1.bf16.msra.mxu1 %v2260_v22 }
 0x27f   :  { %2444 = vmatprep.subr.bf16.mxu1 %v2511_v25 }
 0x284   :  { %v1348_v28 = vpop.permute.xlu0 %1347  ;;  %v1326_v29 = vpop.permute.xlu1 %1325 }
 0x285   :  { %1350 = vst.msk [vmem:[#allocation4 + $0xc] sm:$0x7] %vm1114_vm14, %v1348_v28  ;;  %v2261_v28 = vld [vmem:[%s3515_s6 + $0x40] sm:$0xff]  }
 0x286   :  { %1328 = vst.msk [vmem:[#allocation4 + $0x9] sm:$0x7] %vm1154_vm4, %v1326_v29  ;;  %2446 = vmatpush1.bf16.msra.mxu1 %v2261_v28 }
 0x287   :  { %2453 = vmatprep.subr.bf16.mxu1 %v2511_v25 }
 0x288   :  { %v1354_v30 = vpop.permute.xlu0 %1353  ;;  %v1340_v32 = vpop.permute.xlu1 %1339 }
 0x289   :  { %1356 = vst.msk [vmem:[#allocation4 + $0xc] sm:$0x7] %vm1122_vm15, %v1354_v30 }
 0x28c   :  { %v1333_v31 = vpop.permute.xlu0 %1332 }
 0x28d   :  { %1335 = vst.msk [vmem:[#allocation4 + $0x9] sm:$0x7] %vm1162_vm5, %v1333_v31  ;;  %v2235_v31 = vld [vmem:[%s3517_s8] sm:$0xff]  }
 0x28e   :  { %1342 = vst.msk [vmem:[#allocation4 + $0x9] sm:$0x7] %vm1170_vm6, %v1340_v32  ;;  %2449 = vmatpush3.bf16.msra.mxu0 %v2235_v31  ;;  %v2262_v32 = vld [vmem:[%s3517_s8 + $0x8] sm:$0xff]  }
 0x28f   :  { %2450 = vmatprep.subr.bf16.mxu0 %v2511_v25 }
 0x292   :  { %2452 = vmatpush3.bf16.msra.mxu0 %v2262_v32 }
 0x294   :  { %v1375_v36 = vpop.permute.xlu1 %1374 }
 0x295   :  { %v1361_v33 = vpop.permute.xlu0 %1360 }
 0x296   :  { %1363 = vst.msk [vmem:[#allocation4 + $0xc] sm:$0x7] %vm1130_vm0, %v1361_v33 }
 0x299   :  { %v1368_v34 = vpop.permute.xlu0 %1367 }
 0x29a   :  { %1370 = vst.msk [vmem:[#allocation4 + $0xc] sm:$0x7] %vm1138_vm2, %v1368_v34 }
 0x29b   :  { %1377 = vst.msk [vmem:[#allocation4 + $0xc] sm:$0x7] %vm1146_vm3, %v1375_v36 }
 0x2a4   :  { %v1404_v37 = vpop.permute.xlu1 %1403 }
 0x2a5   :  { %1406 = vst.msk [vmem:[#allocation4 + $0xf] sm:$0x7] %vm1114_vm14, %v1404_v37  ;;  %v1382_v38 = vpop.permute.xlu0 %1381  ;;  %vm1641_vm14 = vcmask 648704  }
 0x2a6   :  { %1384 = vst.msk [vmem:[#allocation4 + $0xc] sm:$0x7] %vm1154_vm4, %v1382_v38 }
 0x2a8   :  { %v1410_v39 = vpop.permute.xlu1 %1409 }
 0x2a9   :  { %1412 = vst.msk [vmem:[#allocation4 + $0xf] sm:$0x7] %vm1122_vm15, %v1410_v39  ;;  %vm1656_vm15 = vcmask 779904  }
 0x2ac   :  { %v1389_v40 = vpop.permute.xlu1 %1388 }
 0x2ad   :  { %1391 = vst.msk [vmem:[#allocation4 + $0xc] sm:$0x7] %vm1162_vm5, %v1389_v40  ;;  %v1431_v41 = vpop.permute.xlu0 %1430 }
 0x2b0   :  { %v1417_v42 = vpop.permute.xlu1 %1416 }
 0x2b1   :  { %1419 = vst.msk [vmem:[#allocation4 + $0xf] sm:$0x7] %vm1130_vm0, %v1417_v42  ;;  %vm1671_vm0 = vcmask 911104  }
 0x2b2   :  { %v1445_v43 = vpop.permute.xlu0 %1444 }
 0x2b4   :  { %v1424_v44 = vpop.permute.xlu1 %1423 }
 0x2b5   :  { %1426 = vst.msk [vmem:[#allocation4 + $0xf] sm:$0x7] %vm1138_vm2, %v1424_v44  ;;  %vm1686_vm2 = vcmask 1042304  }
 0x2b6   :  { %v1396_v45 = vpop.permute.xlu0 %1395  ;;  %1433 = vst.msk [vmem:[#allocation4 + $0xf] sm:$0x7] %vm1146_vm3, %v1431_v41 }
 0x2b7   :  { %1398 = vst.msk [vmem:[#allocation4 + $0xc] sm:$0x7] %vm1170_vm6, %v1396_v45 }
 0x2b8   :  { %v1438_v46 = vpop.permute.xlu1 %1437 }
 0x2b9   :  { %1440 = vst.msk [vmem:[#allocation4 + $0xf] sm:$0x7] %vm1154_vm4, %v1438_v46 }
 0x2ba   :  { %1447 = vst.msk [vmem:[#allocation4 + $0xf] sm:$0x7] %vm1162_vm5, %v1445_v43  ;;  %v2243_v43 = vld [vmem:[%s68_s24] sm:$0xff]  }
 0x2bc   :  { %v1452_v47 = vpop.permute.xlu1 %1451 }
 0x2bd   :  { %1454 = vst.msk [vmem:[#allocation4 + $0xf] sm:$0x7] %vm1170_vm6, %v1452_v47 }
 0x2c4   :  { %v1456_v48 = vld [vmem:[#allocation4 + $0x8] sm:$0xff]  ;;  %v1457_v49 = vld [vmem:[#allocation4 + $0x10] sm:$0x3] }
 0x2c5   :  { %2375 = vmatmul.mubr.msk.f32.gmra.mrb[2].mxu1 %vm1483_vm8, %v1456_v48  ;;  %v2263_v48 = vld [vmem:[%s68_s24 + $0x8] sm:$0xff]  }
 0x2c6   :  { %2377 = vmatprep.mubr.msk.f32.mxu1 %vm2512_vm1, %v2513_v35 }
 0x2c9   :  { %2378 = vmatmul.mubr.msk.f32.gmra.mrb[4].mxu1 %vm1483_vm8, %v1457_v49  ;;  %v2169_v49 = vld [vmem:[%s3518_s9] ss:$0 sm:$0xff] }
 0x334   :  { %v1559_v51 = vpop.f32.mrb[0].mxu1 }
 0x335   :  { %v1560_v53 = vadd.f32 %v2162_v50, %v1559_v51  ;;  %v2373_v54 = vpop.f32.mrb[1].mxu1 }
 0x337   :  { %v1573_v56 = vmax.f32 %v1560_v53, 0.0 }
 0x339   :  { %1577 = vst.msk [vmem:[#allocation5] sm:$0xff] %vm1576_vm9, %v1573_v56 }
 0x398   :  { %v1564_v58 = vpop.f32.mrb[2].mxu1 }
 0x399   :  { %v1565_v59 = vadd.f32 %v2162_v50, %v1564_v58  ;;  %v2376_v60 = vpop.f32.mrb[3].mxu1 }
 0x39b   :  { %v1574_v1 = vmax.f32 %v1565_v59, 0.0 }
 0x39c   :  { %v1569_v2 = vpop.f32.mrb[4].mxu1 }
 0x39d   :  { %1578 = vst.msk [vmem:[#allocation5 + $0x8] sm:$0xff] %vm1576_vm9, %v1574_v1  ;;  %v1570_v3 = vadd.f32 %v2162_v50, %v1569_v2  ;;  %v2379_v4 = vpop.f32.mrb[5].mxu1 }
 0x39f   :  { %v1575_v8 = vmax.f32 %v1570_v3, 0.0 }
 0x3a1   :  { %1580 = vst.msk [vmem:[#allocation5 + $0x10] sm:$0x3] %vm1579_vm10, %v1575_v8 }
 0x3a4   :  { %v1599_v11 = vld [vmem:[#allocation5 + $0x2] ss:$9 sm:$0x3]  ;;  %v1584_v12 = vld [vmem:[#allocation5 + $0x1] ss:$9 sm:$0x3] }
 0x3a5   :  { %v1607_v13 = vrot.slane %v1599_v11, %v1591_v9  ;;  %v1592_v14 = vrot.slane %v1584_v12, %v1591_v9  ;;  %v1629_v15 = vld [vmem:[#allocation5 + $0x4] ss:$9 sm:$0x3]  ;;  %v1614_v16 = vld [vmem:[#allocation5 + $0x3] ss:$9 sm:$0x3] }
 0x3a6   :  { %v1581_v17 = vld [vmem:[#allocation5] ss:$9 sm:$0x3]  ;;  %v1637_v20 = vrot.slane %v1629_v15, %v1591_v9  ;;  %v1622_v21 = vrot.slane %v1614_v16, %v1591_v9  ;;  %v1659_v23 = vld [vmem:[#allocation5 + $0x6] ss:$9 sm:$0x3] }
 0x3a7   :  { %1608 = vrot.lane.b32.xlu1 %v1607_v13, %s2510_s25  ;;  %1593 = vrot.lane.b32.xlu0 %v1592_v14, %s2506_s22  ;;  %1582 = vst.msk [vmem:[#allocation6] sm:$0x3] %vm1579_vm10, %v1581_v17  ;;  %v1644_v24 = vld [vmem:[#allocation5 + $0x5] ss:$9 sm:$0x3]  ;;  %v1667_v26 = vrot.slane %v1659_v23, %v1591_v9 }
 0x3a8   :  { %v1689_v19 = vld [vmem:[#allocation5 + $0x8] ss:$9 sm:$0x3]  ;;  %v1652_v27 = vrot.slane %v1644_v24, %v1591_v9  ;;  %v1674_v29 = vld [vmem:[#allocation5 + $0x7] ss:$9 sm:$0x3] }
 0x3a9   :  { %1690 = vst.msk [vmem:[#allocation6 + $0x2] sm:$0x3] %vm1579_vm10, %v1689_v19  ;;  %v1682_v30 = vrot.slane %v1674_v29, %v1591_v9 }
 0x3ab   :  { %1638 = vrot.lane.b32.xlu1 %v1637_v20, %s2517_s21  ;;  %1623 = vrot.lane.b32.xlu0 %v1622_v21, %s2515_s30  ;;  %s2521_s30 = smov 112  }
 0x3af   :  { %1668 = vrot.lane.b32.xlu1 %v1667_v26, %s2519_s2  ;;  %1653 = vrot.lane.b32.xlu0 %v1652_v27, %s2520_s4 }
 0x3b3   :  { %1683 = vrot.lane.b32.xlu0 %v1682_v30, %s2521_s30 }
 0x419   :  { %v1609_v33 = vpop.permute.xlu1 %1608  ;;  %v1594_v34 = vpop.permute.xlu0 %1593 }
 0x41a   :  { %1597 = vst.msk [vmem:[#allocation6] sm:$0x3] %vm1596_vm11, %v1594_v34 }
 0x41b   :  { %1612 = vst.msk [vmem:[#allocation6] sm:$0x3] %vm1611_vm12, %v1609_v33 }
 0x41d   :  { %v1639_v36 = vpop.permute.xlu1 %1638  ;;  %v1624_v37 = vpop.permute.xlu0 %1623 }
 0x41e   :  { %1627 = vst.msk [vmem:[#allocation6] sm:$0x3] %vm1626_vm13, %v1624_v37 }
 0x41f   :  { %1642 = vst.msk [vmem:[#allocation6] sm:$0x3] %vm1641_vm14, %v1639_v36 }
 0x421   :  { %v1669_v38 = vpop.permute.xlu1 %1668  ;;  %v1654_v39 = vpop.permute.xlu0 %1653 }
 0x422   :  { %1657 = vst.msk [vmem:[#allocation6] sm:$0x3] %vm1656_vm15, %v1654_v39 }
 0x423   :  { %1672 = vst.msk [vmem:[#allocation6] sm:$0x3] %vm1671_vm0, %v1669_v38 }
 0x425   :  { %v1684_v40 = vpop.permute.xlu0 %1683 }
 0x426   :  { %1687 = vst.msk [vmem:[#allocation6] sm:$0x3] %vm1686_vm2, %v1684_v40 }
 0x42d   :  { %v2167_v41 = vld.sshfl [vmem:[#allocation6] sm:$0x33 pattern:$0x76325410] }
 0x42e   :  { %v1743_v42 = vcombine.high %v2167_v41, %v2167_v41 }
 0x430   :  { %2168 = vmatprep.mubr.msk.f32.mxu1 %vm1576_vm9, %v1743_v42 }
 0x431   :  { %1812 = vmatmul.mubr.f32.vlgmr.msra.gmra.mrb[6].mxu1 %v2167_v41 }
 0x432   :  { %2399 = vmatprep.mubr.msk.f32.mxu1 %vm2512_vm1, %v2513_v35  ;;  %2455 = vmatpush3.bf16.msra.mxu1 %v2243_v43  ;;  %v2166_v35 = vld [vmem:[%s3516_s7] ss:$0 sm:$0xff]  ;;  %vm1833_vm1 = vcmask 261120   ;;  %s73_s7 = scalar_lea.vmem %s3520_s11, %s3523_s0 }
 0x433   :  { %2456 = vmatprep.subr.bf16.mxu1 %v2511_v25  ;;  %v2171_v53 = vld [vmem:[%s73_s7] ss:$0 sm:$0xff] }
 0x436   :  { %2458 = vmatpush3.bf16.msra.mxu1 %v2263_v48 }
 0x504   :  { %v1813_v44 = vpop.f32.mrb[6].mxu1 }
 0x505   :  { %v1814_v45 = vadd.f32 %v2166_v35, %v1813_v44  ;;  %v1815_v46 = vpop.f32.mrb[7].mxu1 }
 0x507   :  { %v1817_v47 = vmax.f32 %v1814_v45, 0.0 }
 0x509   :  { %2389 = vmatmul.mubr.msk.f32.vlgmr.msra.gmra.mrb[26].mxu0 %vm1833_vm1, %v1817_v47 }
 0x5dc   :  { %v1903_v50 = vpop.f32.mrb[26].mxu0 }
 0x5dd   :  { %v1904_v51 = vadd.f32 %v2169_v49, %v1903_v50  ;;  %v2390_v52 = vpop.f32.mrb[27].mxu0 }
 0x5df   :  { %v1907_v25 = vmax.f32 %v1904_v51, 0.0 }
 0x5e1   :  { %2400 = vmatmul.mubr.msk.f32.vlgmr.msra.gmra.mrb[8].mxu1 %vm1833_vm1, %v1907_v25 }
 0x6b4   :  { %v1992_v54 = vpop.f32.mrb[8].mxu1 }
 0x6b5   :  { %v1993_v55 = vadd.f32 %v2171_v53, %v1992_v54  ;;  %v2401_v56 = vpop.f32.mrb[9].mxu1 }
 0x6b7   :  { %1996 = vst [vmem:[#allocation9] sm:$0x3] %v1993_v55 }
 0x6b8   :  { %2490 = shalt.err (!%p2487_p5)
}
 0x6b9   :  { %s2491_s25 = scalar_lea.hbm %s3521_s12, 32 }
 0x6ba   :  { %p2492_p6 = scmp.ne.s32.totalorder %s3521_s12, %s2491_s25  ;;  %p2495_p7 = scmp.lt.u32.totalorder %s2491_s25, %s3521_s12 }
 0x6bc   :  { %p2497_p8 = pnand %p2495_p7, %p2492_p6 }
 0x6be   :  { %2500 = shalt.err (!%p2497_p8)
}
 0x6bf   :  { %2006 = dma.vmem_to_hbm [thread:$0]  %s2004_s18, 32, %s3521_s12, [#allocation10]  }
 0x6c0   :  { %2501 = dma.done.wait [#allocation10], 32  }
 0x6c1   :  { %2502 = vsyncadd [#allocation10], 4294967264 }
 0x6c2   :  { %2010 = vsyncpa [#allocation10], 1 }

</bundles_post_ra>
